<compile_context>
chip_gen: v7x
topology: tpu7x:2x2x1
jax: 0.10.0
libtpu: 0.0.40
codegen_flags: <defaults>
</compile_context>

<pallas_src>
import jax
import jax.numpy as jnp
from jax.experimental import pallas as pl
from jax.experimental.pallas import tpu as pltpu  # noqa: F401  (TPU backend)

# ----------------------------- configuration --------------------------------
B = 4
T = 8                        # n_steps
N_T_FEATURES = 8
N_FEATURES = 16
MLP_HIDDEN = 32
MLP_OUT = 16                 # static_encoder.out_features
RNN_HIDDEN_1 = 32
NUM_LAYER = 1                # temporal_encoder.num_layer == 1 branch
OUTPUT_DIM = RNN_HIDDEN_1 + MLP_OUT              # 48
N_NODES = 5
GAT_HEADS = 2
GAT_OUT_PER_HEAD = 16
GAT_OUT = GAT_HEADS * GAT_OUT_PER_HEAD           # is_concat=True -> 32
N_CLASSES = [3, 4, 5, 6, 7, 8, 6, 7]             # classifiers use 0,1,2,6,7
HEAD_CLASSES = [N_CLASSES[i] for i in (0, 1, 2, 6, 7)]
MAXC = 8                                         # classifier slab stride
CLS_IN = OUTPUT_DIM + GAT_OUT                    # 80
LEAKY_SLOPE = 0.2
BN_EPS = 1e-5


def _sigmoid(a):
    # tanh-form logistic: robust for large |a|, lowers to the EUP.
    return 0.5 * (jnp.tanh(0.5 * a) + 1.0)


# ----------------------------- fused forward kernel --------------------------
def _fused_forward_kernel(
    # data
    x_ref, vals_ref, mask_ref, delta_ref, locf_ref, emp_ref, adj_ref,
    # static encoder
    mlp_w1_ref, mlp_b1_ref, mlp_w2_ref, mlp_b2_ref,
    # pre-attention
    attn_w_ref, attn_b_ref,
    # GRU-D (z/r fused; mask weights folded into the W rows)
    wdgx_ref, bdgx_ref, wdgh_ref, bdgh_ref,
    w_zr_ref, u_zr_ref, b_zr_ref, w_h_ref, u_h_ref, b_h_ref,
    # stacked transform + BN
    trans_w_ref, trans_b_ref, bn_g_ref, bn_b_ref,
    # GAT (heads stacked on the output axis)
    gat_w_ref, gat_asrc_ref, gat_adst_ref, gat_bias_ref,
    # classifier heads (stacked, padded to MAXC classes)
    cls_w_ref, cls_b_ref,
    # outputs
    gat_out_ref, cls_out_ref,
):
    f32 = jnp.float32
    H = RNN_HIDDEN_1

    # ---------------- static encoder: MLP 16 -> 32 -> 16 ----------------
    xs = x_ref[...]
    h1 = jnp.maximum(
        jnp.dot(xs, mlp_w1_ref[...], preferred_element_type=f32) + mlp_b1_ref[...], 0.0)
    static_out = jnp.dot(h1, mlp_w2_ref[...], preferred_element_type=f32) + mlp_b2_ref[...]

    # ---------------- GRU-D with fused pre-attention, unrolled T ----------------
    attn_w = attn_w_ref[...]
    attn_b = jnp.broadcast_to(attn_b_ref[...], (B, N_T_FEATURES))
    emp = jnp.broadcast_to(emp_ref[...], (B, N_T_FEATURES))
    wdgx = jnp.broadcast_to(wdgx_ref[...], (B, N_T_FEATURES))
    bdgx = jnp.broadcast_to(bdgx_ref[...], (B, N_T_FEATURES))
    wdgh = wdgh_ref[...]
    bdgh = jnp.broadcast_to(bdgh_ref[...], (B, H))
    w_zr = w_zr_ref[...]          # (2F, 2H): rows [W_x ; W_mask], cols [z | r]
    u_zr = u_zr_ref[...]          # (H, 2H)
    b_zr = jnp.broadcast_to(b_zr_ref[...], (B, 2 * H))
    w_h = w_h_ref[...]            # (2F, H): rows [W_x ; W_mask]
    u_h = u_h_ref[...]            # (H, H)
    b_h = jnp.broadcast_to(b_h_ref[...], (B, H))

    h = jnp.zeros((B, H), f32)
    for t in range(T):            # static unroll — T is small and fixed
        x_t = vals_ref[t]         # (B, F)   time-major refs, leading-axis index
        m_t = mask_ref[t]
        d_t = delta_ref[t]
        l_t = locf_ref[t]

        # PreSpatialAttn: feature softmax gating
        s = jnp.dot(x_t, attn_w, preferred_element_type=f32) + attn_b
        s = s - jnp.max(s, axis=-1, keepdims=True)
        es = jnp.exp(s)
        x_att = (es / jnp.sum(es, axis=-1, keepdims=True)) * x_t

        # input / hidden decay
        gx = jnp.exp(-jnp.maximum(d_t * wdgx + bdgx, 0.0))
        gh = jnp.exp(-jnp.maximum(
            jnp.dot(d_t, wdgh, preferred_element_type=f32) + bdgh, 0.0))

        # imputation
        xh = m_t * x_att + (1.0 - m_t) * (gx * l_t + (1.0 - gx) * emp)
        hdec = gh * h

        # fused z/r gates: [xh | m] @ W_zr + hdec @ U_zr
        xm = jnp.concatenate([xh, m_t], axis=1)                       # (B, 2F)
        zr = _sigmoid(jnp.dot(xm, w_zr, preferred_element_type=f32)
                      + jnp.dot(hdec, u_zr, preferred_element_type=f32) + b_zr)
        z = zr[:, :H]
        r = zr[:, H:]

        htil = jnp.tanh(jnp.dot(xm, w_h, preferred_element_type=f32)
                        + jnp.dot(r * hdec, u_h, preferred_element_type=f32) + b_h)
        h = (1.0 - z) * hdec + z * htil

    # ---------------- embedding ----------------
    emb = jnp.concatenate([static_out, h], axis=1)                    # (B, 48)

    # ------- 5x (Linear -> ReLU -> BatchNorm1d) as one lane-dense matmul -------
    y = jnp.dot(emb, trans_w_ref[...], preferred_element_type=f32) + trans_b_ref[...]
    y = jnp.maximum(y, 0.0)                                           # (B, 240)
    mu = jnp.mean(y, axis=0, keepdims=True)
    var = jnp.mean((y - mu) ** 2, axis=0, keepdims=True)
    x5 = (y - mu) * jax.lax.rsqrt(var + BN_EPS) * bn_g_ref[...] + bn_b_ref[...]

    x5_nodes = [x5[:, i * OUTPUT_DIM:(i + 1) * OUTPUT_DIM] for i in range(N_NODES)]

    # ---------------- GAT (2 heads, batched over B inside one invocation) -------
    adj = adj_ref[...]
    gat_w = gat_w_ref[...]                                            # (48, 32)
    a_src = gat_asrc_ref[...]                                         # (1, 32)
    a_dst = gat_adst_ref[...]                                         # (1, 32)
    gat_bias = jnp.broadcast_to(gat_bias_ref[...], (B, GAT_OUT))

    # one matmul per node covering BOTH heads (heads concatenated on N axis)
    hh = [jnp.dot(x5_nodes[i], gat_w, preferred_element_type=f32) for i in range(N_NODES)]

    head_outs = [[None] * N_NODES for _ in range(GAT_HEADS)]
    for hd in range(GAT_HEADS):
        lo, hi = hd * GAT_OUT_PER_HEAD, (hd + 1) * GAT_OUT_PER_HEAD
        hh_h = [hh[i][:, lo:hi] for i in range(N_NODES)]              # (B, 16) each
        a_s = a_src[:, lo:hi]
        a_d = a_dst[:, lo:hi]
        s_src = jnp.concatenate(
            [jnp.sum(hh_h[i] * a_s, axis=-1, keepdims=True) for i in range(N_NODES)],
            axis=1)                                                   # (B, 5)
        s_dst = jnp.concatenate(
            [jnp.sum(hh_h[i] * a_d, axis=-1, keepdims=True) for i in range(N_NODES)],
            axis=1)                                                   # (B, 5)
        for i in range(N_NODES):
            e = s_src[:, i:i + 1] + s_dst                             # (B, 5)
            e = jnp.where(e > 0, e, LEAKY_SLOPE * e)                  # LeakyReLU
            e = jnp.where(adj[i:i + 1, :] > 0, e, -1e9)               # adjacency mask
            e = e - jnp.max(e, axis=-1, keepdims=True)
            p = jnp.exp(e)
            alpha = p / jnp.sum(p, axis=-1, keepdims=True)            # softmax_j
            acc = alpha[:, 0:1] * hh_h[0]
            for j in range(1, N_NODES):
                acc = acc + alpha[:, j:j + 1] * hh_h[j]
            head_outs[hd][i] = acc                                    # (B, 16)

    gat_nodes = []
    for i in range(N_NODES):
        gat_nodes.append(
            jnp.concatenate([head_outs[hd][i] for hd in range(GAT_HEADS)], axis=1)
            + gat_bias)                                               # (B, 32)

    # lane-dense output slab: columns [i*32:(i+1)*32] = node i
    gat_out_ref[...] = jnp.concatenate(gat_nodes, axis=1)             # (B, 160)

    # ---------------- classifier heads (stacked, one output slab) ----------------
    cls_cols = []
    for i in range(N_NODES):
        feat = jnp.concatenate([x5_nodes[i], gat_nodes[i]], axis=1)   # (B, 80)
        logits = (jnp.dot(feat, cls_w_ref[i], preferred_element_type=f32)
                  + cls_b_ref[i])                                     # (B, 8)
        cls_cols.append(logits)
    cls_out_ref[...] = jnp.concatenate(cls_cols, axis=1)              # (B, 40)


# ----------------------------- wrapper ----------------------------------------
def forward(params, inputs, adj):
    # Time-major views for the recurrence (tiny (4,8,8) transposes, XLA-fused).
    vt = jnp.transpose(inputs["X_t"], (1, 0, 2))
    mt = jnp.transpose(inputs["X_t_mask"], (1, 0, 2))
    dt = jnp.transpose(inputs["deltaT_t"], (1, 0, 2))
    lt = jnp.transpose(inputs["X_t_filledLOCF"], (1, 0, 2))
    emp = inputs["empirical_mean"].reshape(1, N_T_FEATURES)

    gat_slab, cls_slab = pl.pallas_call(
        _fused_forward_kernel,
        out_shape=(jax.ShapeDtypeStruct((B, N_NODES * GAT_OUT), jnp.float32),
                   jax.ShapeDtypeStruct((B, N_NODES * MAXC), jnp.float32)),
    )(inputs["X"], vt, mt, dt, lt, emp, adj,
      params["mlp_w1"], params["mlp_b1"], params["mlp_w2"], params["mlp_b2"],
      params["attn_w"], params["attn_b"],
      params["grud_wdgx"], params["grud_bdgx"], params["grud_wdgh"], params["grud_bdgh"],
      params["grud_w_zr"], params["grud_u_zr"], params["grud_b_zr"],
      params["grud_w_h"], params["grud_u_h"], params["grud_b_h"],
      params["trans_w"], params["trans_b"], params["bn_gamma"], params["bn_beta"],
      params["gat_w"], params["gat_asrc"], params["gat_adst"], params["gat_bias"],
      params["cls_w"], params["cls_b"])

    gat_output = gat_slab.reshape(B, N_NODES, GAT_OUT)
    heads = [cls_slab[:, i * MAXC: i * MAXC + HEAD_CLASSES[i]] for i in range(N_NODES)]
    return heads, gat_output


# ----------------------------- deterministic parameter init ------------------
def _uniform(key, shape, fan_in):
    lim = 1.0 / (fan_in ** 0.5)
    return jax.random.uniform(key, shape, jnp.float32, -lim, lim)


def init_params(key):
    keys = iter(jax.random.split(key, 40))
    p = {}
    p["mlp_w1"] = _uniform(next(keys), (N_FEATURES, MLP_HIDDEN), N_FEATURES)
    p["mlp_b1"] = _uniform(next(keys), (1, MLP_HIDDEN), N_FEATURES)
    p["mlp_w2"] = _uniform(next(keys), (MLP_HIDDEN, MLP_OUT), MLP_HIDDEN)
    p["mlp_b2"] = _uniform(next(keys), (1, MLP_OUT), MLP_HIDDEN)
    p["attn_w"] = _uniform(next(keys), (N_T_FEATURES, N_T_FEATURES), N_T_FEATURES)
    p["attn_b"] = _uniform(next(keys), (1, N_T_FEATURES), N_T_FEATURES)

    f, h = N_T_FEATURES, RNN_HIDDEN_1
    p["grud_wdgx"] = _uniform(next(keys), (1, f), f)
    p["grud_bdgx"] = _uniform(next(keys), (1, f), f)
    p["grud_wdgh"] = _uniform(next(keys), (f, h), f)
    p["grud_bdgh"] = _uniform(next(keys), (1, h), f)
    # fused z/r gate weights: rows [W_x ; W_mask], columns [z | r]
    p["grud_w_zr"] = _uniform(next(keys), (2 * f, 2 * h), f)
    p["grud_u_zr"] = _uniform(next(keys), (h, 2 * h), h)
    p["grud_b_zr"] = _uniform(next(keys), (1, 2 * h), h)
    # h-gate: rows [W_x ; W_mask]
    p["grud_w_h"] = _uniform(next(keys), (2 * f, h), f)
    p["grud_u_h"] = _uniform(next(keys), (h, h), h)
    p["grud_b_h"] = _uniform(next(keys), (1, h), h)

    d = OUTPUT_DIM
    # 5 per-node Linear(48,48) stacked on the output axis -> lane-dense matmul
    p["trans_w"] = _uniform(next(keys), (d, N_NODES * d), d)
    p["trans_b"] = _uniform(next(keys), (1, N_NODES * d), d)
    p["bn_gamma"] = jnp.ones((1, N_NODES * d), jnp.float32)   # BatchNorm1d init
    p["bn_beta"] = jnp.zeros((1, N_NODES * d), jnp.float32)

    # GAT: both heads concatenated on the output axis
    p["gat_w"] = _uniform(next(keys), (d, GAT_OUT), d)
    p["gat_asrc"] = _uniform(next(keys), (1, GAT_OUT), GAT_OUT_PER_HEAD)
    p["gat_adst"] = _uniform(next(keys), (1, GAT_OUT), GAT_OUT_PER_HEAD)
    p["gat_bias"] = jnp.zeros((1, GAT_OUT), jnp.float32)

    # classifiers stacked, padded to MAXC classes (padded columns zeroed)
    cls_w = _uniform(next(keys), (N_NODES, CLS_IN, MAXC), CLS_IN)
    cls_b = _uniform(next(keys), (N_NODES, 1, MAXC), CLS_IN)
    col_mask = jnp.array(
        [[1.0] * nc + [0.0] * (MAXC - nc) for nc in HEAD_CLASSES], jnp.float32)
    p["cls_w"] = cls_w * col_mask[:, None, :]
    p["cls_b"] = cls_b * col_mask[:, None, :]
    return p


# ----------------------------- main -------------------------------------------
if __name__ == "__main__":
    key = jax.random.PRNGKey(0)
    k_in, k_par = jax.random.split(key)
    ks = jax.random.split(k_in, 6)
    inputs = {
        "X": jax.random.normal(ks[0], (B, N_FEATURES), jnp.float32),
        "X_t": jax.random.normal(ks[1], (B, T, N_T_FEATURES), jnp.float32),
        "X_t_mask": (jax.random.uniform(ks[2], (B, T, N_T_FEATURES)) > 0.3).astype(jnp.float32),
        "deltaT_t": jax.random.uniform(ks[3], (B, T, N_T_FEATURES), jnp.float32, 0.0, 2.0),
        "empirical_mean": 0.1 * jax.random.normal(ks[4], (N_T_FEATURES,), jnp.float32),
        "X_t_filledLOCF": jax.random.normal(ks[5], (B, T, N_T_FEATURES), jnp.float32),
    }
    adj = jnp.ones((N_NODES, N_NODES), jnp.float32)   # fully connected, self-loops
    params = init_params(k_par)

    fwd = jax.jit(forward)
    heads, gat_out = fwd(params, inputs, adj)
    jax.block_until_ready(heads)
    jax.block_until_ready(gat_out)

    assert [tuple(hd.shape) for hd in heads] == [(B, c) for c in HEAD_CLASSES]
    assert gat_out.shape == (B, N_NODES, GAT_OUT)
    assert all(bool(jnp.all(jnp.isfinite(hd))) for hd in heads)
    assert bool(jnp.all(jnp.isfinite(gat_out)))
    print("KERNEL_OK")
</pallas_src>

<mosaic_0001>
module attributes {stable_mosaic.version = 11 : i64} {
  func.func @_fused_forward_kernel(%arg0: memref<4x16xf32, #tpu.memory_space<vmem>>, %arg1: memref<8x4x8xf32, #tpu.memory_space<vmem>>, %arg2: memref<8x4x8xf32, #tpu.memory_space<vmem>>, %arg3: memref<8x4x8xf32, #tpu.memory_space<vmem>>, %arg4: memref<8x4x8xf32, #tpu.memory_space<vmem>>, %arg5: memref<1x8xf32, #tpu.memory_space<vmem>>, %arg6: memref<5x5xf32, #tpu.memory_space<vmem>>, %arg7: memref<16x32xf32, #tpu.memory_space<vmem>>, %arg8: memref<1x32xf32, #tpu.memory_space<vmem>>, %arg9: memref<32x16xf32, #tpu.memory_space<vmem>>, %arg10: memref<1x16xf32, #tpu.memory_space<vmem>>, %arg11: memref<8x8xf32, #tpu.memory_space<vmem>>, %arg12: memref<1x8xf32, #tpu.memory_space<vmem>>, %arg13: memref<1x8xf32, #tpu.memory_space<vmem>>, %arg14: memref<1x8xf32, #tpu.memory_space<vmem>>, %arg15: memref<8x32xf32, #tpu.memory_space<vmem>>, %arg16: memref<1x32xf32, #tpu.memory_space<vmem>>, %arg17: memref<16x64xf32, #tpu.memory_space<vmem>>, %arg18: memref<32x64xf32, #tpu.memory_space<vmem>>, %arg19: memref<1x64xf32, #tpu.memory_space<vmem>>, %arg20: memref<16x32xf32, #tpu.memory_space<vmem>>, %arg21: memref<32x32xf32, #tpu.memory_space<vmem>>, %arg22: memref<1x32xf32, #tpu.memory_space<vmem>>, %arg23: memref<48x240xf32, #tpu.memory_space<vmem>>, %arg24: memref<1x240xf32, #tpu.memory_space<vmem>>, %arg25: memref<1x240xf32, #tpu.memory_space<vmem>>, %arg26: memref<1x240xf32, #tpu.memory_space<vmem>>, %arg27: memref<48x32xf32, #tpu.memory_space<vmem>>, %arg28: memref<1x32xf32, #tpu.memory_space<vmem>>, %arg29: memref<1x32xf32, #tpu.memory_space<vmem>>, %arg30: memref<1x32xf32, #tpu.memory_space<vmem>>, %arg31: memref<5x80x8xf32, #tpu.memory_space<vmem>>, %arg32: memref<5x1x8xf32, #tpu.memory_space<vmem>>, %arg33: memref<4x160xf32, #tpu.memory_space<vmem>>, %arg34: memref<4x40xf32, #tpu.memory_space<vmem>>) attributes {dimension_semantics = [], scalar_prefetch = 0 : i64, scratch_operands = 0 : i64, tpu.core_type = #tpu.core_type<tc>} {
    %c0 = arith.constant 0 : index
    %c0_0 = arith.constant 0 : index
    %0 = vector.load %arg0[%c0, %c0_0] : memref<4x16xf32, #tpu.memory_space<vmem>>, vector<4x16xf32>
    %c0_1 = arith.constant 0 : index
    %c0_2 = arith.constant 0 : index
    %1 = vector.load %arg7[%c0_1, %c0_2] : memref<16x32xf32, #tpu.memory_space<vmem>>, vector<16x32xf32>
    %cst = arith.constant dense<0.000000e+00> : vector<4x32xf32>
    %2 = tpu.matmul %0, %1, %cst {dimension_numbers = #tpu.dot_dimension_numbers<[1], [0], [0], [1], [0, 0, 1, 1], [], []>} : vector<4x16xf32>, vector<16x32xf32>, vector<4x32xf32> -> vector<4x32xf32>
    %c0_3 = arith.constant 0 : index
    %c0_4 = arith.constant 0 : index
    %3 = vector.load %arg8[%c0_3, %c0_4] : memref<1x32xf32, #tpu.memory_space<vmem>>, vector<1x32xf32>
    %4 = vector.broadcast %3 : vector<1x32xf32> to vector<4x32xf32>
    %5 = arith.addf %2, %4 : vector<4x32xf32>
    %cst_5 = arith.constant 0.000000e+00 : f32
    %6 = vector.broadcast %cst_5 : f32 to vector<4x32xf32>
    %7 = arith.maximumf %5, %6 : vector<4x32xf32>
    %c0_6 = arith.constant 0 : index
    %c0_7 = arith.constant 0 : index
    %8 = vector.load %arg9[%c0_6, %c0_7] : memref<32x16xf32, #tpu.memory_space<vmem>>, vector<32x16xf32>
    %cst_8 = arith.constant dense<0.000000e+00> : vector<4x16xf32>
    %9 = tpu.matmul %7, %8, %cst_8 {dimension_numbers = #tpu.dot_dimension_numbers<[1], [0], [0], [1], [0, 0, 1, 1], [], []>} : vector<4x32xf32>, vector<32x16xf32>, vector<4x16xf32> -> vector<4x16xf32>
    %c0_9 = arith.constant 0 : index
    %c0_10 = arith.constant 0 : index
    %10 = vector.load %arg10[%c0_9, %c0_10] : memref<1x16xf32, #tpu.memory_space<vmem>>, vector<1x16xf32>
    %11 = vector.broadcast %10 : vector<1x16xf32> to vector<4x16xf32>
    %12 = arith.addf %9, %11 : vector<4x16xf32>
    %c0_11 = arith.constant 0 : index
    %c0_12 = arith.constant 0 : index
    %13 = vector.load %arg11[%c0_11, %c0_12] : memref<8x8xf32, #tpu.memory_space<vmem>>, vector<8x8xf32>
    %c0_13 = arith.constant 0 : index
    %c0_14 = arith.constant 0 : index
    %14 = vector.load %arg12[%c0_13, %c0_14] : memref<1x8xf32, #tpu.memory_space<vmem>>, vector<1x8xf32>
    %15 = vector.shape_cast %14 : vector<1x8xf32> to vector<1x8xf32>
    %16 = vector.broadcast %15 : vector<1x8xf32> to vector<4x8xf32>
    %c0_15 = arith.constant 0 : index
    %c0_16 = arith.constant 0 : index
    %17 = vector.load %arg5[%c0_15, %c0_16] : memref<1x8xf32, #tpu.memory_space<vmem>>, vector<1x8xf32>
    %18 = vector.shape_cast %17 : vector<1x8xf32> to vector<1x8xf32>
    %19 = vector.broadcast %18 : vector<1x8xf32> to vector<4x8xf32>
    %c0_17 = arith.constant 0 : index
    %c0_18 = arith.constant 0 : index
    %20 = vector.load %arg13[%c0_17, %c0_18] : memref<1x8xf32, #tpu.memory_space<vmem>>, vector<1x8xf32>
    %21 = vector.shape_cast %20 : vector<1x8xf32> to vector<1x8xf32>
    %22 = vector.broadcast %21 : vector<1x8xf32> to vector<4x8xf32>
    %c0_19 = arith.constant 0 : index
    %c0_20 = arith.constant 0 : index
    %23 = vector.load %arg14[%c0_19, %c0_20] : memref<1x8xf32, #tpu.memory_space<vmem>>, vector<1x8xf32>
    %24 = vector.shape_cast %23 : vector<1x8xf32> to vector<1x8xf32>
    %25 = vector.broadcast %24 : vector<1x8xf32> to vector<4x8xf32>
    %c0_21 = arith.constant 0 : index
    %c0_22 = arith.constant 0 : index
    %26 = vector.load %arg15[%c0_21, %c0_22] : memref<8x32xf32, #tpu.memory_space<vmem>>, vector<8x32xf32>
    %c0_23 = arith.constant 0 : index
    %c0_24 = arith.constant 0 : index
    %27 = vector.load %arg16[%c0_23, %c0_24] : memref<1x32xf32, #tpu.memory_space<vmem>>, vector<1x32xf32>
    %28 = vector.shape_cast %27 : vector<1x32xf32> to vector<1x32xf32>
    %29 = vector.broadcast %28 : vector<1x32xf32> to vector<4x32xf32>
    %c0_25 = arith.constant 0 : index
    %c0_26 = arith.constant 0 : index
    %30 = vector.load %arg17[%c0_25, %c0_26] : memref<16x64xf32, #tpu.memory_space<vmem>>, vector<16x64xf32>
    %c0_27 = arith.constant 0 : index
    %c0_28 = arith.constant 0 : index
    %31 = vector.load %arg18[%c0_27, %c0_28] : memref<32x64xf32, #tpu.memory_space<vmem>>, vector<32x64xf32>
    %c0_29 = arith.constant 0 : index
    %c0_30 = arith.constant 0 : index
    %32 = vector.load %arg19[%c0_29, %c0_30] : memref<1x64xf32, #tpu.memory_space<vmem>>, vector<1x64xf32>
    %33 = vector.shape_cast %32 : vector<1x64xf32> to vector<1x64xf32>
    %34 = vector.broadcast %33 : vector<1x64xf32> to vector<4x64xf32>
    %c0_31 = arith.constant 0 : index
    %c0_32 = arith.constant 0 : index
    %35 = vector.load %arg20[%c0_31, %c0_32] : memref<16x32xf32, #tpu.memory_space<vmem>>, vector<16x32xf32>
    %c0_33 = arith.constant 0 : index
    %c0_34 = arith.constant 0 : index
    %36 = vector.load %arg21[%c0_33, %c0_34] : memref<32x32xf32, #tpu.memory_space<vmem>>, vector<32x32xf32>
    %c0_35 = arith.constant 0 : index
    %c0_36 = arith.constant 0 : index
    %37 = vector.load %arg22[%c0_35, %c0_36] : memref<1x32xf32, #tpu.memory_space<vmem>>, vector<1x32xf32>
    %38 = vector.shape_cast %37 : vector<1x32xf32> to vector<1x32xf32>
    %39 = vector.broadcast %38 : vector<1x32xf32> to vector<4x32xf32>
    %cst_37 = arith.constant 0.000000e+00 : f32
    %40 = vector.broadcast %cst_37 : f32 to vector<4x32xf32>
    %c0_38 = arith.constant 0 : index
    %c0_39 = arith.constant 0 : index
    %c0_40 = arith.constant 0 : index
    %41 = vector.load %arg1[%c0_38, %c0_39, %c0_40] : memref<8x4x8xf32, #tpu.memory_space<vmem>>, vector<1x4x8xf32>
    %42 = vector.shape_cast %41 : vector<1x4x8xf32> to vector<4x8xf32>
    %c0_41 = arith.constant 0 : index
    %c0_42 = arith.constant 0 : index
    %c0_43 = arith.constant 0 : index
    %43 = vector.load %arg2[%c0_41, %c0_42, %c0_43] : memref<8x4x8xf32, #tpu.memory_space<vmem>>, vector<1x4x8xf32>
    %44 = vector.shape_cast %43 : vector<1x4x8xf32> to vector<4x8xf32>
    %c0_44 = arith.constant 0 : index
    %c0_45 = arith.constant 0 : index
    %c0_46 = arith.constant 0 : index
    %45 = vector.load %arg3[%c0_44, %c0_45, %c0_46] : memref<8x4x8xf32, #tpu.memory_space<vmem>>, vector<1x4x8xf32>
    %46 = vector.shape_cast %45 : vector<1x4x8xf32> to vector<4x8xf32>
    %c0_47 = arith.constant 0 : index
    %c0_48 = arith.constant 0 : index
    %c0_49 = arith.constant 0 : index
    %47 = vector.load %arg4[%c0_47, %c0_48, %c0_49] : memref<8x4x8xf32, #tpu.memory_space<vmem>>, vector<1x4x8xf32>
    %48 = vector.shape_cast %47 : vector<1x4x8xf32> to vector<4x8xf32>
    %cst_50 = arith.constant dense<0.000000e+00> : vector<4x8xf32>
    %49 = tpu.matmul %42, %13, %cst_50 {dimension_numbers = #tpu.dot_dimension_numbers<[1], [0], [0], [1], [0, 0, 1, 1], [], []>} : vector<4x8xf32>, vector<8x8xf32>, vector<4x8xf32> -> vector<4x8xf32>
    %50 = arith.addf %49, %16 : vector<4x8xf32>
    %cst_51 = arith.constant dense<0xFF800000> : vector<4xf32>
    %51 = vector.multi_reduction <maximumf>, %50, %cst_51 [1] : vector<4x8xf32> to vector<4xf32>
    %52 = vector.shape_cast %51 : vector<4xf32> to vector<4x1xf32>
    %53 = vector.broadcast %52 : vector<4x1xf32> to vector<4x8xf32>
    %54 = arith.subf %50, %53 : vector<4x8xf32>
    %55 = math.exp %54 : vector<4x8xf32>
    %cst_52 = arith.constant dense<0.000000e+00> : vector<4xf32>
    %56 = vector.multi_reduction <add>, %55, %cst_52 [1] : vector<4x8xf32> to vector<4xf32>
    %57 = vector.shape_cast %56 : vector<4xf32> to vector<4x1xf32>
    %58 = vector.broadcast %57 : vector<4x1xf32> to vector<4x8xf32>
    %59 = arith.divf %55, %58 : vector<4x8xf32>
    %60 = arith.mulf %59, %42 : vector<4x8xf32>
    %61 = arith.mulf %46, %22 : vector<4x8xf32>
    %62 = arith.addf %61, %25 : vector<4x8xf32>
    %cst_53 = arith.constant 0.000000e+00 : f32
    %63 = vector.broadcast %cst_53 : f32 to vector<4x8xf32>
    %64 = arith.maximumf %62, %63 : vector<4x8xf32>
    %cst_54 = arith.constant 0.000000e+00 : f32
    %65 = vector.broadcast %cst_54 : f32 to vector<4x8xf32>
    %66 = arith.subf %65, %64 : vector<4x8xf32>
    %67 = math.exp %66 : vector<4x8xf32>
    %cst_55 = arith.constant dense<0.000000e+00> : vector<4x32xf32>
    %68 = tpu.matmul %46, %26, %cst_55 {dimension_numbers = #tpu.dot_dimension_numbers<[1], [0], [0], [1], [0, 0, 1, 1], [], []>} : vector<4x8xf32>, vector<8x32xf32>, vector<4x32xf32> -> vector<4x32xf32>
    %69 = arith.addf %68, %29 : vector<4x32xf32>
    %cst_56 = arith.constant 0.000000e+00 : f32
    %70 = vector.broadcast %cst_56 : f32 to vector<4x32xf32>
    %71 = arith.maximumf %69, %70 : vector<4x32xf32>
    %cst_57 = arith.constant 0.000000e+00 : f32
    %72 = vector.broadcast %cst_57 : f32 to vector<4x32xf32>
    %73 = arith.subf %72, %71 : vector<4x32xf32>
    %74 = math.exp %73 : vector<4x32xf32>
    %75 = arith.mulf %44, %60 : vector<4x8xf32>
    %cst_58 = arith.constant 1.000000e+00 : f32
    %76 = vector.broadcast %cst_58 : f32 to vector<4x8xf32>
    %77 = arith.subf %76, %44 : vector<4x8xf32>
    %78 = arith.mulf %67, %48 : vector<4x8xf32>
    %cst_59 = arith.constant 1.000000e+00 : f32
    %79 = vector.broadcast %cst_59 : f32 to vector<4x8xf32>
    %80 = arith.subf %79, %67 : vector<4x8xf32>
    %81 = arith.mulf %80, %19 : vector<4x8xf32>
    %82 = arith.addf %78, %81 : vector<4x8xf32>
    %83 = arith.mulf %77, %82 : vector<4x8xf32>
    %84 = arith.addf %75, %83 : vector<4x8xf32>
    %85 = arith.mulf %74, %40 : vector<4x32xf32>
    %86 = tpu.concatenate %84, %44 in 1 : vector<4x8xf32>, vector<4x8xf32> -> vector<4x16xf32>
    %cst_60 = arith.constant dense<0.000000e+00> : vector<4x64xf32>
    %87 = tpu.matmul %86, %30, %cst_60 {dimension_numbers = #tpu.dot_dimension_numbers<[1], [0], [0], [1], [0, 0, 1, 1], [], []>} : vector<4x16xf32>, vector<16x64xf32>, vector<4x64xf32> -> vector<4x64xf32>
    %cst_61 = arith.constant dense<0.000000e+00> : vector<4x64xf32>
    %88 = tpu.matmul %85, %31, %cst_61 {dimension_numbers = #tpu.dot_dimension_numbers<[1], [0], [0], [1], [0, 0, 1, 1], [], []>} : vector<4x32xf32>, vector<32x64xf32>, vector<4x64xf32> -> vector<4x64xf32>
    %89 = arith.addf %87, %88 : vector<4x64xf32>
    %90 = arith.addf %89, %34 : vector<4x64xf32>
    %cst_62 = arith.constant 5.000000e-01 : f32
    %91 = vector.broadcast %cst_62 : f32 to vector<4x64xf32>
    %92 = arith.mulf %91, %90 : vector<4x64xf32>
    %93 = math.tanh %92 : vector<4x64xf32>
    %cst_63 = arith.constant 1.000000e+00 : f32
    %94 = vector.broadcast %cst_63 : f32 to vector<4x64xf32>
    %95 = arith.addf %93, %94 : vector<4x64xf32>
    %cst_64 = arith.constant 5.000000e-01 : f32
    %96 = vector.broadcast %cst_64 : f32 to vector<4x64xf32>
    %97 = arith.mulf %96, %95 : vector<4x64xf32>
    %98 = vector.extract_strided_slice %97 {offsets = [0, 0], sizes = [4, 32], strides = [1, 1]} : vector<4x64xf32> to vector<4x32xf32>
    %99 = vector.extract_strided_slice %97 {offsets = [0, 32], sizes = [4, 32], strides = [1, 1]} : vector<4x64xf32> to vector<4x32xf32>
    %cst_65 = arith.constant dense<0.000000e+00> : vector<4x32xf32>
    %100 = tpu.matmul %86, %35, %cst_65 {dimension_numbers = #tpu.dot_dimension_numbers<[1], [0], [0], [1], [0, 0, 1, 1], [], []>} : vector<4x16xf32>, vector<16x32xf32>, vector<4x32xf32> -> vector<4x32xf32>
    %101 = arith.mulf %99, %85 : vector<4x32xf32>
    %cst_66 = arith.constant dense<0.000000e+00> : vector<4x32xf32>
    %102 = tpu.matmul %101, %36, %cst_66 {dimension_numbers = #tpu.dot_dimension_numbers<[1], [0], [0], [1], [0, 0, 1, 1], [], []>} : vector<4x32xf32>, vector<32x32xf32>, vector<4x32xf32> -> vector<4x32xf32>
    %103 = arith.addf %100, %102 : vector<4x32xf32>
    %104 = arith.addf %103, %39 : vector<4x32xf32>
    %105 = math.tanh %104 : vector<4x32xf32>
    %cst_67 = arith.constant 1.000000e+00 : f32
    %106 = vector.broadcast %cst_67 : f32 to vector<4x32xf32>
    %107 = arith.subf %106, %98 : vector<4x32xf32>
    %108 = arith.mulf %107, %85 : vector<4x32xf32>
    %109 = arith.mulf %98, %105 : vector<4x32xf32>
    %110 = arith.addf %108, %109 : vector<4x32xf32>
    %c1 = arith.constant 1 : index
    %c0_68 = arith.constant 0 : index
    %c0_69 = arith.constant 0 : index
    %111 = vector.load %arg1[%c1, %c0_68, %c0_69] : memref<8x4x8xf32, #tpu.memory_space<vmem>>, vector<1x4x8xf32>
    %112 = vector.shape_cast %111 : vector<1x4x8xf32> to vector<4x8xf32>
    %c1_70 = arith.constant 1 : index
    %c0_71 = arith.constant 0 : index
    %c0_72 = arith.constant 0 : index
    %113 = vector.load %arg2[%c1_70, %c0_71, %c0_72] : memref<8x4x8xf32, #tpu.memory_space<vmem>>, vector<1x4x8xf32>
    %114 = vector.shape_cast %113 : vector<1x4x8xf32> to vector<4x8xf32>
    %c1_73 = arith.constant 1 : index
    %c0_74 = arith.constant 0 : index
    %c0_75 = arith.constant 0 : index
    %115 = vector.load %arg3[%c1_73, %c0_74, %c0_75] : memref<8x4x8xf32, #tpu.memory_space<vmem>>, vector<1x4x8xf32>
    %116 = vector.shape_cast %115 : vector<1x4x8xf32> to vector<4x8xf32>
    %c1_76 = arith.constant 1 : index
    %c0_77 = arith.constant 0 : index
    %c0_78 = arith.constant 0 : index
    %117 = vector.load %arg4[%c1_76, %c0_77, %c0_78] : memref<8x4x8xf32, #tpu.memory_space<vmem>>, vector<1x4x8xf32>
    %118 = vector.shape_cast %117 : vector<1x4x8xf32> to vector<4x8xf32>
    %cst_79 = arith.constant dense<0.000000e+00> : vector<4x8xf32>
    %119 = tpu.matmul %112, %13, %cst_79 {dimension_numbers = #tpu.dot_dimension_numbers<[1], [0], [0], [1], [0, 0, 1, 1], [], []>} : vector<4x8xf32>, vector<8x8xf32>, vector<4x8xf32> -> vector<4x8xf32>
    %120 = arith.addf %119, %16 : vector<4x8xf32>
    %cst_80 = arith.constant dense<0xFF800000> : vector<4xf32>
    %121 = vector.multi_reduction <maximumf>, %120, %cst_80 [1] : vector<4x8xf32> to vector<4xf32>
    %122 = vector.shape_cast %121 : vector<4xf32> to vector<4x1xf32>
    %123 = vector.broadcast %122 : vector<4x1xf32> to vector<4x8xf32>
    %124 = arith.subf %120, %123 : vector<4x8xf32>
    %125 = math.exp %124 : vector<4x8xf32>
    %cst_81 = arith.constant dense<0.000000e+00> : vector<4xf32>
    %126 = vector.multi_reduction <add>, %125, %cst_81 [1] : vector<4x8xf32> to vector<4xf32>
    %127 = vector.shape_cast %126 : vector<4xf32> to vector<4x1xf32>
    %128 = vector.broadcast %127 : vector<4x1xf32> to vector<4x8xf32>
    %129 = arith.divf %125, %128 : vector<4x8xf32>
    %130 = arith.mulf %129, %112 : vector<4x8xf32>
    %131 = arith.mulf %116, %22 : vector<4x8xf32>
    %132 = arith.addf %131, %25 : vector<4x8xf32>
    %cst_82 = arith.constant 0.000000e+00 : f32
    %133 = vector.broadcast %cst_82 : f32 to vector<4x8xf32>
    %134 = arith.maximumf %132, %133 : vector<4x8xf32>
    %cst_83 = arith.constant 0.000000e+00 : f32
    %135 = vector.broadcast %cst_83 : f32 to vector<4x8xf32>
    %136 = arith.subf %135, %134 : vector<4x8xf32>
    %137 = math.exp %136 : vector<4x8xf32>
    %cst_84 = arith.constant dense<0.000000e+00> : vector<4x32xf32>
    %138 = tpu.matmul %116, %26, %cst_84 {dimension_numbers = #tpu.dot_dimension_numbers<[1], [0], [0], [1], [0, 0, 1, 1], [], []>} : vector<4x8xf32>, vector<8x32xf32>, vector<4x32xf32> -> vector<4x32xf32>
    %139 = arith.addf %138, %29 : vector<4x32xf32>
    %cst_85 = arith.constant 0.000000e+00 : f32
    %140 = vector.broadcast %cst_85 : f32 to vector<4x32xf32>
    %141 = arith.maximumf %139, %140 : vector<4x32xf32>
    %cst_86 = arith.constant 0.000000e+00 : f32
    %142 = vector.broadcast %cst_86 : f32 to vector<4x32xf32>
    %143 = arith.subf %142, %141 : vector<4x32xf32>
    %144 = math.exp %143 : vector<4x32xf32>
    %145 = arith.mulf %114, %130 : vector<4x8xf32>
    %cst_87 = arith.constant 1.000000e+00 : f32
    %146 = vector.broadcast %cst_87 : f32 to vector<4x8xf32>
    %147 = arith.subf %146, %114 : vector<4x8xf32>
    %148 = arith.mulf %137, %118 : vector<4x8xf32>
    %cst_88 = arith.constant 1.000000e+00 : f32
    %149 = vector.broadcast %cst_88 : f32 to vector<4x8xf32>
    %150 = arith.subf %149, %137 : vector<4x8xf32>
    %151 = arith.mulf %150, %19 : vector<4x8xf32>
    %152 = arith.addf %148, %151 : vector<4x8xf32>
    %153 = arith.mulf %147, %152 : vector<4x8xf32>
    %154 = arith.addf %145, %153 : vector<4x8xf32>
    %155 = arith.mulf %144, %110 : vector<4x32xf32>
    %156 = tpu.concatenate %154, %114 in 1 : vector<4x8xf32>, vector<4x8xf32> -> vector<4x16xf32>
    %cst_89 = arith.constant dense<0.000000e+00> : vector<4x64xf32>
    %157 = tpu.matmul %156, %30, %cst_89 {dimension_numbers = #tpu.dot_dimension_numbers<[1], [0], [0], [1], [0, 0, 1, 1], [], []>} : vector<4x16xf32>, vector<16x64xf32>, vector<4x64xf32> -> vector<4x64xf32>
    %cst_90 = arith.constant dense<0.000000e+00> : vector<4x64xf32>
    %158 = tpu.matmul %155, %31, %cst_90 {dimension_numbers = #tpu.dot_dimension_numbers<[1], [0], [0], [1], [0, 0, 1, 1], [], []>} : vector<4x32xf32>, vector<32x64xf32>, vector<4x64xf32> -> vector<4x64xf32>
    %159 = arith.addf %157, %158 : vector<4x64xf32>
    %160 = arith.addf %159, %34 : vector<4x64xf32>
    %cst_91 = arith.constant 5.000000e-01 : f32
    %161 = vector.broadcast %cst_91 : f32 to vector<4x64xf32>
    %162 = arith.mulf %161, %160 : vector<4x64xf32>
    %163 = math.tanh %162 : vector<4x64xf32>
    %cst_92 = arith.constant 1.000000e+00 : f32
    %164 = vector.broadcast %cst_92 : f32 to vector<4x64xf32>
    %165 = arith.addf %163, %164 : vector<4x64xf32>
    %cst_93 = arith.constant 5.000000e-01 : f32
    %166 = vector.broadcast %cst_93 : f32 to vector<4x64xf32>
    %167 = arith.mulf %166, %165 : vector<4x64xf32>
    %168 = vector.extract_strided_slice %167 {offsets = [0, 0], sizes = [4, 32], strides = [1, 1]} : vector<4x64xf32> to vector<4x32xf32>
    %169 = vector.extract_strided_slice %167 {offsets = [0, 32], sizes = [4, 32], strides = [1, 1]} : vector<4x64xf32> to vector<4x32xf32>
    %cst_94 = arith.constant dense<0.000000e+00> : vector<4x32xf32>
    %170 = tpu.matmul %156, %35, %cst_94 {dimension_numbers = #tpu.dot_dimension_numbers<[1], [0], [0], [1], [0, 0, 1, 1], [], []>} : vector<4x16xf32>, vector<16x32xf32>, vector<4x32xf32> -> vector<4x32xf32>
    %171 = arith.mulf %169, %155 : vector<4x32xf32>
    %cst_95 = arith.constant dense<0.000000e+00> : vector<4x32xf32>
    %172 = tpu.matmul %171, %36, %cst_95 {dimension_numbers = #tpu.dot_dimension_numbers<[1], [0], [0], [1], [0, 0, 1, 1], [], []>} : vector<4x32xf32>, vector<32x32xf32>, vector<4x32xf32> -> vector<4x32xf32>
    %173 = arith.addf %170, %172 : vector<4x32xf32>
    %174 = arith.addf %173, %39 : vector<4x32xf32>
    %175 = math.tanh %174 : vector<4x32xf32>
    %cst_96 = arith.constant 1.000000e+00 : f32
    %176 = vector.broadcast %cst_96 : f32 to vector<4x32xf32>
    %177 = arith.subf %176, %168 : vector<4x32xf32>
    %178 = arith.mulf %177, %155 : vector<4x32xf32>
    %179 = arith.mulf %168, %175 : vector<4x32xf32>
    %180 = arith.addf %178, %179 : vector<4x32xf32>
    %c2 = arith.constant 2 : index
    %c0_97 = arith.constant 0 : index
    %c0_98 = arith.constant 0 : index
    %181 = vector.load %arg1[%c2, %c0_97, %c0_98] : memref<8x4x8xf32, #tpu.memory_space<vmem>>, vector<1x4x8xf32>
    %182 = vector.shape_cast %181 : vector<1x4x8xf32> to vector<4x8xf32>
    %c2_99 = arith.constant 2 : index
    %c0_100 = arith.constant 0 : index
    %c0_101 = arith.constant 0 : index
    %183 = vector.load %arg2[%c2_99, %c0_100, %c0_101] : memref<8x4x8xf32, #tpu.memory_space<vmem>>, vector<1x4x8xf32>
    %184 = vector.shape_cast %183 : vector<1x4x8xf32> to vector<4x8xf32>
    %c2_102 = arith.constant 2 : index
    %c0_103 = arith.constant 0 : index
    %c0_104 = arith.constant 0 : index
    %185 = vector.load %arg3[%c2_102, %c0_103, %c0_104] : memref<8x4x8xf32, #tpu.memory_space<vmem>>, vector<1x4x8xf32>
    %186 = vector.shape_cast %185 : vector<1x4x8xf32> to vector<4x8xf32>
    %c2_105 = arith.constant 2 : index
    %c0_106 = arith.constant 0 : index
    %c0_107 = arith.constant 0 : index
    %187 = vector.load %arg4[%c2_105, %c0_106, %c0_107] : memref<8x4x8xf32, #tpu.memory_space<vmem>>, vector<1x4x8xf32>
    %188 = vector.shape_cast %187 : vector<1x4x8xf32> to vector<4x8xf32>
    %cst_108 = arith.constant dense<0.000000e+00> : vector<4x8xf32>
    %189 = tpu.matmul %182, %13, %cst_108 {dimension_numbers = #tpu.dot_dimension_numbers<[1], [0], [0], [1], [0, 0, 1, 1], [], []>} : vector<4x8xf32>, vector<8x8xf32>, vector<4x8xf32> -> vector<4x8xf32>
    %190 = arith.addf %189, %16 : vector<4x8xf32>
    %cst_109 = arith.constant dense<0xFF800000> : vector<4xf32>
    %191 = vector.multi_reduction <maximumf>, %190, %cst_109 [1] : vector<4x8xf32> to vector<4xf32>
    %192 = vector.shape_cast %191 : vector<4xf32> to vector<4x1xf32>
    %193 = vector.broadcast %192 : vector<4x1xf32> to vector<4x8xf32>
    %194 = arith.subf %190, %193 : vector<4x8xf32>
    %195 = math.exp %194 : vector<4x8xf32>
    %cst_110 = arith.constant dense<0.000000e+00> : vector<4xf32>
    %196 = vector.multi_reduction <add>, %195, %cst_110 [1] : vector<4x8xf32> to vector<4xf32>
    %197 = vector.shape_cast %196 : vector<4xf32> to vector<4x1xf32>
    %198 = vector.broadcast %197 : vector<4x1xf32> to vector<4x8xf32>
    %199 = arith.divf %195, %198 : vector<4x8xf32>
    %200 = arith.mulf %199, %182 : vector<4x8xf32>
    %201 = arith.mulf %186, %22 : vector<4x8xf32>
    %202 = arith.addf %201, %25 : vector<4x8xf32>
    %cst_111 = arith.constant 0.000000e+00 : f32
    %203 = vector.broadcast %cst_111 : f32 to vector<4x8xf32>
    %204 = arith.maximumf %202, %203 : vector<4x8xf32>
    %cst_112 = arith.constant 0.000000e+00 : f32
    %205 = vector.broadcast %cst_112 : f32 to vector<4x8xf32>
    %206 = arith.subf %205, %204 : vector<4x8xf32>
    %207 = math.exp %206 : vector<4x8xf32>
    %cst_113 = arith.constant dense<0.000000e+00> : vector<4x32xf32>
    %208 = tpu.matmul %186, %26, %cst_113 {dimension_numbers = #tpu.dot_dimension_numbers<[1], [0], [0], [1], [0, 0, 1, 1], [], []>} : vector<4x8xf32>, vector<8x32xf32>, vector<4x32xf32> -> vector<4x32xf32>
    %209 = arith.addf %208, %29 : vector<4x32xf32>
    %cst_114 = arith.constant 0.000000e+00 : f32
    %210 = vector.broadcast %cst_114 : f32 to vector<4x32xf32>
    %211 = arith.maximumf %209, %210 : vector<4x32xf32>
    %cst_115 = arith.constant 0.000000e+00 : f32
    %212 = vector.broadcast %cst_115 : f32 to vector<4x32xf32>
    %213 = arith.subf %212, %211 : vector<4x32xf32>
    %214 = math.exp %213 : vector<4x32xf32>
    %215 = arith.mulf %184, %200 : vector<4x8xf32>
    %cst_116 = arith.constant 1.000000e+00 : f32
    %216 = vector.broadcast %cst_116 : f32 to vector<4x8xf32>
    %217 = arith.subf %216, %184 : vector<4x8xf32>
    %218 = arith.mulf %207, %188 : vector<4x8xf32>
    %cst_117 = arith.constant 1.000000e+00 : f32
    %219 = vector.broadcast %cst_117 : f32 to vector<4x8xf32>
    %220 = arith.subf %219, %207 : vector<4x8xf32>
    %221 = arith.mulf %220, %19 : vector<4x8xf32>
    %222 = arith.addf %218, %221 : vector<4x8xf32>
    %223 = arith.mulf %217, %222 : vector<4x8xf32>
    %224 = arith.addf %215, %223 : vector<4x8xf32>
    %225 = arith.mulf %214, %180 : vector<4x32xf32>
    %226 = tpu.concatenate %224, %184 in 1 : vector<4x8xf32>, vector<4x8xf32> -> vector<4x16xf32>
    %cst_118 = arith.constant dense<0.000000e+00> : vector<4x64xf32>
    %227 = tpu.matmul %226, %30, %cst_118 {dimension_numbers = #tpu.dot_dimension_numbers<[1], [0], [0], [1], [0, 0, 1, 1], [], []>} : vector<4x16xf32>, vector<16x64xf32>, vector<4x64xf32> -> vector<4x64xf32>
    %cst_119 = arith.constant dense<0.000000e+00> : vector<4x64xf32>
    %228 = tpu.matmul %225, %31, %cst_119 {dimension_numbers = #tpu.dot_dimension_numbers<[1], [0], [0], [1], [0, 0, 1, 1], [], []>} : vector<4x32xf32>, vector<32x64xf32>, vector<4x64xf32> -> vector<4x64xf32>
    %229 = arith.addf %227, %228 : vector<4x64xf32>
    %230 = arith.addf %229, %34 : vector<4x64xf32>
    %cst_120 = arith.constant 5.000000e-01 : f32
    %231 = vector.broadcast %cst_120 : f32 to vector<4x64xf32>
    %232 = arith.mulf %231, %230 : vector<4x64xf32>
    %233 = math.tanh %232 : vector<4x64xf32>
    %cst_121 = arith.constant 1.000000e+00 : f32
    %234 = vector.broadcast %cst_121 : f32 to vector<4x64xf32>
    %235 = arith.addf %233, %234 : vector<4x64xf32>
    %cst_122 = arith.constant 5.000000e-01 : f32
    %236 = vector.broadcast %cst_122 : f32 to vector<4x64xf32>
    %237 = arith.mulf %236, %235 : vector<4x64xf32>
    %238 = vector.extract_strided_slice %237 {offsets = [0, 0], sizes = [4, 32], strides = [1, 1]} : vector<4x64xf32> to vector<4x32xf32>
    %239 = vector.extract_strided_slice %237 {offsets = [0, 32], sizes = [4, 32], strides = [1, 1]} : vector<4x64xf32> to vector<4x32xf32>
    %cst_123 = arith.constant dense<0.000000e+00> : vector<4x32xf32>
    %240 = tpu.matmul %226, %35, %cst_123 {dimension_numbers = #tpu.dot_dimension_numbers<[1], [0], [0], [1], [0, 0, 1, 1], [], []>} : vector<4x16xf32>, vector<16x32xf32>, vector<4x32xf32> -> vector<4x32xf32>
    %241 = arith.mulf %239, %225 : vector<4x32xf32>
    %cst_124 = arith.constant dense<0.000000e+00> : vector<4x32xf32>
    %242 = tpu.matmul %241, %36, %cst_124 {dimension_numbers = #tpu.dot_dimension_numbers<[1], [0], [0], [1], [0, 0, 1, 1], [], []>} : vector<4x32xf32>, vector<32x32xf32>, vector<4x32xf32> -> vector<4x32xf32>
    %243 = arith.addf %240, %242 : vector<4x32xf32>
    %244 = arith.addf %243, %39 : vector<4x32xf32>
    %245 = math.tanh %244 : vector<4x32xf32>
    %cst_125 = arith.constant 1.000000e+00 : f32
    %246 = vector.broadcast %cst_125 : f32 to vector<4x32xf32>
    %247 = arith.subf %246, %238 : vector<4x32xf32>
    %248 = arith.mulf %247, %225 : vector<4x32xf32>
    %249 = arith.mulf %238, %245 : vector<4x32xf32>
    %250 = arith.addf %248, %249 : vector<4x32xf32>
    %c3 = arith.constant 3 : index
    %c0_126 = arith.constant 0 : index
    %c0_127 = arith.constant 0 : index
    %251 = vector.load %arg1[%c3, %c0_126, %c0_127] : memref<8x4x8xf32, #tpu.memory_space<vmem>>, vector<1x4x8xf32>
    %252 = vector.shape_cast %251 : vector<1x4x8xf32> to vector<4x8xf32>
    %c3_128 = arith.constant 3 : index
    %c0_129 = arith.constant 0 : index
    %c0_130 = arith.constant 0 : index
    %253 = vector.load %arg2[%c3_128, %c0_129, %c0_130] : memref<8x4x8xf32, #tpu.memory_space<vmem>>, vector<1x4x8xf32>
    %254 = vector.shape_cast %253 : vector<1x4x8xf32> to vector<4x8xf32>
    %c3_131 = arith.constant 3 : index
    %c0_132 = arith.constant 0 : index
    %c0_133 = arith.constant 0 : index
    %255 = vector.load %arg3[%c3_131, %c0_132, %c0_133] : memref<8x4x8xf32, #tpu.memory_space<vmem>>, vector<1x4x8xf32>
    %256 = vector.shape_cast %255 : vector<1x4x8xf32> to vector<4x8xf32>
    %c3_134 = arith.constant 3 : index
    %c0_135 = arith.constant 0 : index
    %c0_136 = arith.constant 0 : index
    %257 = vector.load %arg4[%c3_134, %c0_135, %c0_136] : memref<8x4x8xf32, #tpu.memory_space<vmem>>, vector<1x4x8xf32>
    %258 = vector.shape_cast %257 : vector<1x4x8xf32> to vector<4x8xf32>
    %cst_137 = arith.constant dense<0.000000e+00> : vector<4x8xf32>
    %259 = tpu.matmul %252, %13, %cst_137 {dimension_numbers = #tpu.dot_dimension_numbers<[1], [0], [0], [1], [0, 0, 1, 1], [], []>} : vector<4x8xf32>, vector<8x8xf32>, vector<4x8xf32> -> vector<4x8xf32>
    %260 = arith.addf %259, %16 : vector<4x8xf32>
    %cst_138 = arith.constant dense<0xFF800000> : vector<4xf32>
    %261 = vector.multi_reduction <maximumf>, %260, %cst_138 [1] : vector<4x8xf32> to vector<4xf32>
    %262 = vector.shape_cast %261 : vector<4xf32> to vector<4x1xf32>
    %263 = vector.broadcast %262 : vector<4x1xf32> to vector<4x8xf32>
    %264 = arith.subf %260, %263 : vector<4x8xf32>
    %265 = math.exp %264 : vector<4x8xf32>
    %cst_139 = arith.constant dense<0.000000e+00> : vector<4xf32>
    %266 = vector.multi_reduction <add>, %265, %cst_139 [1] : vector<4x8xf32> to vector<4xf32>
    %267 = vector.shape_cast %266 : vector<4xf32> to vector<4x1xf32>
    %268 = vector.broadcast %267 : vector<4x1xf32> to vector<4x8xf32>
    %269 = arith.divf %265, %268 : vector<4x8xf32>
    %270 = arith.mulf %269, %252 : vector<4x8xf32>
    %271 = arith.mulf %256, %22 : vector<4x8xf32>
    %272 = arith.addf %271, %25 : vector<4x8xf32>
    %cst_140 = arith.constant 0.000000e+00 : f32
    %273 = vector.broadcast %cst_140 : f32 to vector<4x8xf32>
    %274 = arith.maximumf %272, %273 : vector<4x8xf32>
    %cst_141 = arith.constant 0.000000e+00 : f32
    %275 = vector.broadcast %cst_141 : f32 to vector<4x8xf32>
    %276 = arith.subf %275, %274 : vector<4x8xf32>
    %277 = math.exp %276 : vector<4x8xf32>
    %cst_142 = arith.constant dense<0.000000e+00> : vector<4x32xf32>
    %278 = tpu.matmul %256, %26, %cst_142 {dimension_numbers = #tpu.dot_dimension_numbers<[1], [0], [0], [1], [0, 0, 1, 1], [], []>} : vector<4x8xf32>, vector<8x32xf32>, vector<4x32xf32> -> vector<4x32xf32>
    %279 = arith.addf %278, %29 : vector<4x32xf32>
    %cst_143 = arith.constant 0.000000e+00 : f32
    %280 = vector.broadcast %cst_143 : f32 to vector<4x32xf32>
    %281 = arith.maximumf %279, %280 : vector<4x32xf32>
    %cst_144 = arith.constant 0.000000e+00 : f32
    %282 = vector.broadcast %cst_144 : f32 to vector<4x32xf32>
    %283 = arith.subf %282, %281 : vector<4x32xf32>
    %284 = math.exp %283 : vector<4x32xf32>
    %285 = arith.mulf %254, %270 : vector<4x8xf32>
    %cst_145 = arith.constant 1.000000e+00 : f32
    %286 = vector.broadcast %cst_145 : f32 to vector<4x8xf32>
    %287 = arith.subf %286, %254 : vector<4x8xf32>
    %288 = arith.mulf %277, %258 : vector<4x8xf32>
    %cst_146 = arith.constant 1.000000e+00 : f32
    %289 = vector.broadcast %cst_146 : f32 to vector<4x8xf32>
    %290 = arith.subf %289, %277 : vector<4x8xf32>
    %291 = arith.mulf %290, %19 : vector<4x8xf32>
    %292 = arith.addf %288, %291 : vector<4x8xf32>
    %293 = arith.mulf %287, %292 : vector<4x8xf32>
    %294 = arith.addf %285, %293 : vector<4x8xf32>
    %295 = arith.mulf %284, %250 : vector<4x32xf32>
    %296 = tpu.concatenate %294, %254 in 1 : vector<4x8xf32>, vector<4x8xf32> -> vector<4x16xf32>
    %cst_147 = arith.constant dense<0.000000e+00> : vector<4x64xf32>
    %297 = tpu.matmul %296, %30, %cst_147 {dimension_numbers = #tpu.dot_dimension_numbers<[1], [0], [0], [1], [0, 0, 1, 1], [], []>} : vector<4x16xf32>, vector<16x64xf32>, vector<4x64xf32> -> vector<4x64xf32>
    %cst_148 = arith.constant dense<0.000000e+00> : vector<4x64xf32>
    %298 = tpu.matmul %295, %31, %cst_148 {dimension_numbers = #tpu.dot_dimension_numbers<[1], [0], [0], [1], [0, 0, 1, 1], [], []>} : vector<4x32xf32>, vector<32x64xf32>, vector<4x64xf32> -> vector<4x64xf32>
    %299 = arith.addf %297, %298 : vector<4x64xf32>
    %300 = arith.addf %299, %34 : vector<4x64xf32>
    %cst_149 = arith.constant 5.000000e-01 : f32
    %301 = vector.broadcast %cst_149 : f32 to vector<4x64xf32>
    %302 = arith.mulf %301, %300 : vector<4x64xf32>
    %303 = math.tanh %302 : vector<4x64xf32>
    %cst_150 = arith.constant 1.000000e+00 : f32
    %304 = vector.broadcast %cst_150 : f32 to vector<4x64xf32>
    %305 = arith.addf %303, %304 : vector<4x64xf32>
    %cst_151 = arith.constant 5.000000e-01 : f32
    %306 = vector.broadcast %cst_151 : f32 to vector<4x64xf32>
    %307 = arith.mulf %306, %305 : vector<4x64xf32>
    %308 = vector.extract_strided_slice %307 {offsets = [0, 0], sizes = [4, 32], strides = [1, 1]} : vector<4x64xf32> to vector<4x32xf32>
    %309 = vector.extract_strided_slice %307 {offsets = [0, 32], sizes = [4, 32], strides = [1, 1]} : vector<4x64xf32> to vector<4x32xf32>
    %cst_152 = arith.constant dense<0.000000e+00> : vector<4x32xf32>
    %310 = tpu.matmul %296, %35, %cst_152 {dimension_numbers = #tpu.dot_dimension_numbers<[1], [0], [0], [1], [0, 0, 1, 1], [], []>} : vector<4x16xf32>, vector<16x32xf32>, vector<4x32xf32> -> vector<4x32xf32>
    %311 = arith.mulf %309, %295 : vector<4x32xf32>
    %cst_153 = arith.constant dense<0.000000e+00> : vector<4x32xf32>
    %312 = tpu.matmul %311, %36, %cst_153 {dimension_numbers = #tpu.dot_dimension_numbers<[1], [0], [0], [1], [0, 0, 1, 1], [], []>} : vector<4x32xf32>, vector<32x32xf32>, vector<4x32xf32> -> vector<4x32xf32>
    %313 = arith.addf %310, %312 : vector<4x32xf32>
    %314 = arith.addf %313, %39 : vector<4x32xf32>
    %315 = math.tanh %314 : vector<4x32xf32>
    %cst_154 = arith.constant 1.000000e+00 : f32
    %316 = vector.broadcast %cst_154 : f32 to vector<4x32xf32>
    %317 = arith.subf %316, %308 : vector<4x32xf32>
    %318 = arith.mulf %317, %295 : vector<4x32xf32>
    %319 = arith.mulf %308, %315 : vector<4x32xf32>
    %320 = arith.addf %318, %319 : vector<4x32xf32>
    %c4 = arith.constant 4 : index
    %c0_155 = arith.constant 0 : index
    %c0_156 = arith.constant 0 : index
    %321 = vector.load %arg1[%c4, %c0_155, %c0_156] : memref<8x4x8xf32, #tpu.memory_space<vmem>>, vector<1x4x8xf32>
    %322 = vector.shape_cast %321 : vector<1x4x8xf32> to vector<4x8xf32>
    %c4_157 = arith.constant 4 : index
    %c0_158 = arith.constant 0 : index
    %c0_159 = arith.constant 0 : index
    %323 = vector.load %arg2[%c4_157, %c0_158, %c0_159] : memref<8x4x8xf32, #tpu.memory_space<vmem>>, vector<1x4x8xf32>
    %324 = vector.shape_cast %323 : vector<1x4x8xf32> to vector<4x8xf32>
    %c4_160 = arith.constant 4 : index
    %c0_161 = arith.constant 0 : index
    %c0_162 = arith.constant 0 : index
    %325 = vector.load %arg3[%c4_160, %c0_161, %c0_162] : memref<8x4x8xf32, #tpu.memory_space<vmem>>, vector<1x4x8xf32>
    %326 = vector.shape_cast %325 : vector<1x4x8xf32> to vector<4x8xf32>
    %c4_163 = arith.constant 4 : index
    %c0_164 = arith.constant 0 : index
    %c0_165 = arith.constant 0 : index
    %327 = vector.load %arg4[%c4_163, %c0_164, %c0_165] : memref<8x4x8xf32, #tpu.memory_space<vmem>>, vector<1x4x8xf32>
    %328 = vector.shape_cast %327 : vector<1x4x8xf32> to vector<4x8xf32>
    %cst_166 = arith.constant dense<0.000000e+00> : vector<4x8xf32>
    %329 = tpu.matmul %322, %13, %cst_166 {dimension_numbers = #tpu.dot_dimension_numbers<[1], [0], [0], [1], [0, 0, 1, 1], [], []>} : vector<4x8xf32>, vector<8x8xf32>, vector<4x8xf32> -> vector<4x8xf32>
    %330 = arith.addf %329, %16 : vector<4x8xf32>
    %cst_167 = arith.constant dense<0xFF800000> : vector<4xf32>
    %331 = vector.multi_reduction <maximumf>, %330, %cst_167 [1] : vector<4x8xf32> to vector<4xf32>
    %332 = vector.shape_cast %331 : vector<4xf32> to vector<4x1xf32>
    %333 = vector.broadcast %332 : vector<4x1xf32> to vector<4x8xf32>
    %334 = arith.subf %330, %333 : vector<4x8xf32>
    %335 = math.exp %334 : vector<4x8xf32>
    %cst_168 = arith.constant dense<0.000000e+00> : vector<4xf32>
    %336 = vector.multi_reduction <add>, %335, %cst_168 [1] : vector<4x8xf32> to vector<4xf32>
    %337 = vector.shape_cast %336 : vector<4xf32> to vector<4x1xf32>
    %338 = vector.broadcast %337 : vector<4x1xf32> to vector<4x8xf32>
    %339 = arith.divf %335, %338 : vector<4x8xf32>
    %340 = arith.mulf %339, %322 : vector<4x8xf32>
    %341 = arith.mulf %326, %22 : vector<4x8xf32>
    %342 = arith.addf %341, %25 : vector<4x8xf32>
    %cst_169 = arith.constant 0.000000e+00 : f32
    %343 = vector.broadcast %cst_169 : f32 to vector<4x8xf32>
    %344 = arith.maximumf %342, %343 : vector<4x8xf32>
    %cst_170 = arith.constant 0.000000e+00 : f32
    %345 = vector.broadcast %cst_170 : f32 to vector<4x8xf32>
    %346 = arith.subf %345, %344 : vector<4x8xf32>
    %347 = math.exp %346 : vector<4x8xf32>
    %cst_171 = arith.constant dense<0.000000e+00> : vector<4x32xf32>
    %348 = tpu.matmul %326, %26, %cst_171 {dimension_numbers = #tpu.dot_dimension_numbers<[1], [0], [0], [1], [0, 0, 1, 1], [], []>} : vector<4x8xf32>, vector<8x32xf32>, vector<4x32xf32> -> vector<4x32xf32>
    %349 = arith.addf %348, %29 : vector<4x32xf32>
    %cst_172 = arith.constant 0.000000e+00 : f32
    %350 = vector.broadcast %cst_172 : f32 to vector<4x32xf32>
    %351 = arith.maximumf %349, %350 : vector<4x32xf32>
    %cst_173 = arith.constant 0.000000e+00 : f32
    %352 = vector.broadcast %cst_173 : f32 to vector<4x32xf32>
    %353 = arith.subf %352, %351 : vector<4x32xf32>
    %354 = math.exp %353 : vector<4x32xf32>
    %355 = arith.mulf %324, %340 : vector<4x8xf32>
    %cst_174 = arith.constant 1.000000e+00 : f32
    %356 = vector.broadcast %cst_174 : f32 to vector<4x8xf32>
    %357 = arith.subf %356, %324 : vector<4x8xf32>
    %358 = arith.mulf %347, %328 : vector<4x8xf32>
    %cst_175 = arith.constant 1.000000e+00 : f32
    %359 = vector.broadcast %cst_175 : f32 to vector<4x8xf32>
    %360 = arith.subf %359, %347 : vector<4x8xf32>
    %361 = arith.mulf %360, %19 : vector<4x8xf32>
    %362 = arith.addf %358, %361 : vector<4x8xf32>
    %363 = arith.mulf %357, %362 : vector<4x8xf32>
    %364 = arith.addf %355, %363 : vector<4x8xf32>
    %365 = arith.mulf %354, %320 : vector<4x32xf32>
    %366 = tpu.concatenate %364, %324 in 1 : vector<4x8xf32>, vector<4x8xf32> -> vector<4x16xf32>
    %cst_176 = arith.constant dense<0.000000e+00> : vector<4x64xf32>
    %367 = tpu.matmul %366, %30, %cst_176 {dimension_numbers = #tpu.dot_dimension_numbers<[1], [0], [0], [1], [0, 0, 1, 1], [], []>} : vector<4x16xf32>, vector<16x64xf32>, vector<4x64xf32> -> vector<4x64xf32>
    %cst_177 = arith.constant dense<0.000000e+00> : vector<4x64xf32>
    %368 = tpu.matmul %365, %31, %cst_177 {dimension_numbers = #tpu.dot_dimension_numbers<[1], [0], [0], [1], [0, 0, 1, 1], [], []>} : vector<4x32xf32>, vector<32x64xf32>, vector<4x64xf32> -> vector<4x64xf32>
    %369 = arith.addf %367, %368 : vector<4x64xf32>
    %370 = arith.addf %369, %34 : vector<4x64xf32>
    %cst_178 = arith.constant 5.000000e-01 : f32
    %371 = vector.broadcast %cst_178 : f32 to vector<4x64xf32>
    %372 = arith.mulf %371, %370 : vector<4x64xf32>
    %373 = math.tanh %372 : vector<4x64xf32>
    %cst_179 = arith.constant 1.000000e+00 : f32
    %374 = vector.broadcast %cst_179 : f32 to vector<4x64xf32>
    %375 = arith.addf %373, %374 : vector<4x64xf32>
    %cst_180 = arith.constant 5.000000e-01 : f32
    %376 = vector.broadcast %cst_180 : f32 to vector<4x64xf32>
    %377 = arith.mulf %376, %375 : vector<4x64xf32>
    %378 = vector.extract_strided_slice %377 {offsets = [0, 0], sizes = [4, 32], strides = [1, 1]} : vector<4x64xf32> to vector<4x32xf32>
    %379 = vector.extract_strided_slice %377 {offsets = [0, 32], sizes = [4, 32], strides = [1, 1]} : vector<4x64xf32> to vector<4x32xf32>
    %cst_181 = arith.constant dense<0.000000e+00> : vector<4x32xf32>
    %380 = tpu.matmul %366, %35, %cst_181 {dimension_numbers = #tpu.dot_dimension_numbers<[1], [0], [0], [1], [0, 0, 1, 1], [], []>} : vector<4x16xf32>, vector<16x32xf32>, vector<4x32xf32> -> vector<4x32xf32>
    %381 = arith.mulf %379, %365 : vector<4x32xf32>
    %cst_182 = arith.constant dense<0.000000e+00> : vector<4x32xf32>
    %382 = tpu.matmul %381, %36, %cst_182 {dimension_numbers = #tpu.dot_dimension_numbers<[1], [0], [0], [1], [0, 0, 1, 1], [], []>} : vector<4x32xf32>, vector<32x32xf32>, vector<4x32xf32> -> vector<4x32xf32>
    %383 = arith.addf %380, %382 : vector<4x32xf32>
    %384 = arith.addf %383, %39 : vector<4x32xf32>
    %385 = math.tanh %384 : vector<4x32xf32>
    %cst_183 = arith.constant 1.000000e+00 : f32
    %386 = vector.broadcast %cst_183 : f32 to vector<4x32xf32>
    %387 = arith.subf %386, %378 : vector<4x32xf32>
    %388 = arith.mulf %387, %365 : vector<4x32xf32>
    %389 = arith.mulf %378, %385 : vector<4x32xf32>
    %390 = arith.addf %388, %389 : vector<4x32xf32>
    %c5 = arith.constant 5 : index
    %c0_184 = arith.constant 0 : index
    %c0_185 = arith.constant 0 : index
    %391 = vector.load %arg1[%c5, %c0_184, %c0_185] : memref<8x4x8xf32, #tpu.memory_space<vmem>>, vector<1x4x8xf32>
    %392 = vector.shape_cast %391 : vector<1x4x8xf32> to vector<4x8xf32>
    %c5_186 = arith.constant 5 : index
    %c0_187 = arith.constant 0 : index
    %c0_188 = arith.constant 0 : index
    %393 = vector.load %arg2[%c5_186, %c0_187, %c0_188] : memref<8x4x8xf32, #tpu.memory_space<vmem>>, vector<1x4x8xf32>
    %394 = vector.shape_cast %393 : vector<1x4x8xf32> to vector<4x8xf32>
    %c5_189 = arith.constant 5 : index
    %c0_190 = arith.constant 0 : index
    %c0_191 = arith.constant 0 : index
    %395 = vector.load %arg3[%c5_189, %c0_190, %c0_191] : memref<8x4x8xf32, #tpu.memory_space<vmem>>, vector<1x4x8xf32>
    %396 = vector.shape_cast %395 : vector<1x4x8xf32> to vector<4x8xf32>
    %c5_192 = arith.constant 5 : index
    %c0_193 = arith.constant 0 : index
    %c0_194 = arith.constant 0 : index
    %397 = vector.load %arg4[%c5_192, %c0_193, %c0_194] : memref<8x4x8xf32, #tpu.memory_space<vmem>>, vector<1x4x8xf32>
    %398 = vector.shape_cast %397 : vector<1x4x8xf32> to vector<4x8xf32>
    %cst_195 = arith.constant dense<0.000000e+00> : vector<4x8xf32>
    %399 = tpu.matmul %392, %13, %cst_195 {dimension_numbers = #tpu.dot_dimension_numbers<[1], [0], [0], [1], [0, 0, 1, 1], [], []>} : vector<4x8xf32>, vector<8x8xf32>, vector<4x8xf32> -> vector<4x8xf32>
    %400 = arith.addf %399, %16 : vector<4x8xf32>
    %cst_196 = arith.constant dense<0xFF800000> : vector<4xf32>
    %401 = vector.multi_reduction <maximumf>, %400, %cst_196 [1] : vector<4x8xf32> to vector<4xf32>
    %402 = vector.shape_cast %401 : vector<4xf32> to vector<4x1xf32>
    %403 = vector.broadcast %402 : vector<4x1xf32> to vector<4x8xf32>
    %404 = arith.subf %400, %403 : vector<4x8xf32>
    %405 = math.exp %404 : vector<4x8xf32>
    %cst_197 = arith.constant dense<0.000000e+00> : vector<4xf32>
    %406 = vector.multi_reduction <add>, %405, %cst_197 [1] : vector<4x8xf32> to vector<4xf32>
    %407 = vector.shape_cast %406 : vector<4xf32> to vector<4x1xf32>
    %408 = vector.broadcast %407 : vector<4x1xf32> to vector<4x8xf32>
    %409 = arith.divf %405, %408 : vector<4x8xf32>
    %410 = arith.mulf %409, %392 : vector<4x8xf32>
    %411 = arith.mulf %396, %22 : vector<4x8xf32>
    %412 = arith.addf %411, %25 : vector<4x8xf32>
    %cst_198 = arith.constant 0.000000e+00 : f32
    %413 = vector.broadcast %cst_198 : f32 to vector<4x8xf32>
    %414 = arith.maximumf %412, %413 : vector<4x8xf32>
    %cst_199 = arith.constant 0.000000e+00 : f32
    %415 = vector.broadcast %cst_199 : f32 to vector<4x8xf32>
    %416 = arith.subf %415, %414 : vector<4x8xf32>
    %417 = math.exp %416 : vector<4x8xf32>
    %cst_200 = arith.constant dense<0.000000e+00> : vector<4x32xf32>
    %418 = tpu.matmul %396, %26, %cst_200 {dimension_numbers = #tpu.dot_dimension_numbers<[1], [0], [0], [1], [0, 0, 1, 1], [], []>} : vector<4x8xf32>, vector<8x32xf32>, vector<4x32xf32> -> vector<4x32xf32>
    %419 = arith.addf %418, %29 : vector<4x32xf32>
    %cst_201 = arith.constant 0.000000e+00 : f32
    %420 = vector.broadcast %cst_201 : f32 to vector<4x32xf32>
    %421 = arith.maximumf %419, %420 : vector<4x32xf32>
    %cst_202 = arith.constant 0.000000e+00 : f32
    %422 = vector.broadcast %cst_202 : f32 to vector<4x32xf32>
    %423 = arith.subf %422, %421 : vector<4x32xf32>
    %424 = math.exp %423 : vector<4x32xf32>
    %425 = arith.mulf %394, %410 : vector<4x8xf32>
    %cst_203 = arith.constant 1.000000e+00 : f32
    %426 = vector.broadcast %cst_203 : f32 to vector<4x8xf32>
    %427 = arith.subf %426, %394 : vector<4x8xf32>
    %428 = arith.mulf %417, %398 : vector<4x8xf32>
    %cst_204 = arith.constant 1.000000e+00 : f32
    %429 = vector.broadcast %cst_204 : f32 to vector<4x8xf32>
    %430 = arith.subf %429, %417 : vector<4x8xf32>
    %431 = arith.mulf %430, %19 : vector<4x8xf32>
    %432 = arith.addf %428, %431 : vector<4x8xf32>
    %433 = arith.mulf %427, %432 : vector<4x8xf32>
    %434 = arith.addf %425, %433 : vector<4x8xf32>
    %435 = arith.mulf %424, %390 : vector<4x32xf32>
    %436 = tpu.concatenate %434, %394 in 1 : vector<4x8xf32>, vector<4x8xf32> -> vector<4x16xf32>
    %cst_205 = arith.constant dense<0.000000e+00> : vector<4x64xf32>
    %437 = tpu.matmul %436, %30, %cst_205 {dimension_numbers = #tpu.dot_dimension_numbers<[1], [0], [0], [1], [0, 0, 1, 1], [], []>} : vector<4x16xf32>, vector<16x64xf32>, vector<4x64xf32> -> vector<4x64xf32>
    %cst_206 = arith.constant dense<0.000000e+00> : vector<4x64xf32>
    %438 = tpu.matmul %435, %31, %cst_206 {dimension_numbers = #tpu.dot_dimension_numbers<[1], [0], [0], [1], [0, 0, 1, 1], [], []>} : vector<4x32xf32>, vector<32x64xf32>, vector<4x64xf32> -> vector<4x64xf32>
    %439 = arith.addf %437, %438 : vector<4x64xf32>
    %440 = arith.addf %439, %34 : vector<4x64xf32>
    %cst_207 = arith.constant 5.000000e-01 : f32
    %441 = vector.broadcast %cst_207 : f32 to vector<4x64xf32>
    %442 = arith.mulf %441, %440 : vector<4x64xf32>
    %443 = math.tanh %442 : vector<4x64xf32>
    %cst_208 = arith.constant 1.000000e+00 : f32
    %444 = vector.broadcast %cst_208 : f32 to vector<4x64xf32>
    %445 = arith.addf %443, %444 : vector<4x64xf32>
    %cst_209 = arith.constant 5.000000e-01 : f32
    %446 = vector.broadcast %cst_209 : f32 to vector<4x64xf32>
    %447 = arith.mulf %446, %445 : vector<4x64xf32>
    %448 = vector.extract_strided_slice %447 {offsets = [0, 0], sizes = [4, 32], strides = [1, 1]} : vector<4x64xf32> to vector<4x32xf32>
    %449 = vector.extract_strided_slice %447 {offsets = [0, 32], sizes = [4, 32], strides = [1, 1]} : vector<4x64xf32> to vector<4x32xf32>
    %cst_210 = arith.constant dense<0.000000e+00> : vector<4x32xf32>
    %450 = tpu.matmul %436, %35, %cst_210 {dimension_numbers = #tpu.dot_dimension_numbers<[1], [0], [0], [1], [0, 0, 1, 1], [], []>} : vector<4x16xf32>, vector<16x32xf32>, vector<4x32xf32> -> vector<4x32xf32>
    %451 = arith.mulf %449, %435 : vector<4x32xf32>
    %cst_211 = arith.constant dense<0.000000e+00> : vector<4x32xf32>
    %452 = tpu.matmul %451, %36, %cst_211 {dimension_numbers = #tpu.dot_dimension_numbers<[1], [0], [0], [1], [0, 0, 1, 1], [], []>} : vector<4x32xf32>, vector<32x32xf32>, vector<4x32xf32> -> vector<4x32xf32>
    %453 = arith.addf %450, %452 : vector<4x32xf32>
    %454 = arith.addf %453, %39 : vector<4x32xf32>
    %455 = math.tanh %454 : vector<4x32xf32>
    %cst_212 = arith.constant 1.000000e+00 : f32
    %456 = vector.broadcast %cst_212 : f32 to vector<4x32xf32>
    %457 = arith.subf %456, %448 : vector<4x32xf32>
    %458 = arith.mulf %457, %435 : vector<4x32xf32>
    %459 = arith.mulf %448, %455 : vector<4x32xf32>
    %460 = arith.addf %458, %459 : vector<4x32xf32>
    %c6 = arith.constant 6 : index
    %c0_213 = arith.constant 0 : index
    %c0_214 = arith.constant 0 : index
    %461 = vector.load %arg1[%c6, %c0_213, %c0_214] : memref<8x4x8xf32, #tpu.memory_space<vmem>>, vector<1x4x8xf32>
    %462 = vector.shape_cast %461 : vector<1x4x8xf32> to vector<4x8xf32>
    %c6_215 = arith.constant 6 : index
    %c0_216 = arith.constant 0 : index
    %c0_217 = arith.constant 0 : index
    %463 = vector.load %arg2[%c6_215, %c0_216, %c0_217] : memref<8x4x8xf32, #tpu.memory_space<vmem>>, vector<1x4x8xf32>
    %464 = vector.shape_cast %463 : vector<1x4x8xf32> to vector<4x8xf32>
    %c6_218 = arith.constant 6 : index
    %c0_219 = arith.constant 0 : index
    %c0_220 = arith.constant 0 : index
    %465 = vector.load %arg3[%c6_218, %c0_219, %c0_220] : memref<8x4x8xf32, #tpu.memory_space<vmem>>, vector<1x4x8xf32>
    %466 = vector.shape_cast %465 : vector<1x4x8xf32> to vector<4x8xf32>
    %c6_221 = arith.constant 6 : index
    %c0_222 = arith.constant 0 : index
    %c0_223 = arith.constant 0 : index
    %467 = vector.load %arg4[%c6_221, %c0_222, %c0_223] : memref<8x4x8xf32, #tpu.memory_space<vmem>>, vector<1x4x8xf32>
    %468 = vector.shape_cast %467 : vector<1x4x8xf32> to vector<4x8xf32>
    %cst_224 = arith.constant dense<0.000000e+00> : vector<4x8xf32>
    %469 = tpu.matmul %462, %13, %cst_224 {dimension_numbers = #tpu.dot_dimension_numbers<[1], [0], [0], [1], [0, 0, 1, 1], [], []>} : vector<4x8xf32>, vector<8x8xf32>, vector<4x8xf32> -> vector<4x8xf32>
    %470 = arith.addf %469, %16 : vector<4x8xf32>
    %cst_225 = arith.constant dense<0xFF800000> : vector<4xf32>
    %471 = vector.multi_reduction <maximumf>, %470, %cst_225 [1] : vector<4x8xf32> to vector<4xf32>
    %472 = vector.shape_cast %471 : vector<4xf32> to vector<4x1xf32>
    %473 = vector.broadcast %472 : vector<4x1xf32> to vector<4x8xf32>
    %474 = arith.subf %470, %473 : vector<4x8xf32>
    %475 = math.exp %474 : vector<4x8xf32>
    %cst_226 = arith.constant dense<0.000000e+00> : vector<4xf32>
    %476 = vector.multi_reduction <add>, %475, %cst_226 [1] : vector<4x8xf32> to vector<4xf32>
    %477 = vector.shape_cast %476 : vector<4xf32> to vector<4x1xf32>
    %478 = vector.broadcast %477 : vector<4x1xf32> to vector<4x8xf32>
    %479 = arith.divf %475, %478 : vector<4x8xf32>
    %480 = arith.mulf %479, %462 : vector<4x8xf32>
    %481 = arith.mulf %466, %22 : vector<4x8xf32>
    %482 = arith.addf %481, %25 : vector<4x8xf32>
    %cst_227 = arith.constant 0.000000e+00 : f32
    %483 = vector.broadcast %cst_227 : f32 to vector<4x8xf32>
    %484 = arith.maximumf %482, %483 : vector<4x8xf32>
    %cst_228 = arith.constant 0.000000e+00 : f32
    %485 = vector.broadcast %cst_228 : f32 to vector<4x8xf32>
    %486 = arith.subf %485, %484 : vector<4x8xf32>
    %487 = math.exp %486 : vector<4x8xf32>
    %cst_229 = arith.constant dense<0.000000e+00> : vector<4x32xf32>
    %488 = tpu.matmul %466, %26, %cst_229 {dimension_numbers = #tpu.dot_dimension_numbers<[1], [0], [0], [1], [0, 0, 1, 1], [], []>} : vector<4x8xf32>, vector<8x32xf32>, vector<4x32xf32> -> vector<4x32xf32>
    %489 = arith.addf %488, %29 : vector<4x32xf32>
    %cst_230 = arith.constant 0.000000e+00 : f32
    %490 = vector.broadcast %cst_230 : f32 to vector<4x32xf32>
    %491 = arith.maximumf %489, %490 : vector<4x32xf32>
    %cst_231 = arith.constant 0.000000e+00 : f32
    %492 = vector.broadcast %cst_231 : f32 to vector<4x32xf32>
    %493 = arith.subf %492, %491 : vector<4x32xf32>
    %494 = math.exp %493 : vector<4x32xf32>
    %495 = arith.mulf %464, %480 : vector<4x8xf32>
    %cst_232 = arith.constant 1.000000e+00 : f32
    %496 = vector.broadcast %cst_232 : f32 to vector<4x8xf32>
    %497 = arith.subf %496, %464 : vector<4x8xf32>
    %498 = arith.mulf %487, %468 : vector<4x8xf32>
    %cst_233 = arith.constant 1.000000e+00 : f32
    %499 = vector.broadcast %cst_233 : f32 to vector<4x8xf32>
    %500 = arith.subf %499, %487 : vector<4x8xf32>
    %501 = arith.mulf %500, %19 : vector<4x8xf32>
    %502 = arith.addf %498, %501 : vector<4x8xf32>
    %503 = arith.mulf %497, %502 : vector<4x8xf32>
    %504 = arith.addf %495, %503 : vector<4x8xf32>
    %505 = arith.mulf %494, %460 : vector<4x32xf32>
    %506 = tpu.concatenate %504, %464 in 1 : vector<4x8xf32>, vector<4x8xf32> -> vector<4x16xf32>
    %cst_234 = arith.constant dense<0.000000e+00> : vector<4x64xf32>
    %507 = tpu.matmul %506, %30, %cst_234 {dimension_numbers = #tpu.dot_dimension_numbers<[1], [0], [0], [1], [0, 0, 1, 1], [], []>} : vector<4x16xf32>, vector<16x64xf32>, vector<4x64xf32> -> vector<4x64xf32>
    %cst_235 = arith.constant dense<0.000000e+00> : vector<4x64xf32>
    %508 = tpu.matmul %505, %31, %cst_235 {dimension_numbers = #tpu.dot_dimension_numbers<[1], [0], [0], [1], [0, 0, 1, 1], [], []>} : vector<4x32xf32>, vector<32x64xf32>, vector<4x64xf32> -> vector<4x64xf32>
    %509 = arith.addf %507, %508 : vector<4x64xf32>
    %510 = arith.addf %509, %34 : vector<4x64xf32>
    %cst_236 = arith.constant 5.000000e-01 : f32
    %511 = vector.broadcast %cst_236 : f32 to vector<4x64xf32>
    %512 = arith.mulf %511, %510 : vector<4x64xf32>
    %513 = math.tanh %512 : vector<4x64xf32>
    %cst_237 = arith.constant 1.000000e+00 : f32
    %514 = vector.broadcast %cst_237 : f32 to vector<4x64xf32>
    %515 = arith.addf %513, %514 : vector<4x64xf32>
    %cst_238 = arith.constant 5.000000e-01 : f32
    %516 = vector.broadcast %cst_238 : f32 to vector<4x64xf32>
    %517 = arith.mulf %516, %515 : vector<4x64xf32>
    %518 = vector.extract_strided_slice %517 {offsets = [0, 0], sizes = [4, 32], strides = [1, 1]} : vector<4x64xf32> to vector<4x32xf32>
    %519 = vector.extract_strided_slice %517 {offsets = [0, 32], sizes = [4, 32], strides = [1, 1]} : vector<4x64xf32> to vector<4x32xf32>
    %cst_239 = arith.constant dense<0.000000e+00> : vector<4x32xf32>
    %520 = tpu.matmul %506, %35, %cst_239 {dimension_numbers = #tpu.dot_dimension_numbers<[1], [0], [0], [1], [0, 0, 1, 1], [], []>} : vector<4x16xf32>, vector<16x32xf32>, vector<4x32xf32> -> vector<4x32xf32>
    %521 = arith.mulf %519, %505 : vector<4x32xf32>
    %cst_240 = arith.constant dense<0.000000e+00> : vector<4x32xf32>
    %522 = tpu.matmul %521, %36, %cst_240 {dimension_numbers = #tpu.dot_dimension_numbers<[1], [0], [0], [1], [0, 0, 1, 1], [], []>} : vector<4x32xf32>, vector<32x32xf32>, vector<4x32xf32> -> vector<4x32xf32>
    %523 = arith.addf %520, %522 : vector<4x32xf32>
    %524 = arith.addf %523, %39 : vector<4x32xf32>
    %525 = math.tanh %524 : vector<4x32xf32>
    %cst_241 = arith.constant 1.000000e+00 : f32
    %526 = vector.broadcast %cst_241 : f32 to vector<4x32xf32>
    %527 = arith.subf %526, %518 : vector<4x32xf32>
    %528 = arith.mulf %527, %505 : vector<4x32xf32>
    %529 = arith.mulf %518, %525 : vector<4x32xf32>
    %530 = arith.addf %528, %529 : vector<4x32xf32>
    %c7 = arith.constant 7 : index
    %c0_242 = arith.constant 0 : index
    %c0_243 = arith.constant 0 : index
    %531 = vector.load %arg1[%c7, %c0_242, %c0_243] : memref<8x4x8xf32, #tpu.memory_space<vmem>>, vector<1x4x8xf32>
    %532 = vector.shape_cast %531 : vector<1x4x8xf32> to vector<4x8xf32>
    %c7_244 = arith.constant 7 : index
    %c0_245 = arith.constant 0 : index
    %c0_246 = arith.constant 0 : index
    %533 = vector.load %arg2[%c7_244, %c0_245, %c0_246] : memref<8x4x8xf32, #tpu.memory_space<vmem>>, vector<1x4x8xf32>
    %534 = vector.shape_cast %533 : vector<1x4x8xf32> to vector<4x8xf32>
    %c7_247 = arith.constant 7 : index
    %c0_248 = arith.constant 0 : index
    %c0_249 = arith.constant 0 : index
    %535 = vector.load %arg3[%c7_247, %c0_248, %c0_249] : memref<8x4x8xf32, #tpu.memory_space<vmem>>, vector<1x4x8xf32>
    %536 = vector.shape_cast %535 : vector<1x4x8xf32> to vector<4x8xf32>
    %c7_250 = arith.constant 7 : index
    %c0_251 = arith.constant 0 : index
    %c0_252 = arith.constant 0 : index
    %537 = vector.load %arg4[%c7_250, %c0_251, %c0_252] : memref<8x4x8xf32, #tpu.memory_space<vmem>>, vector<1x4x8xf32>
    %538 = vector.shape_cast %537 : vector<1x4x8xf32> to vector<4x8xf32>
    %cst_253 = arith.constant dense<0.000000e+00> : vector<4x8xf32>
    %539 = tpu.matmul %532, %13, %cst_253 {dimension_numbers = #tpu.dot_dimension_numbers<[1], [0], [0], [1], [0, 0, 1, 1], [], []>} : vector<4x8xf32>, vector<8x8xf32>, vector<4x8xf32> -> vector<4x8xf32>
    %540 = arith.addf %539, %16 : vector<4x8xf32>
    %cst_254 = arith.constant dense<0xFF800000> : vector<4xf32>
    %541 = vector.multi_reduction <maximumf>, %540, %cst_254 [1] : vector<4x8xf32> to vector<4xf32>
    %542 = vector.shape_cast %541 : vector<4xf32> to vector<4x1xf32>
    %543 = vector.broadcast %542 : vector<4x1xf32> to vector<4x8xf32>
    %544 = arith.subf %540, %543 : vector<4x8xf32>
    %545 = math.exp %544 : vector<4x8xf32>
    %cst_255 = arith.constant dense<0.000000e+00> : vector<4xf32>
    %546 = vector.multi_reduction <add>, %545, %cst_255 [1] : vector<4x8xf32> to vector<4xf32>
    %547 = vector.shape_cast %546 : vector<4xf32> to vector<4x1xf32>
    %548 = vector.broadcast %547 : vector<4x1xf32> to vector<4x8xf32>
    %549 = arith.divf %545, %548 : vector<4x8xf32>
    %550 = arith.mulf %549, %532 : vector<4x8xf32>
    %551 = arith.mulf %536, %22 : vector<4x8xf32>
    %552 = arith.addf %551, %25 : vector<4x8xf32>
    %cst_256 = arith.constant 0.000000e+00 : f32
    %553 = vector.broadcast %cst_256 : f32 to vector<4x8xf32>
    %554 = arith.maximumf %552, %553 : vector<4x8xf32>
    %cst_257 = arith.constant 0.000000e+00 : f32
    %555 = vector.broadcast %cst_257 : f32 to vector<4x8xf32>
    %556 = arith.subf %555, %554 : vector<4x8xf32>
    %557 = math.exp %556 : vector<4x8xf32>
    %cst_258 = arith.constant dense<0.000000e+00> : vector<4x32xf32>
    %558 = tpu.matmul %536, %26, %cst_258 {dimension_numbers = #tpu.dot_dimension_numbers<[1], [0], [0], [1], [0, 0, 1, 1], [], []>} : vector<4x8xf32>, vector<8x32xf32>, vector<4x32xf32> -> vector<4x32xf32>
    %559 = arith.addf %558, %29 : vector<4x32xf32>
    %cst_259 = arith.constant 0.000000e+00 : f32
    %560 = vector.broadcast %cst_259 : f32 to vector<4x32xf32>
    %561 = arith.maximumf %559, %560 : vector<4x32xf32>
    %cst_260 = arith.constant 0.000000e+00 : f32
    %562 = vector.broadcast %cst_260 : f32 to vector<4x32xf32>
    %563 = arith.subf %562, %561 : vector<4x32xf32>
    %564 = math.exp %563 : vector<4x32xf32>
    %565 = arith.mulf %534, %550 : vector<4x8xf32>
    %cst_261 = arith.constant 1.000000e+00 : f32
    %566 = vector.broadcast %cst_261 : f32 to vector<4x8xf32>
    %567 = arith.subf %566, %534 : vector<4x8xf32>
    %568 = arith.mulf %557, %538 : vector<4x8xf32>
    %cst_262 = arith.constant 1.000000e+00 : f32
    %569 = vector.broadcast %cst_262 : f32 to vector<4x8xf32>
    %570 = arith.subf %569, %557 : vector<4x8xf32>
    %571 = arith.mulf %570, %19 : vector<4x8xf32>
    %572 = arith.addf %568, %571 : vector<4x8xf32>
    %573 = arith.mulf %567, %572 : vector<4x8xf32>
    %574 = arith.addf %565, %573 : vector<4x8xf32>
    %575 = arith.mulf %564, %530 : vector<4x32xf32>
    %576 = tpu.concatenate %574, %534 in 1 : vector<4x8xf32>, vector<4x8xf32> -> vector<4x16xf32>
    %cst_263 = arith.constant dense<0.000000e+00> : vector<4x64xf32>
    %577 = tpu.matmul %576, %30, %cst_263 {dimension_numbers = #tpu.dot_dimension_numbers<[1], [0], [0], [1], [0, 0, 1, 1], [], []>} : vector<4x16xf32>, vector<16x64xf32>, vector<4x64xf32> -> vector<4x64xf32>
    %cst_264 = arith.constant dense<0.000000e+00> : vector<4x64xf32>
    %578 = tpu.matmul %575, %31, %cst_264 {dimension_numbers = #tpu.dot_dimension_numbers<[1], [0], [0], [1], [0, 0, 1, 1], [], []>} : vector<4x32xf32>, vector<32x64xf32>, vector<4x64xf32> -> vector<4x64xf32>
    %579 = arith.addf %577, %578 : vector<4x64xf32>
    %580 = arith.addf %579, %34 : vector<4x64xf32>
    %cst_265 = arith.constant 5.000000e-01 : f32
    %581 = vector.broadcast %cst_265 : f32 to vector<4x64xf32>
    %582 = arith.mulf %581, %580 : vector<4x64xf32>
    %583 = math.tanh %582 : vector<4x64xf32>
    %cst_266 = arith.constant 1.000000e+00 : f32
    %584 = vector.broadcast %cst_266 : f32 to vector<4x64xf32>
    %585 = arith.addf %583, %584 : vector<4x64xf32>
    %cst_267 = arith.constant 5.000000e-01 : f32
    %586 = vector.broadcast %cst_267 : f32 to vector<4x64xf32>
    %587 = arith.mulf %586, %585 : vector<4x64xf32>
    %588 = vector.extract_strided_slice %587 {offsets = [0, 0], sizes = [4, 32], strides = [1, 1]} : vector<4x64xf32> to vector<4x32xf32>
    %589 = vector.extract_strided_slice %587 {offsets = [0, 32], sizes = [4, 32], strides = [1, 1]} : vector<4x64xf32> to vector<4x32xf32>
    %cst_268 = arith.constant dense<0.000000e+00> : vector<4x32xf32>
    %590 = tpu.matmul %576, %35, %cst_268 {dimension_numbers = #tpu.dot_dimension_numbers<[1], [0], [0], [1], [0, 0, 1, 1], [], []>} : vector<4x16xf32>, vector<16x32xf32>, vector<4x32xf32> -> vector<4x32xf32>
    %591 = arith.mulf %589, %575 : vector<4x32xf32>
    %cst_269 = arith.constant dense<0.000000e+00> : vector<4x32xf32>
    %592 = tpu.matmul %591, %36, %cst_269 {dimension_numbers = #tpu.dot_dimension_numbers<[1], [0], [0], [1], [0, 0, 1, 1], [], []>} : vector<4x32xf32>, vector<32x32xf32>, vector<4x32xf32> -> vector<4x32xf32>
    %593 = arith.addf %590, %592 : vector<4x32xf32>
    %594 = arith.addf %593, %39 : vector<4x32xf32>
    %595 = math.tanh %594 : vector<4x32xf32>
    %cst_270 = arith.constant 1.000000e+00 : f32
    %596 = vector.broadcast %cst_270 : f32 to vector<4x32xf32>
    %597 = arith.subf %596, %588 : vector<4x32xf32>
    %598 = arith.mulf %597, %575 : vector<4x32xf32>
    %599 = arith.mulf %588, %595 : vector<4x32xf32>
    %600 = arith.addf %598, %599 : vector<4x32xf32>
    %601 = tpu.concatenate %12, %600 in 1 : vector<4x16xf32>, vector<4x32xf32> -> vector<4x48xf32>
    %c0_271 = arith.constant 0 : index
    %c0_272 = arith.constant 0 : index
    %602 = vector.load %arg23[%c0_271, %c0_272] : memref<48x240xf32, #tpu.memory_space<vmem>>, vector<48x240xf32>
    %cst_273 = arith.constant dense<0.000000e+00> : vector<4x240xf32>
    %603 = tpu.matmul %601, %602, %cst_273 {dimension_numbers = #tpu.dot_dimension_numbers<[1], [0], [0], [1], [0, 0, 1, 1], [], []>} : vector<4x48xf32>, vector<48x240xf32>, vector<4x240xf32> -> vector<4x240xf32>
    %c0_274 = arith.constant 0 : index
    %c0_275 = arith.constant 0 : index
    %604 = vector.load %arg24[%c0_274, %c0_275] : memref<1x240xf32, #tpu.memory_space<vmem>>, vector<1x240xf32>
    %605 = vector.broadcast %604 : vector<1x240xf32> to vector<4x240xf32>
    %606 = arith.addf %603, %605 : vector<4x240xf32>
    %cst_276 = arith.constant 0.000000e+00 : f32
    %607 = vector.broadcast %cst_276 : f32 to vector<4x240xf32>
    %608 = arith.maximumf %606, %607 : vector<4x240xf32>
    %cst_277 = arith.constant dense<0.000000e+00> : vector<240xf32>
    %609 = vector.multi_reduction <add>, %608, %cst_277 [0] : vector<4x240xf32> to vector<240xf32>
    %610 = vector.shape_cast %609 : vector<240xf32> to vector<1x240xf32>
    %cst_278 = arith.constant 4.000000e+00 : f32
    %611 = vector.broadcast %cst_278 : f32 to vector<1x240xf32>
    %612 = arith.divf %610, %611 : vector<1x240xf32>
    %613 = vector.broadcast %612 : vector<1x240xf32> to vector<4x240xf32>
    %614 = arith.subf %608, %613 : vector<4x240xf32>
    %615 = arith.mulf %614, %614 : vector<4x240xf32>
    %cst_279 = arith.constant dense<0.000000e+00> : vector<240xf32>
    %616 = vector.multi_reduction <add>, %615, %cst_279 [0] : vector<4x240xf32> to vector<240xf32>
    %617 = vector.shape_cast %616 : vector<240xf32> to vector<1x240xf32>
    %cst_280 = arith.constant 4.000000e+00 : f32
    %618 = vector.broadcast %cst_280 : f32 to vector<1x240xf32>
    %619 = arith.divf %617, %618 : vector<1x240xf32>
    %620 = vector.broadcast %612 : vector<1x240xf32> to vector<4x240xf32>
    %621 = arith.subf %608, %620 : vector<4x240xf32>
    %cst_281 = arith.constant 9.99999974E-6 : f32
    %622 = vector.broadcast %cst_281 : f32 to vector<1x240xf32>
    %623 = arith.addf %619, %622 : vector<1x240xf32>
    %624 = math.rsqrt %623 : vector<1x240xf32>
    %625 = vector.broadcast %624 : vector<1x240xf32> to vector<4x240xf32>
    %626 = arith.mulf %621, %625 : vector<4x240xf32>
    %c0_282 = arith.constant 0 : index
    %c0_283 = arith.constant 0 : index
    %627 = vector.load %arg25[%c0_282, %c0_283] : memref<1x240xf32, #tpu.memory_space<vmem>>, vector<1x240xf32>
    %628 = vector.broadcast %627 : vector<1x240xf32> to vector<4x240xf32>
    %629 = arith.mulf %626, %628 : vector<4x240xf32>
    %c0_284 = arith.constant 0 : index
    %c0_285 = arith.constant 0 : index
    %630 = vector.load %arg26[%c0_284, %c0_285] : memref<1x240xf32, #tpu.memory_space<vmem>>, vector<1x240xf32>
    %631 = vector.broadcast %630 : vector<1x240xf32> to vector<4x240xf32>
    %632 = arith.addf %629, %631 : vector<4x240xf32>
    %633 = vector.extract_strided_slice %632 {offsets = [0, 0], sizes = [4, 48], strides = [1, 1]} : vector<4x240xf32> to vector<4x48xf32>
    %634 = vector.extract_strided_slice %632 {offsets = [0, 48], sizes = [4, 48], strides = [1, 1]} : vector<4x240xf32> to vector<4x48xf32>
    %635 = vector.extract_strided_slice %632 {offsets = [0, 96], sizes = [4, 48], strides = [1, 1]} : vector<4x240xf32> to vector<4x48xf32>
    %636 = vector.extract_strided_slice %632 {offsets = [0, 144], sizes = [4, 48], strides = [1, 1]} : vector<4x240xf32> to vector<4x48xf32>
    %637 = vector.extract_strided_slice %632 {offsets = [0, 192], sizes = [4, 48], strides = [1, 1]} : vector<4x240xf32> to vector<4x48xf32>
    %c0_286 = arith.constant 0 : index
    %c0_287 = arith.constant 0 : index
    %638 = vector.load %arg6[%c0_286, %c0_287] : memref<5x5xf32, #tpu.memory_space<vmem>>, vector<5x5xf32>
    %c0_288 = arith.constant 0 : index
    %c0_289 = arith.constant 0 : index
    %639 = vector.load %arg27[%c0_288, %c0_289] : memref<48x32xf32, #tpu.memory_space<vmem>>, vector<48x32xf32>
    %c0_290 = arith.constant 0 : index
    %c0_291 = arith.constant 0 : index
    %640 = vector.load %arg28[%c0_290, %c0_291] : memref<1x32xf32, #tpu.memory_space<vmem>>, vector<1x32xf32>
    %c0_292 = arith.constant 0 : index
    %c0_293 = arith.constant 0 : index
    %641 = vector.load %arg29[%c0_292, %c0_293] : memref<1x32xf32, #tpu.memory_space<vmem>>, vector<1x32xf32>
    %c0_294 = arith.constant 0 : index
    %c0_295 = arith.constant 0 : index
    %642 = vector.load %arg30[%c0_294, %c0_295] : memref<1x32xf32, #tpu.memory_space<vmem>>, vector<1x32xf32>
    %643 = vector.shape_cast %642 : vector<1x32xf32> to vector<1x32xf32>
    %644 = vector.broadcast %643 : vector<1x32xf32> to vector<4x32xf32>
    %cst_296 = arith.constant dense<0.000000e+00> : vector<4x32xf32>
    %645 = tpu.matmul %633, %639, %cst_296 {dimension_numbers = #tpu.dot_dimension_numbers<[1], [0], [0], [1], [0, 0, 1, 1], [], []>} : vector<4x48xf32>, vector<48x32xf32>, vector<4x32xf32> -> vector<4x32xf32>
    %cst_297 = arith.constant dense<0.000000e+00> : vector<4x32xf32>
    %646 = tpu.matmul %634, %639, %cst_297 {dimension_numbers = #tpu.dot_dimension_numbers<[1], [0], [0], [1], [0, 0, 1, 1], [], []>} : vector<4x48xf32>, vector<48x32xf32>, vector<4x32xf32> -> vector<4x32xf32>
    %cst_298 = arith.constant dense<0.000000e+00> : vector<4x32xf32>
    %647 = tpu.matmul %635, %639, %cst_298 {dimension_numbers = #tpu.dot_dimension_numbers<[1], [0], [0], [1], [0, 0, 1, 1], [], []>} : vector<4x48xf32>, vector<48x32xf32>, vector<4x32xf32> -> vector<4x32xf32>
    %cst_299 = arith.constant dense<0.000000e+00> : vector<4x32xf32>
    %648 = tpu.matmul %636, %639, %cst_299 {dimension_numbers = #tpu.dot_dimension_numbers<[1], [0], [0], [1], [0, 0, 1, 1], [], []>} : vector<4x48xf32>, vector<48x32xf32>, vector<4x32xf32> -> vector<4x32xf32>
    %cst_300 = arith.constant dense<0.000000e+00> : vector<4x32xf32>
    %649 = tpu.matmul %637, %639, %cst_300 {dimension_numbers = #tpu.dot_dimension_numbers<[1], [0], [0], [1], [0, 0, 1, 1], [], []>} : vector<4x48xf32>, vector<48x32xf32>, vector<4x32xf32> -> vector<4x32xf32>
    %650 = vector.extract_strided_slice %645 {offsets = [0, 0], sizes = [4, 16], strides = [1, 1]} : vector<4x32xf32> to vector<4x16xf32>
    %651 = vector.extract_strided_slice %646 {offsets = [0, 0], sizes = [4, 16], strides = [1, 1]} : vector<4x32xf32> to vector<4x16xf32>
    %652 = vector.extract_strided_slice %647 {offsets = [0, 0], sizes = [4, 16], strides = [1, 1]} : vector<4x32xf32> to vector<4x16xf32>
    %653 = vector.extract_strided_slice %648 {offsets = [0, 0], sizes = [4, 16], strides = [1, 1]} : vector<4x32xf32> to vector<4x16xf32>
    %654 = vector.extract_strided_slice %649 {offsets = [0, 0], sizes = [4, 16], strides = [1, 1]} : vector<4x32xf32> to vector<4x16xf32>
    %655 = vector.extract_strided_slice %640 {offsets = [0, 0], sizes = [1, 16], strides = [1, 1]} : vector<1x32xf32> to vector<1x16xf32>
    %656 = vector.extract_strided_slice %641 {offsets = [0, 0], sizes = [1, 16], strides = [1, 1]} : vector<1x32xf32> to vector<1x16xf32>
    %657 = vector.broadcast %655 : vector<1x16xf32> to vector<4x16xf32>
    %658 = arith.mulf %650, %657 : vector<4x16xf32>
    %cst_301 = arith.constant dense<0.000000e+00> : vector<4xf32>
    %659 = vector.multi_reduction <add>, %658, %cst_301 [1] : vector<4x16xf32> to vector<4xf32>
    %660 = vector.shape_cast %659 : vector<4xf32> to vector<4x1xf32>
    %661 = vector.broadcast %655 : vector<1x16xf32> to vector<4x16xf32>
    %662 = arith.mulf %651, %661 : vector<4x16xf32>
    %cst_302 = arith.constant dense<0.000000e+00> : vector<4xf32>
    %663 = vector.multi_reduction <add>, %662, %cst_302 [1] : vector<4x16xf32> to vector<4xf32>
    %664 = vector.shape_cast %663 : vector<4xf32> to vector<4x1xf32>
    %665 = vector.broadcast %655 : vector<1x16xf32> to vector<4x16xf32>
    %666 = arith.mulf %652, %665 : vector<4x16xf32>
    %cst_303 = arith.constant dense<0.000000e+00> : vector<4xf32>
    %667 = vector.multi_reduction <add>, %666, %cst_303 [1] : vector<4x16xf32> to vector<4xf32>
    %668 = vector.shape_cast %667 : vector<4xf32> to vector<4x1xf32>
    %669 = vector.broadcast %655 : vector<1x16xf32> to vector<4x16xf32>
    %670 = arith.mulf %653, %669 : vector<4x16xf32>
    %cst_304 = arith.constant dense<0.000000e+00> : vector<4xf32>
    %671 = vector.multi_reduction <add>, %670, %cst_304 [1] : vector<4x16xf32> to vector<4xf32>
    %672 = vector.shape_cast %671 : vector<4xf32> to vector<4x1xf32>
    %673 = vector.broadcast %655 : vector<1x16xf32> to vector<4x16xf32>
    %674 = arith.mulf %654, %673 : vector<4x16xf32>
    %cst_305 = arith.constant dense<0.000000e+00> : vector<4xf32>
    %675 = vector.multi_reduction <add>, %674, %cst_305 [1] : vector<4x16xf32> to vector<4xf32>
    %676 = vector.shape_cast %675 : vector<4xf32> to vector<4x1xf32>
    %677 = tpu.concatenate %660, %664, %668, %672, %676 in 1 : vector<4x1xf32>, vector<4x1xf32>, vector<4x1xf32>, vector<4x1xf32>, vector<4x1xf32> -> vector<4x5xf32>
    %678 = vector.broadcast %656 : vector<1x16xf32> to vector<4x16xf32>
    %679 = arith.mulf %650, %678 : vector<4x16xf32>
    %cst_306 = arith.constant dense<0.000000e+00> : vector<4xf32>
    %680 = vector.multi_reduction <add>, %679, %cst_306 [1] : vector<4x16xf32> to vector<4xf32>
    %681 = vector.shape_cast %680 : vector<4xf32> to vector<4x1xf32>
    %682 = vector.broadcast %656 : vector<1x16xf32> to vector<4x16xf32>
    %683 = arith.mulf %651, %682 : vector<4x16xf32>
    %cst_307 = arith.constant dense<0.000000e+00> : vector<4xf32>
    %684 = vector.multi_reduction <add>, %683, %cst_307 [1] : vector<4x16xf32> to vector<4xf32>
    %685 = vector.shape_cast %684 : vector<4xf32> to vector<4x1xf32>
    %686 = vector.broadcast %656 : vector<1x16xf32> to vector<4x16xf32>
    %687 = arith.mulf %652, %686 : vector<4x16xf32>
    %cst_308 = arith.constant dense<0.000000e+00> : vector<4xf32>
    %688 = vector.multi_reduction <add>, %687, %cst_308 [1] : vector<4x16xf32> to vector<4xf32>
    %689 = vector.shape_cast %688 : vector<4xf32> to vector<4x1xf32>
    %690 = vector.broadcast %656 : vector<1x16xf32> to vector<4x16xf32>
    %691 = arith.mulf %653, %690 : vector<4x16xf32>
    %cst_309 = arith.constant dense<0.000000e+00> : vector<4xf32>
    %692 = vector.multi_reduction <add>, %691, %cst_309 [1] : vector<4x16xf32> to vector<4xf32>
    %693 = vector.shape_cast %692 : vector<4xf32> to vector<4x1xf32>
    %694 = vector.broadcast %656 : vector<1x16xf32> to vector<4x16xf32>
    %695 = arith.mulf %654, %694 : vector<4x16xf32>
    %cst_310 = arith.constant dense<0.000000e+00> : vector<4xf32>
    %696 = vector.multi_reduction <add>, %695, %cst_310 [1] : vector<4x16xf32> to vector<4xf32>
    %697 = vector.shape_cast %696 : vector<4xf32> to vector<4x1xf32>
    %698 = tpu.concatenate %681, %685, %689, %693, %697 in 1 : vector<4x1xf32>, vector<4x1xf32>, vector<4x1xf32>, vector<4x1xf32>, vector<4x1xf32> -> vector<4x5xf32>
    %699 = vector.extract_strided_slice %677 {offsets = [0, 0], sizes = [4, 1], strides = [1, 1]} : vector<4x5xf32> to vector<4x1xf32>
    %700 = vector.broadcast %699 : vector<4x1xf32> to vector<4x5xf32>
    %701 = arith.addf %700, %698 : vector<4x5xf32>
    %cst_311 = arith.constant 0.000000e+00 : f32
    %702 = vector.broadcast %cst_311 : f32 to vector<4x5xf32>
    %703 = arith.cmpf ogt, %701, %702 : vector<4x5xf32>
    %cst_312 = arith.constant 2.000000e-01 : f32
    %704 = vector.broadcast %cst_312 : f32 to vector<4x5xf32>
    %705 = arith.mulf %704, %701 : vector<4x5xf32>
    %706 = arith.select %703, %701, %705 : vector<4x5xi1>, vector<4x5xf32>
    %707 = vector.extract_strided_slice %638 {offsets = [0, 0], sizes = [1, 5], strides = [1, 1]} : vector<5x5xf32> to vector<1x5xf32>
    %cst_313 = arith.constant 0.000000e+00 : f32
    %708 = vector.broadcast %cst_313 : f32 to vector<1x5xf32>
    %709 = arith.cmpf ogt, %707, %708 : vector<1x5xf32>
    %cst_314 = arith.constant -1.000000e+09 : f32
    %710 = vector.shape_cast %709 : vector<1x5xi1> to vector<1x5xi1>
    %711 = vector.broadcast %710 : vector<1x5xi1> to vector<4x5xi1>
    %712 = vector.broadcast %cst_314 : f32 to vector<4x5xf32>
    %713 = arith.select %711, %706, %712 : vector<4x5xi1>, vector<4x5xf32>
    %cst_315 = arith.constant dense<0xFF800000> : vector<4xf32>
    %714 = vector.multi_reduction <maximumf>, %713, %cst_315 [1] : vector<4x5xf32> to vector<4xf32>
    %715 = vector.shape_cast %714 : vector<4xf32> to vector<4x1xf32>
    %716 = vector.broadcast %715 : vector<4x1xf32> to vector<4x5xf32>
    %717 = arith.subf %713, %716 : vector<4x5xf32>
    %718 = math.exp %717 : vector<4x5xf32>
    %cst_316 = arith.constant dense<0.000000e+00> : vector<4xf32>
    %719 = vector.multi_reduction <add>, %718, %cst_316 [1] : vector<4x5xf32> to vector<4xf32>
    %720 = vector.shape_cast %719 : vector<4xf32> to vector<4x1xf32>
    %721 = vector.broadcast %720 : vector<4x1xf32> to vector<4x5xf32>
    %722 = arith.divf %718, %721 : vector<4x5xf32>
    %723 = vector.extract_strided_slice %722 {offsets = [0, 0], sizes = [4, 1], strides = [1, 1]} : vector<4x5xf32> to vector<4x1xf32>
    %724 = vector.broadcast %723 : vector<4x1xf32> to vector<4x16xf32>
    %725 = arith.mulf %724, %650 : vector<4x16xf32>
    %726 = vector.extract_strided_slice %722 {offsets = [0, 1], sizes = [4, 1], strides = [1, 1]} : vector<4x5xf32> to vector<4x1xf32>
    %727 = vector.broadcast %726 : vector<4x1xf32> to vector<4x16xf32>
    %728 = arith.mulf %727, %651 : vector<4x16xf32>
    %729 = arith.addf %725, %728 : vector<4x16xf32>
    %730 = vector.extract_strided_slice %722 {offsets = [0, 2], sizes = [4, 1], strides = [1, 1]} : vector<4x5xf32> to vector<4x1xf32>
    %731 = vector.broadcast %730 : vector<4x1xf32> to vector<4x16xf32>
    %732 = arith.mulf %731, %652 : vector<4x16xf32>
    %733 = arith.addf %729, %732 : vector<4x16xf32>
    %734 = vector.extract_strided_slice %722 {offsets = [0, 3], sizes = [4, 1], strides = [1, 1]} : vector<4x5xf32> to vector<4x1xf32>
    %735 = vector.broadcast %734 : vector<4x1xf32> to vector<4x16xf32>
    %736 = arith.mulf %735, %653 : vector<4x16xf32>
    %737 = arith.addf %733, %736 : vector<4x16xf32>
    %738 = vector.extract_strided_slice %722 {offsets = [0, 4], sizes = [4, 1], strides = [1, 1]} : vector<4x5xf32> to vector<4x1xf32>
    %739 = vector.broadcast %738 : vector<4x1xf32> to vector<4x16xf32>
    %740 = arith.mulf %739, %654 : vector<4x16xf32>
    %741 = arith.addf %737, %740 : vector<4x16xf32>
    %742 = vector.extract_strided_slice %677 {offsets = [0, 1], sizes = [4, 1], strides = [1, 1]} : vector<4x5xf32> to vector<4x1xf32>
    %743 = vector.broadcast %742 : vector<4x1xf32> to vector<4x5xf32>
    %744 = arith.addf %743, %698 : vector<4x5xf32>
    %cst_317 = arith.constant 0.000000e+00 : f32
    %745 = vector.broadcast %cst_317 : f32 to vector<4x5xf32>
    %746 = arith.cmpf ogt, %744, %745 : vector<4x5xf32>
    %cst_318 = arith.constant 2.000000e-01 : f32
    %747 = vector.broadcast %cst_318 : f32 to vector<4x5xf32>
    %748 = arith.mulf %747, %744 : vector<4x5xf32>
    %749 = arith.select %746, %744, %748 : vector<4x5xi1>, vector<4x5xf32>
    %750 = vector.extract_strided_slice %638 {offsets = [1, 0], sizes = [1, 5], strides = [1, 1]} : vector<5x5xf32> to vector<1x5xf32>
    %cst_319 = arith.constant 0.000000e+00 : f32
    %751 = vector.broadcast %cst_319 : f32 to vector<1x5xf32>
    %752 = arith.cmpf ogt, %750, %751 : vector<1x5xf32>
    %cst_320 = arith.constant -1.000000e+09 : f32
    %753 = vector.shape_cast %752 : vector<1x5xi1> to vector<1x5xi1>
    %754 = vector.broadcast %753 : vector<1x5xi1> to vector<4x5xi1>
    %755 = vector.broadcast %cst_320 : f32 to vector<4x5xf32>
    %756 = arith.select %754, %749, %755 : vector<4x5xi1>, vector<4x5xf32>
    %cst_321 = arith.constant dense<0xFF800000> : vector<4xf32>
    %757 = vector.multi_reduction <maximumf>, %756, %cst_321 [1] : vector<4x5xf32> to vector<4xf32>
    %758 = vector.shape_cast %757 : vector<4xf32> to vector<4x1xf32>
    %759 = vector.broadcast %758 : vector<4x1xf32> to vector<4x5xf32>
    %760 = arith.subf %756, %759 : vector<4x5xf32>
    %761 = math.exp %760 : vector<4x5xf32>
    %cst_322 = arith.constant dense<0.000000e+00> : vector<4xf32>
    %762 = vector.multi_reduction <add>, %761, %cst_322 [1] : vector<4x5xf32> to vector<4xf32>
    %763 = vector.shape_cast %762 : vector<4xf32> to vector<4x1xf32>
    %764 = vector.broadcast %763 : vector<4x1xf32> to vector<4x5xf32>
    %765 = arith.divf %761, %764 : vector<4x5xf32>
    %766 = vector.extract_strided_slice %765 {offsets = [0, 0], sizes = [4, 1], strides = [1, 1]} : vector<4x5xf32> to vector<4x1xf32>
    %767 = vector.broadcast %766 : vector<4x1xf32> to vector<4x16xf32>
    %768 = arith.mulf %767, %650 : vector<4x16xf32>
    %769 = vector.extract_strided_slice %765 {offsets = [0, 1], sizes = [4, 1], strides = [1, 1]} : vector<4x5xf32> to vector<4x1xf32>
    %770 = vector.broadcast %769 : vector<4x1xf32> to vector<4x16xf32>
    %771 = arith.mulf %770, %651 : vector<4x16xf32>
    %772 = arith.addf %768, %771 : vector<4x16xf32>
    %773 = vector.extract_strided_slice %765 {offsets = [0, 2], sizes = [4, 1], strides = [1, 1]} : vector<4x5xf32> to vector<4x1xf32>
    %774 = vector.broadcast %773 : vector<4x1xf32> to vector<4x16xf32>
    %775 = arith.mulf %774, %652 : vector<4x16xf32>
    %776 = arith.addf %772, %775 : vector<4x16xf32>
    %777 = vector.extract_strided_slice %765 {offsets = [0, 3], sizes = [4, 1], strides = [1, 1]} : vector<4x5xf32> to vector<4x1xf32>
    %778 = vector.broadcast %777 : vector<4x1xf32> to vector<4x16xf32>
    %779 = arith.mulf %778, %653 : vector<4x16xf32>
    %780 = arith.addf %776, %779 : vector<4x16xf32>
    %781 = vector.extract_strided_slice %765 {offsets = [0, 4], sizes = [4, 1], strides = [1, 1]} : vector<4x5xf32> to vector<4x1xf32>
    %782 = vector.broadcast %781 : vector<4x1xf32> to vector<4x16xf32>
    %783 = arith.mulf %782, %654 : vector<4x16xf32>
    %784 = arith.addf %780, %783 : vector<4x16xf32>
    %785 = vector.extract_strided_slice %677 {offsets = [0, 2], sizes = [4, 1], strides = [1, 1]} : vector<4x5xf32> to vector<4x1xf32>
    %786 = vector.broadcast %785 : vector<4x1xf32> to vector<4x5xf32>
    %787 = arith.addf %786, %698 : vector<4x5xf32>
    %cst_323 = arith.constant 0.000000e+00 : f32
    %788 = vector.broadcast %cst_323 : f32 to vector<4x5xf32>
    %789 = arith.cmpf ogt, %787, %788 : vector<4x5xf32>
    %cst_324 = arith.constant 2.000000e-01 : f32
    %790 = vector.broadcast %cst_324 : f32 to vector<4x5xf32>
    %791 = arith.mulf %790, %787 : vector<4x5xf32>
    %792 = arith.select %789, %787, %791 : vector<4x5xi1>, vector<4x5xf32>
    %793 = vector.extract_strided_slice %638 {offsets = [2, 0], sizes = [1, 5], strides = [1, 1]} : vector<5x5xf32> to vector<1x5xf32>
    %cst_325 = arith.constant 0.000000e+00 : f32
    %794 = vector.broadcast %cst_325 : f32 to vector<1x5xf32>
    %795 = arith.cmpf ogt, %793, %794 : vector<1x5xf32>
    %cst_326 = arith.constant -1.000000e+09 : f32
    %796 = vector.shape_cast %795 : vector<1x5xi1> to vector<1x5xi1>
    %797 = vector.broadcast %796 : vector<1x5xi1> to vector<4x5xi1>
    %798 = vector.broadcast %cst_326 : f32 to vector<4x5xf32>
    %799 = arith.select %797, %792, %798 : vector<4x5xi1>, vector<4x5xf32>
    %cst_327 = arith.constant dense<0xFF800000> : vector<4xf32>
    %800 = vector.multi_reduction <maximumf>, %799, %cst_327 [1] : vector<4x5xf32> to vector<4xf32>
    %801 = vector.shape_cast %800 : vector<4xf32> to vector<4x1xf32>
    %802 = vector.broadcast %801 : vector<4x1xf32> to vector<4x5xf32>
    %803 = arith.subf %799, %802 : vector<4x5xf32>
    %804 = math.exp %803 : vector<4x5xf32>
    %cst_328 = arith.constant dense<0.000000e+00> : vector<4xf32>
    %805 = vector.multi_reduction <add>, %804, %cst_328 [1] : vector<4x5xf32> to vector<4xf32>
    %806 = vector.shape_cast %805 : vector<4xf32> to vector<4x1xf32>
    %807 = vector.broadcast %806 : vector<4x1xf32> to vector<4x5xf32>
    %808 = arith.divf %804, %807 : vector<4x5xf32>
    %809 = vector.extract_strided_slice %808 {offsets = [0, 0], sizes = [4, 1], strides = [1, 1]} : vector<4x5xf32> to vector<4x1xf32>
    %810 = vector.broadcast %809 : vector<4x1xf32> to vector<4x16xf32>
    %811 = arith.mulf %810, %650 : vector<4x16xf32>
    %812 = vector.extract_strided_slice %808 {offsets = [0, 1], sizes = [4, 1], strides = [1, 1]} : vector<4x5xf32> to vector<4x1xf32>
    %813 = vector.broadcast %812 : vector<4x1xf32> to vector<4x16xf32>
    %814 = arith.mulf %813, %651 : vector<4x16xf32>
    %815 = arith.addf %811, %814 : vector<4x16xf32>
    %816 = vector.extract_strided_slice %808 {offsets = [0, 2], sizes = [4, 1], strides = [1, 1]} : vector<4x5xf32> to vector<4x1xf32>
    %817 = vector.broadcast %816 : vector<4x1xf32> to vector<4x16xf32>
    %818 = arith.mulf %817, %652 : vector<4x16xf32>
    %819 = arith.addf %815, %818 : vector<4x16xf32>
    %820 = vector.extract_strided_slice %808 {offsets = [0, 3], sizes = [4, 1], strides = [1, 1]} : vector<4x5xf32> to vector<4x1xf32>
    %821 = vector.broadcast %820 : vector<4x1xf32> to vector<4x16xf32>
    %822 = arith.mulf %821, %653 : vector<4x16xf32>
    %823 = arith.addf %819, %822 : vector<4x16xf32>
    %824 = vector.extract_strided_slice %808 {offsets = [0, 4], sizes = [4, 1], strides = [1, 1]} : vector<4x5xf32> to vector<4x1xf32>
    %825 = vector.broadcast %824 : vector<4x1xf32> to vector<4x16xf32>
    %826 = arith.mulf %825, %654 : vector<4x16xf32>
    %827 = arith.addf %823, %826 : vector<4x16xf32>
    %828 = vector.extract_strided_slice %677 {offsets = [0, 3], sizes = [4, 1], strides = [1, 1]} : vector<4x5xf32> to vector<4x1xf32>
    %829 = vector.broadcast %828 : vector<4x1xf32> to vector<4x5xf32>
    %830 = arith.addf %829, %698 : vector<4x5xf32>
    %cst_329 = arith.constant 0.000000e+00 : f32
    %831 = vector.broadcast %cst_329 : f32 to vector<4x5xf32>
    %832 = arith.cmpf ogt, %830, %831 : vector<4x5xf32>
    %cst_330 = arith.constant 2.000000e-01 : f32
    %833 = vector.broadcast %cst_330 : f32 to vector<4x5xf32>
    %834 = arith.mulf %833, %830 : vector<4x5xf32>
    %835 = arith.select %832, %830, %834 : vector<4x5xi1>, vector<4x5xf32>
    %836 = vector.extract_strided_slice %638 {offsets = [3, 0], sizes = [1, 5], strides = [1, 1]} : vector<5x5xf32> to vector<1x5xf32>
    %cst_331 = arith.constant 0.000000e+00 : f32
    %837 = vector.broadcast %cst_331 : f32 to vector<1x5xf32>
    %838 = arith.cmpf ogt, %836, %837 : vector<1x5xf32>
    %cst_332 = arith.constant -1.000000e+09 : f32
    %839 = vector.shape_cast %838 : vector<1x5xi1> to vector<1x5xi1>
    %840 = vector.broadcast %839 : vector<1x5xi1> to vector<4x5xi1>
    %841 = vector.broadcast %cst_332 : f32 to vector<4x5xf32>
    %842 = arith.select %840, %835, %841 : vector<4x5xi1>, vector<4x5xf32>
    %cst_333 = arith.constant dense<0xFF800000> : vector<4xf32>
    %843 = vector.multi_reduction <maximumf>, %842, %cst_333 [1] : vector<4x5xf32> to vector<4xf32>
    %844 = vector.shape_cast %843 : vector<4xf32> to vector<4x1xf32>
    %845 = vector.broadcast %844 : vector<4x1xf32> to vector<4x5xf32>
    %846 = arith.subf %842, %845 : vector<4x5xf32>
    %847 = math.exp %846 : vector<4x5xf32>
    %cst_334 = arith.constant dense<0.000000e+00> : vector<4xf32>
    %848 = vector.multi_reduction <add>, %847, %cst_334 [1] : vector<4x5xf32> to vector<4xf32>
    %849 = vector.shape_cast %848 : vector<4xf32> to vector<4x1xf32>
    %850 = vector.broadcast %849 : vector<4x1xf32> to vector<4x5xf32>
    %851 = arith.divf %847, %850 : vector<4x5xf32>
    %852 = vector.extract_strided_slice %851 {offsets = [0, 0], sizes = [4, 1], strides = [1, 1]} : vector<4x5xf32> to vector<4x1xf32>
    %853 = vector.broadcast %852 : vector<4x1xf32> to vector<4x16xf32>
    %854 = arith.mulf %853, %650 : vector<4x16xf32>
    %855 = vector.extract_strided_slice %851 {offsets = [0, 1], sizes = [4, 1], strides = [1, 1]} : vector<4x5xf32> to vector<4x1xf32>
    %856 = vector.broadcast %855 : vector<4x1xf32> to vector<4x16xf32>
    %857 = arith.mulf %856, %651 : vector<4x16xf32>
    %858 = arith.addf %854, %857 : vector<4x16xf32>
    %859 = vector.extract_strided_slice %851 {offsets = [0, 2], sizes = [4, 1], strides = [1, 1]} : vector<4x5xf32> to vector<4x1xf32>
    %860 = vector.broadcast %859 : vector<4x1xf32> to vector<4x16xf32>
    %861 = arith.mulf %860, %652 : vector<4x16xf32>
    %862 = arith.addf %858, %861 : vector<4x16xf32>
    %863 = vector.extract_strided_slice %851 {offsets = [0, 3], sizes = [4, 1], strides = [1, 1]} : vector<4x5xf32> to vector<4x1xf32>
    %864 = vector.broadcast %863 : vector<4x1xf32> to vector<4x16xf32>
    %865 = arith.mulf %864, %653 : vector<4x16xf32>
    %866 = arith.addf %862, %865 : vector<4x16xf32>
    %867 = vector.extract_strided_slice %851 {offsets = [0, 4], sizes = [4, 1], strides = [1, 1]} : vector<4x5xf32> to vector<4x1xf32>
    %868 = vector.broadcast %867 : vector<4x1xf32> to vector<4x16xf32>
    %869 = arith.mulf %868, %654 : vector<4x16xf32>
    %870 = arith.addf %866, %869 : vector<4x16xf32>
    %871 = vector.extract_strided_slice %677 {offsets = [0, 4], sizes = [4, 1], strides = [1, 1]} : vector<4x5xf32> to vector<4x1xf32>
    %872 = vector.broadcast %871 : vector<4x1xf32> to vector<4x5xf32>
    %873 = arith.addf %872, %698 : vector<4x5xf32>
    %cst_335 = arith.constant 0.000000e+00 : f32
    %874 = vector.broadcast %cst_335 : f32 to vector<4x5xf32>
    %875 = arith.cmpf ogt, %873, %874 : vector<4x5xf32>
    %cst_336 = arith.constant 2.000000e-01 : f32
    %876 = vector.broadcast %cst_336 : f32 to vector<4x5xf32>
    %877 = arith.mulf %876, %873 : vector<4x5xf32>
    %878 = arith.select %875, %873, %877 : vector<4x5xi1>, vector<4x5xf32>
    %879 = vector.extract_strided_slice %638 {offsets = [4, 0], sizes = [1, 5], strides = [1, 1]} : vector<5x5xf32> to vector<1x5xf32>
    %cst_337 = arith.constant 0.000000e+00 : f32
    %880 = vector.broadcast %cst_337 : f32 to vector<1x5xf32>
    %881 = arith.cmpf ogt, %879, %880 : vector<1x5xf32>
    %cst_338 = arith.constant -1.000000e+09 : f32
    %882 = vector.shape_cast %881 : vector<1x5xi1> to vector<1x5xi1>
    %883 = vector.broadcast %882 : vector<1x5xi1> to vector<4x5xi1>
    %884 = vector.broadcast %cst_338 : f32 to vector<4x5xf32>
    %885 = arith.select %883, %878, %884 : vector<4x5xi1>, vector<4x5xf32>
    %cst_339 = arith.constant dense<0xFF800000> : vector<4xf32>
    %886 = vector.multi_reduction <maximumf>, %885, %cst_339 [1] : vector<4x5xf32> to vector<4xf32>
    %887 = vector.shape_cast %886 : vector<4xf32> to vector<4x1xf32>
    %888 = vector.broadcast %887 : vector<4x1xf32> to vector<4x5xf32>
    %889 = arith.subf %885, %888 : vector<4x5xf32>
    %890 = math.exp %889 : vector<4x5xf32>
    %cst_340 = arith.constant dense<0.000000e+00> : vector<4xf32>
    %891 = vector.multi_reduction <add>, %890, %cst_340 [1] : vector<4x5xf32> to vector<4xf32>
    %892 = vector.shape_cast %891 : vector<4xf32> to vector<4x1xf32>
    %893 = vector.broadcast %892 : vector<4x1xf32> to vector<4x5xf32>
    %894 = arith.divf %890, %893 : vector<4x5xf32>
    %895 = vector.extract_strided_slice %894 {offsets = [0, 0], sizes = [4, 1], strides = [1, 1]} : vector<4x5xf32> to vector<4x1xf32>
    %896 = vector.broadcast %895 : vector<4x1xf32> to vector<4x16xf32>
    %897 = arith.mulf %896, %650 : vector<4x16xf32>
    %898 = vector.extract_strided_slice %894 {offsets = [0, 1], sizes = [4, 1], strides = [1, 1]} : vector<4x5xf32> to vector<4x1xf32>
    %899 = vector.broadcast %898 : vector<4x1xf32> to vector<4x16xf32>
    %900 = arith.mulf %899, %651 : vector<4x16xf32>
    %901 = arith.addf %897, %900 : vector<4x16xf32>
    %902 = vector.extract_strided_slice %894 {offsets = [0, 2], sizes = [4, 1], strides = [1, 1]} : vector<4x5xf32> to vector<4x1xf32>
    %903 = vector.broadcast %902 : vector<4x1xf32> to vector<4x16xf32>
    %904 = arith.mulf %903, %652 : vector<4x16xf32>
    %905 = arith.addf %901, %904 : vector<4x16xf32>
    %906 = vector.extract_strided_slice %894 {offsets = [0, 3], sizes = [4, 1], strides = [1, 1]} : vector<4x5xf32> to vector<4x1xf32>
    %907 = vector.broadcast %906 : vector<4x1xf32> to vector<4x16xf32>
    %908 = arith.mulf %907, %653 : vector<4x16xf32>
    %909 = arith.addf %905, %908 : vector<4x16xf32>
    %910 = vector.extract_strided_slice %894 {offsets = [0, 4], sizes = [4, 1], strides = [1, 1]} : vector<4x5xf32> to vector<4x1xf32>
    %911 = vector.broadcast %910 : vector<4x1xf32> to vector<4x16xf32>
    %912 = arith.mulf %911, %654 : vector<4x16xf32>
    %913 = arith.addf %909, %912 : vector<4x16xf32>
    %914 = vector.extract_strided_slice %645 {offsets = [0, 16], sizes = [4, 16], strides = [1, 1]} : vector<4x32xf32> to vector<4x16xf32>
    %915 = vector.extract_strided_slice %646 {offsets = [0, 16], sizes = [4, 16], strides = [1, 1]} : vector<4x32xf32> to vector<4x16xf32>
    %916 = vector.extract_strided_slice %647 {offsets = [0, 16], sizes = [4, 16], strides = [1, 1]} : vector<4x32xf32> to vector<4x16xf32>
    %917 = vector.extract_strided_slice %648 {offsets = [0, 16], sizes = [4, 16], strides = [1, 1]} : vector<4x32xf32> to vector<4x16xf32>
    %918 = vector.extract_strided_slice %649 {offsets = [0, 16], sizes = [4, 16], strides = [1, 1]} : vector<4x32xf32> to vector<4x16xf32>
    %919 = vector.extract_strided_slice %640 {offsets = [0, 16], sizes = [1, 16], strides = [1, 1]} : vector<1x32xf32> to vector<1x16xf32>
    %920 = vector.extract_strided_slice %641 {offsets = [0, 16], sizes = [1, 16], strides = [1, 1]} : vector<1x32xf32> to vector<1x16xf32>
    %921 = vector.broadcast %919 : vector<1x16xf32> to vector<4x16xf32>
    %922 = arith.mulf %914, %921 : vector<4x16xf32>
    %cst_341 = arith.constant dense<0.000000e+00> : vector<4xf32>
    %923 = vector.multi_reduction <add>, %922, %cst_341 [1] : vector<4x16xf32> to vector<4xf32>
    %924 = vector.shape_cast %923 : vector<4xf32> to vector<4x1xf32>
    %925 = vector.broadcast %919 : vector<1x16xf32> to vector<4x16xf32>
    %926 = arith.mulf %915, %925 : vector<4x16xf32>
    %cst_342 = arith.constant dense<0.000000e+00> : vector<4xf32>
    %927 = vector.multi_reduction <add>, %926, %cst_342 [1] : vector<4x16xf32> to vector<4xf32>
    %928 = vector.shape_cast %927 : vector<4xf32> to vector<4x1xf32>
    %929 = vector.broadcast %919 : vector<1x16xf32> to vector<4x16xf32>
    %930 = arith.mulf %916, %929 : vector<4x16xf32>
    %cst_343 = arith.constant dense<0.000000e+00> : vector<4xf32>
    %931 = vector.multi_reduction <add>, %930, %cst_343 [1] : vector<4x16xf32> to vector<4xf32>
    %932 = vector.shape_cast %931 : vector<4xf32> to vector<4x1xf32>
    %933 = vector.broadcast %919 : vector<1x16xf32> to vector<4x16xf32>
    %934 = arith.mulf %917, %933 : vector<4x16xf32>
    %cst_344 = arith.constant dense<0.000000e+00> : vector<4xf32>
    %935 = vector.multi_reduction <add>, %934, %cst_344 [1] : vector<4x16xf32> to vector<4xf32>
    %936 = vector.shape_cast %935 : vector<4xf32> to vector<4x1xf32>
    %937 = vector.broadcast %919 : vector<1x16xf32> to vector<4x16xf32>
    %938 = arith.mulf %918, %937 : vector<4x16xf32>
    %cst_345 = arith.constant dense<0.000000e+00> : vector<4xf32>
    %939 = vector.multi_reduction <add>, %938, %cst_345 [1] : vector<4x16xf32> to vector<4xf32>
    %940 = vector.shape_cast %939 : vector<4xf32> to vector<4x1xf32>
    %941 = tpu.concatenate %924, %928, %932, %936, %940 in 1 : vector<4x1xf32>, vector<4x1xf32>, vector<4x1xf32>, vector<4x1xf32>, vector<4x1xf32> -> vector<4x5xf32>
    %942 = vector.broadcast %920 : vector<1x16xf32> to vector<4x16xf32>
    %943 = arith.mulf %914, %942 : vector<4x16xf32>
    %cst_346 = arith.constant dense<0.000000e+00> : vector<4xf32>
    %944 = vector.multi_reduction <add>, %943, %cst_346 [1] : vector<4x16xf32> to vector<4xf32>
    %945 = vector.shape_cast %944 : vector<4xf32> to vector<4x1xf32>
    %946 = vector.broadcast %920 : vector<1x16xf32> to vector<4x16xf32>
    %947 = arith.mulf %915, %946 : vector<4x16xf32>
    %cst_347 = arith.constant dense<0.000000e+00> : vector<4xf32>
    %948 = vector.multi_reduction <add>, %947, %cst_347 [1] : vector<4x16xf32> to vector<4xf32>
    %949 = vector.shape_cast %948 : vector<4xf32> to vector<4x1xf32>
    %950 = vector.broadcast %920 : vector<1x16xf32> to vector<4x16xf32>
    %951 = arith.mulf %916, %950 : vector<4x16xf32>
    %cst_348 = arith.constant dense<0.000000e+00> : vector<4xf32>
    %952 = vector.multi_reduction <add>, %951, %cst_348 [1] : vector<4x16xf32> to vector<4xf32>
    %953 = vector.shape_cast %952 : vector<4xf32> to vector<4x1xf32>
    %954 = vector.broadcast %920 : vector<1x16xf32> to vector<4x16xf32>
    %955 = arith.mulf %917, %954 : vector<4x16xf32>
    %cst_349 = arith.constant dense<0.000000e+00> : vector<4xf32>
    %956 = vector.multi_reduction <add>, %955, %cst_349 [1] : vector<4x16xf32> to vector<4xf32>
    %957 = vector.shape_cast %956 : vector<4xf32> to vector<4x1xf32>
    %958 = vector.broadcast %920 : vector<1x16xf32> to vector<4x16xf32>
    %959 = arith.mulf %918, %958 : vector<4x16xf32>
    %cst_350 = arith.constant dense<0.000000e+00> : vector<4xf32>
    %960 = vector.multi_reduction <add>, %959, %cst_350 [1] : vector<4x16xf32> to vector<4xf32>
    %961 = vector.shape_cast %960 : vector<4xf32> to vector<4x1xf32>
    %962 = tpu.concatenate %945, %949, %953, %957, %961 in 1 : vector<4x1xf32>, vector<4x1xf32>, vector<4x1xf32>, vector<4x1xf32>, vector<4x1xf32> -> vector<4x5xf32>
    %963 = vector.extract_strided_slice %941 {offsets = [0, 0], sizes = [4, 1], strides = [1, 1]} : vector<4x5xf32> to vector<4x1xf32>
    %964 = vector.broadcast %963 : vector<4x1xf32> to vector<4x5xf32>
    %965 = arith.addf %964, %962 : vector<4x5xf32>
    %cst_351 = arith.constant 0.000000e+00 : f32
    %966 = vector.broadcast %cst_351 : f32 to vector<4x5xf32>
    %967 = arith.cmpf ogt, %965, %966 : vector<4x5xf32>
    %cst_352 = arith.constant 2.000000e-01 : f32
    %968 = vector.broadcast %cst_352 : f32 to vector<4x5xf32>
    %969 = arith.mulf %968, %965 : vector<4x5xf32>
    %970 = arith.select %967, %965, %969 : vector<4x5xi1>, vector<4x5xf32>
    %971 = vector.extract_strided_slice %638 {offsets = [0, 0], sizes = [1, 5], strides = [1, 1]} : vector<5x5xf32> to vector<1x5xf32>
    %cst_353 = arith.constant 0.000000e+00 : f32
    %972 = vector.broadcast %cst_353 : f32 to vector<1x5xf32>
    %973 = arith.cmpf ogt, %971, %972 : vector<1x5xf32>
    %cst_354 = arith.constant -1.000000e+09 : f32
    %974 = vector.shape_cast %973 : vector<1x5xi1> to vector<1x5xi1>
    %975 = vector.broadcast %974 : vector<1x5xi1> to vector<4x5xi1>
    %976 = vector.broadcast %cst_354 : f32 to vector<4x5xf32>
    %977 = arith.select %975, %970, %976 : vector<4x5xi1>, vector<4x5xf32>
    %cst_355 = arith.constant dense<0xFF800000> : vector<4xf32>
    %978 = vector.multi_reduction <maximumf>, %977, %cst_355 [1] : vector<4x5xf32> to vector<4xf32>
    %979 = vector.shape_cast %978 : vector<4xf32> to vector<4x1xf32>
    %980 = vector.broadcast %979 : vector<4x1xf32> to vector<4x5xf32>
    %981 = arith.subf %977, %980 : vector<4x5xf32>
    %982 = math.exp %981 : vector<4x5xf32>
    %cst_356 = arith.constant dense<0.000000e+00> : vector<4xf32>
    %983 = vector.multi_reduction <add>, %982, %cst_356 [1] : vector<4x5xf32> to vector<4xf32>
    %984 = vector.shape_cast %983 : vector<4xf32> to vector<4x1xf32>
    %985 = vector.broadcast %984 : vector<4x1xf32> to vector<4x5xf32>
    %986 = arith.divf %982, %985 : vector<4x5xf32>
    %987 = vector.extract_strided_slice %986 {offsets = [0, 0], sizes = [4, 1], strides = [1, 1]} : vector<4x5xf32> to vector<4x1xf32>
    %988 = vector.broadcast %987 : vector<4x1xf32> to vector<4x16xf32>
    %989 = arith.mulf %988, %914 : vector<4x16xf32>
    %990 = vector.extract_strided_slice %986 {offsets = [0, 1], sizes = [4, 1], strides = [1, 1]} : vector<4x5xf32> to vector<4x1xf32>
    %991 = vector.broadcast %990 : vector<4x1xf32> to vector<4x16xf32>
    %992 = arith.mulf %991, %915 : vector<4x16xf32>
    %993 = arith.addf %989, %992 : vector<4x16xf32>
    %994 = vector.extract_strided_slice %986 {offsets = [0, 2], sizes = [4, 1], strides = [1, 1]} : vector<4x5xf32> to vector<4x1xf32>
    %995 = vector.broadcast %994 : vector<4x1xf32> to vector<4x16xf32>
    %996 = arith.mulf %995, %916 : vector<4x16xf32>
    %997 = arith.addf %993, %996 : vector<4x16xf32>
    %998 = vector.extract_strided_slice %986 {offsets = [0, 3], sizes = [4, 1], strides = [1, 1]} : vector<4x5xf32> to vector<4x1xf32>
    %999 = vector.broadcast %998 : vector<4x1xf32> to vector<4x16xf32>
    %1000 = arith.mulf %999, %917 : vector<4x16xf32>
    %1001 = arith.addf %997, %1000 : vector<4x16xf32>
    %1002 = vector.extract_strided_slice %986 {offsets = [0, 4], sizes = [4, 1], strides = [1, 1]} : vector<4x5xf32> to vector<4x1xf32>
    %1003 = vector.broadcast %1002 : vector<4x1xf32> to vector<4x16xf32>
    %1004 = arith.mulf %1003, %918 : vector<4x16xf32>
    %1005 = arith.addf %1001, %1004 : vector<4x16xf32>
    %1006 = vector.extract_strided_slice %941 {offsets = [0, 1], sizes = [4, 1], strides = [1, 1]} : vector<4x5xf32> to vector<4x1xf32>
    %1007 = vector.broadcast %1006 : vector<4x1xf32> to vector<4x5xf32>
    %1008 = arith.addf %1007, %962 : vector<4x5xf32>
    %cst_357 = arith.constant 0.000000e+00 : f32
    %1009 = vector.broadcast %cst_357 : f32 to vector<4x5xf32>
    %1010 = arith.cmpf ogt, %1008, %1009 : vector<4x5xf32>
    %cst_358 = arith.constant 2.000000e-01 : f32
    %1011 = vector.broadcast %cst_358 : f32 to vector<4x5xf32>
    %1012 = arith.mulf %1011, %1008 : vector<4x5xf32>
    %1013 = arith.select %1010, %1008, %1012 : vector<4x5xi1>, vector<4x5xf32>
    %1014 = vector.extract_strided_slice %638 {offsets = [1, 0], sizes = [1, 5], strides = [1, 1]} : vector<5x5xf32> to vector<1x5xf32>
    %cst_359 = arith.constant 0.000000e+00 : f32
    %1015 = vector.broadcast %cst_359 : f32 to vector<1x5xf32>
    %1016 = arith.cmpf ogt, %1014, %1015 : vector<1x5xf32>
    %cst_360 = arith.constant -1.000000e+09 : f32
    %1017 = vector.shape_cast %1016 : vector<1x5xi1> to vector<1x5xi1>
    %1018 = vector.broadcast %1017 : vector<1x5xi1> to vector<4x5xi1>
    %1019 = vector.broadcast %cst_360 : f32 to vector<4x5xf32>
    %1020 = arith.select %1018, %1013, %1019 : vector<4x5xi1>, vector<4x5xf32>
    %cst_361 = arith.constant dense<0xFF800000> : vector<4xf32>
    %1021 = vector.multi_reduction <maximumf>, %1020, %cst_361 [1] : vector<4x5xf32> to vector<4xf32>
    %1022 = vector.shape_cast %1021 : vector<4xf32> to vector<4x1xf32>
    %1023 = vector.broadcast %1022 : vector<4x1xf32> to vector<4x5xf32>
    %1024 = arith.subf %1020, %1023 : vector<4x5xf32>
    %1025 = math.exp %1024 : vector<4x5xf32>
    %cst_362 = arith.constant dense<0.000000e+00> : vector<4xf32>
    %1026 = vector.multi_reduction <add>, %1025, %cst_362 [1] : vector<4x5xf32> to vector<4xf32>
    %1027 = vector.shape_cast %1026 : vector<4xf32> to vector<4x1xf32>
    %1028 = vector.broadcast %1027 : vector<4x1xf32> to vector<4x5xf32>
    %1029 = arith.divf %1025, %1028 : vector<4x5xf32>
    %1030 = vector.extract_strided_slice %1029 {offsets = [0, 0], sizes = [4, 1], strides = [1, 1]} : vector<4x5xf32> to vector<4x1xf32>
    %1031 = vector.broadcast %1030 : vector<4x1xf32> to vector<4x16xf32>
    %1032 = arith.mulf %1031, %914 : vector<4x16xf32>
    %1033 = vector.extract_strided_slice %1029 {offsets = [0, 1], sizes = [4, 1], strides = [1, 1]} : vector<4x5xf32> to vector<4x1xf32>
    %1034 = vector.broadcast %1033 : vector<4x1xf32> to vector<4x16xf32>
    %1035 = arith.mulf %1034, %915 : vector<4x16xf32>
    %1036 = arith.addf %1032, %1035 : vector<4x16xf32>
    %1037 = vector.extract_strided_slice %1029 {offsets = [0, 2], sizes = [4, 1], strides = [1, 1]} : vector<4x5xf32> to vector<4x1xf32>
    %1038 = vector.broadcast %1037 : vector<4x1xf32> to vector<4x16xf32>
    %1039 = arith.mulf %1038, %916 : vector<4x16xf32>
    %1040 = arith.addf %1036, %1039 : vector<4x16xf32>
    %1041 = vector.extract_strided_slice %1029 {offsets = [0, 3], sizes = [4, 1], strides = [1, 1]} : vector<4x5xf32> to vector<4x1xf32>
    %1042 = vector.broadcast %1041 : vector<4x1xf32> to vector<4x16xf32>
    %1043 = arith.mulf %1042, %917 : vector<4x16xf32>
    %1044 = arith.addf %1040, %1043 : vector<4x16xf32>
    %1045 = vector.extract_strided_slice %1029 {offsets = [0, 4], sizes = [4, 1], strides = [1, 1]} : vector<4x5xf32> to vector<4x1xf32>
    %1046 = vector.broadcast %1045 : vector<4x1xf32> to vector<4x16xf32>
    %1047 = arith.mulf %1046, %918 : vector<4x16xf32>
    %1048 = arith.addf %1044, %1047 : vector<4x16xf32>
    %1049 = vector.extract_strided_slice %941 {offsets = [0, 2], sizes = [4, 1], strides = [1, 1]} : vector<4x5xf32> to vector<4x1xf32>
    %1050 = vector.broadcast %1049 : vector<4x1xf32> to vector<4x5xf32>
    %1051 = arith.addf %1050, %962 : vector<4x5xf32>
    %cst_363 = arith.constant 0.000000e+00 : f32
    %1052 = vector.broadcast %cst_363 : f32 to vector<4x5xf32>
    %1053 = arith.cmpf ogt, %1051, %1052 : vector<4x5xf32>
    %cst_364 = arith.constant 2.000000e-01 : f32
    %1054 = vector.broadcast %cst_364 : f32 to vector<4x5xf32>
    %1055 = arith.mulf %1054, %1051 : vector<4x5xf32>
    %1056 = arith.select %1053, %1051, %1055 : vector<4x5xi1>, vector<4x5xf32>
    %1057 = vector.extract_strided_slice %638 {offsets = [2, 0], sizes = [1, 5], strides = [1, 1]} : vector<5x5xf32> to vector<1x5xf32>
    %cst_365 = arith.constant 0.000000e+00 : f32
    %1058 = vector.broadcast %cst_365 : f32 to vector<1x5xf32>
    %1059 = arith.cmpf ogt, %1057, %1058 : vector<1x5xf32>
    %cst_366 = arith.constant -1.000000e+09 : f32
    %1060 = vector.shape_cast %1059 : vector<1x5xi1> to vector<1x5xi1>
    %1061 = vector.broadcast %1060 : vector<1x5xi1> to vector<4x5xi1>
    %1062 = vector.broadcast %cst_366 : f32 to vector<4x5xf32>
    %1063 = arith.select %1061, %1056, %1062 : vector<4x5xi1>, vector<4x5xf32>
    %cst_367 = arith.constant dense<0xFF800000> : vector<4xf32>
    %1064 = vector.multi_reduction <maximumf>, %1063, %cst_367 [1] : vector<4x5xf32> to vector<4xf32>
    %1065 = vector.shape_cast %1064 : vector<4xf32> to vector<4x1xf32>
    %1066 = vector.broadcast %1065 : vector<4x1xf32> to vector<4x5xf32>
    %1067 = arith.subf %1063, %1066 : vector<4x5xf32>
    %1068 = math.exp %1067 : vector<4x5xf32>
    %cst_368 = arith.constant dense<0.000000e+00> : vector<4xf32>
    %1069 = vector.multi_reduction <add>, %1068, %cst_368 [1] : vector<4x5xf32> to vector<4xf32>
    %1070 = vector.shape_cast %1069 : vector<4xf32> to vector<4x1xf32>
    %1071 = vector.broadcast %1070 : vector<4x1xf32> to vector<4x5xf32>
    %1072 = arith.divf %1068, %1071 : vector<4x5xf32>
    %1073 = vector.extract_strided_slice %1072 {offsets = [0, 0], sizes = [4, 1], strides = [1, 1]} : vector<4x5xf32> to vector<4x1xf32>
    %1074 = vector.broadcast %1073 : vector<4x1xf32> to vector<4x16xf32>
    %1075 = arith.mulf %1074, %914 : vector<4x16xf32>
    %1076 = vector.extract_strided_slice %1072 {offsets = [0, 1], sizes = [4, 1], strides = [1, 1]} : vector<4x5xf32> to vector<4x1xf32>
    %1077 = vector.broadcast %1076 : vector<4x1xf32> to vector<4x16xf32>
    %1078 = arith.mulf %1077, %915 : vector<4x16xf32>
    %1079 = arith.addf %1075, %1078 : vector<4x16xf32>
    %1080 = vector.extract_strided_slice %1072 {offsets = [0, 2], sizes = [4, 1], strides = [1, 1]} : vector<4x5xf32> to vector<4x1xf32>
    %1081 = vector.broadcast %1080 : vector<4x1xf32> to vector<4x16xf32>
    %1082 = arith.mulf %1081, %916 : vector<4x16xf32>
    %1083 = arith.addf %1079, %1082 : vector<4x16xf32>
    %1084 = vector.extract_strided_slice %1072 {offsets = [0, 3], sizes = [4, 1], strides = [1, 1]} : vector<4x5xf32> to vector<4x1xf32>
    %1085 = vector.broadcast %1084 : vector<4x1xf32> to vector<4x16xf32>
    %1086 = arith.mulf %1085, %917 : vector<4x16xf32>
    %1087 = arith.addf %1083, %1086 : vector<4x16xf32>
    %1088 = vector.extract_strided_slice %1072 {offsets = [0, 4], sizes = [4, 1], strides = [1, 1]} : vector<4x5xf32> to vector<4x1xf32>
    %1089 = vector.broadcast %1088 : vector<4x1xf32> to vector<4x16xf32>
    %1090 = arith.mulf %1089, %918 : vector<4x16xf32>
    %1091 = arith.addf %1087, %1090 : vector<4x16xf32>
    %1092 = vector.extract_strided_slice %941 {offsets = [0, 3], sizes = [4, 1], strides = [1, 1]} : vector<4x5xf32> to vector<4x1xf32>
    %1093 = vector.broadcast %1092 : vector<4x1xf32> to vector<4x5xf32>
    %1094 = arith.addf %1093, %962 : vector<4x5xf32>
    %cst_369 = arith.constant 0.000000e+00 : f32
    %1095 = vector.broadcast %cst_369 : f32 to vector<4x5xf32>
    %1096 = arith.cmpf ogt, %1094, %1095 : vector<4x5xf32>
    %cst_370 = arith.constant 2.000000e-01 : f32
    %1097 = vector.broadcast %cst_370 : f32 to vector<4x5xf32>
    %1098 = arith.mulf %1097, %1094 : vector<4x5xf32>
    %1099 = arith.select %1096, %1094, %1098 : vector<4x5xi1>, vector<4x5xf32>
    %1100 = vector.extract_strided_slice %638 {offsets = [3, 0], sizes = [1, 5], strides = [1, 1]} : vector<5x5xf32> to vector<1x5xf32>
    %cst_371 = arith.constant 0.000000e+00 : f32
    %1101 = vector.broadcast %cst_371 : f32 to vector<1x5xf32>
    %1102 = arith.cmpf ogt, %1100, %1101 : vector<1x5xf32>
    %cst_372 = arith.constant -1.000000e+09 : f32
    %1103 = vector.shape_cast %1102 : vector<1x5xi1> to vector<1x5xi1>
    %1104 = vector.broadcast %1103 : vector<1x5xi1> to vector<4x5xi1>
    %1105 = vector.broadcast %cst_372 : f32 to vector<4x5xf32>
    %1106 = arith.select %1104, %1099, %1105 : vector<4x5xi1>, vector<4x5xf32>
    %cst_373 = arith.constant dense<0xFF800000> : vector<4xf32>
    %1107 = vector.multi_reduction <maximumf>, %1106, %cst_373 [1] : vector<4x5xf32> to vector<4xf32>
    %1108 = vector.shape_cast %1107 : vector<4xf32> to vector<4x1xf32>
    %1109 = vector.broadcast %1108 : vector<4x1xf32> to vector<4x5xf32>
    %1110 = arith.subf %1106, %1109 : vector<4x5xf32>
    %1111 = math.exp %1110 : vector<4x5xf32>
    %cst_374 = arith.constant dense<0.000000e+00> : vector<4xf32>
    %1112 = vector.multi_reduction <add>, %1111, %cst_374 [1] : vector<4x5xf32> to vector<4xf32>
    %1113 = vector.shape_cast %1112 : vector<4xf32> to vector<4x1xf32>
    %1114 = vector.broadcast %1113 : vector<4x1xf32> to vector<4x5xf32>
    %1115 = arith.divf %1111, %1114 : vector<4x5xf32>
    %1116 = vector.extract_strided_slice %1115 {offsets = [0, 0], sizes = [4, 1], strides = [1, 1]} : vector<4x5xf32> to vector<4x1xf32>
    %1117 = vector.broadcast %1116 : vector<4x1xf32> to vector<4x16xf32>
    %1118 = arith.mulf %1117, %914 : vector<4x16xf32>
    %1119 = vector.extract_strided_slice %1115 {offsets = [0, 1], sizes = [4, 1], strides = [1, 1]} : vector<4x5xf32> to vector<4x1xf32>
    %1120 = vector.broadcast %1119 : vector<4x1xf32> to vector<4x16xf32>
    %1121 = arith.mulf %1120, %915 : vector<4x16xf32>
    %1122 = arith.addf %1118, %1121 : vector<4x16xf32>
    %1123 = vector.extract_strided_slice %1115 {offsets = [0, 2], sizes = [4, 1], strides = [1, 1]} : vector<4x5xf32> to vector<4x1xf32>
    %1124 = vector.broadcast %1123 : vector<4x1xf32> to vector<4x16xf32>
    %1125 = arith.mulf %1124, %916 : vector<4x16xf32>
    %1126 = arith.addf %1122, %1125 : vector<4x16xf32>
    %1127 = vector.extract_strided_slice %1115 {offsets = [0, 3], sizes = [4, 1], strides = [1, 1]} : vector<4x5xf32> to vector<4x1xf32>
    %1128 = vector.broadcast %1127 : vector<4x1xf32> to vector<4x16xf32>
    %1129 = arith.mulf %1128, %917 : vector<4x16xf32>
    %1130 = arith.addf %1126, %1129 : vector<4x16xf32>
    %1131 = vector.extract_strided_slice %1115 {offsets = [0, 4], sizes = [4, 1], strides = [1, 1]} : vector<4x5xf32> to vector<4x1xf32>
    %1132 = vector.broadcast %1131 : vector<4x1xf32> to vector<4x16xf32>
    %1133 = arith.mulf %1132, %918 : vector<4x16xf32>
    %1134 = arith.addf %1130, %1133 : vector<4x16xf32>
    %1135 = vector.extract_strided_slice %941 {offsets = [0, 4], sizes = [4, 1], strides = [1, 1]} : vector<4x5xf32> to vector<4x1xf32>
    %1136 = vector.broadcast %1135 : vector<4x1xf32> to vector<4x5xf32>
    %1137 = arith.addf %1136, %962 : vector<4x5xf32>
    %cst_375 = arith.constant 0.000000e+00 : f32
    %1138 = vector.broadcast %cst_375 : f32 to vector<4x5xf32>
    %1139 = arith.cmpf ogt, %1137, %1138 : vector<4x5xf32>
    %cst_376 = arith.constant 2.000000e-01 : f32
    %1140 = vector.broadcast %cst_376 : f32 to vector<4x5xf32>
    %1141 = arith.mulf %1140, %1137 : vector<4x5xf32>
    %1142 = arith.select %1139, %1137, %1141 : vector<4x5xi1>, vector<4x5xf32>
    %1143 = vector.extract_strided_slice %638 {offsets = [4, 0], sizes = [1, 5], strides = [1, 1]} : vector<5x5xf32> to vector<1x5xf32>
    %cst_377 = arith.constant 0.000000e+00 : f32
    %1144 = vector.broadcast %cst_377 : f32 to vector<1x5xf32>
    %1145 = arith.cmpf ogt, %1143, %1144 : vector<1x5xf32>
    %cst_378 = arith.constant -1.000000e+09 : f32
    %1146 = vector.shape_cast %1145 : vector<1x5xi1> to vector<1x5xi1>
    %1147 = vector.broadcast %1146 : vector<1x5xi1> to vector<4x5xi1>
    %1148 = vector.broadcast %cst_378 : f32 to vector<4x5xf32>
    %1149 = arith.select %1147, %1142, %1148 : vector<4x5xi1>, vector<4x5xf32>
    %cst_379 = arith.constant dense<0xFF800000> : vector<4xf32>
    %1150 = vector.multi_reduction <maximumf>, %1149, %cst_379 [1] : vector<4x5xf32> to vector<4xf32>
    %1151 = vector.shape_cast %1150 : vector<4xf32> to vector<4x1xf32>
    %1152 = vector.broadcast %1151 : vector<4x1xf32> to vector<4x5xf32>
    %1153 = arith.subf %1149, %1152 : vector<4x5xf32>
    %1154 = math.exp %1153 : vector<4x5xf32>
    %cst_380 = arith.constant dense<0.000000e+00> : vector<4xf32>
    %1155 = vector.multi_reduction <add>, %1154, %cst_380 [1] : vector<4x5xf32> to vector<4xf32>
    %1156 = vector.shape_cast %1155 : vector<4xf32> to vector<4x1xf32>
    %1157 = vector.broadcast %1156 : vector<4x1xf32> to vector<4x5xf32>
    %1158 = arith.divf %1154, %1157 : vector<4x5xf32>
    %1159 = vector.extract_strided_slice %1158 {offsets = [0, 0], sizes = [4, 1], strides = [1, 1]} : vector<4x5xf32> to vector<4x1xf32>
    %1160 = vector.broadcast %1159 : vector<4x1xf32> to vector<4x16xf32>
    %1161 = arith.mulf %1160, %914 : vector<4x16xf32>
    %1162 = vector.extract_strided_slice %1158 {offsets = [0, 1], sizes = [4, 1], strides = [1, 1]} : vector<4x5xf32> to vector<4x1xf32>
    %1163 = vector.broadcast %1162 : vector<4x1xf32> to vector<4x16xf32>
    %1164 = arith.mulf %1163, %915 : vector<4x16xf32>
    %1165 = arith.addf %1161, %1164 : vector<4x16xf32>
    %1166 = vector.extract_strided_slice %1158 {offsets = [0, 2], sizes = [4, 1], strides = [1, 1]} : vector<4x5xf32> to vector<4x1xf32>
    %1167 = vector.broadcast %1166 : vector<4x1xf32> to vector<4x16xf32>
    %1168 = arith.mulf %1167, %916 : vector<4x16xf32>
    %1169 = arith.addf %1165, %1168 : vector<4x16xf32>
    %1170 = vector.extract_strided_slice %1158 {offsets = [0, 3], sizes = [4, 1], strides = [1, 1]} : vector<4x5xf32> to vector<4x1xf32>
    %1171 = vector.broadcast %1170 : vector<4x1xf32> to vector<4x16xf32>
    %1172 = arith.mulf %1171, %917 : vector<4x16xf32>
    %1173 = arith.addf %1169, %1172 : vector<4x16xf32>
    %1174 = vector.extract_strided_slice %1158 {offsets = [0, 4], sizes = [4, 1], strides = [1, 1]} : vector<4x5xf32> to vector<4x1xf32>
    %1175 = vector.broadcast %1174 : vector<4x1xf32> to vector<4x16xf32>
    %1176 = arith.mulf %1175, %918 : vector<4x16xf32>
    %1177 = arith.addf %1173, %1176 : vector<4x16xf32>
    %1178 = tpu.concatenate %741, %1005 in 1 : vector<4x16xf32>, vector<4x16xf32> -> vector<4x32xf32>
    %1179 = arith.addf %1178, %644 : vector<4x32xf32>
    %1180 = tpu.concatenate %784, %1048 in 1 : vector<4x16xf32>, vector<4x16xf32> -> vector<4x32xf32>
    %1181 = arith.addf %1180, %644 : vector<4x32xf32>
    %1182 = tpu.concatenate %827, %1091 in 1 : vector<4x16xf32>, vector<4x16xf32> -> vector<4x32xf32>
    %1183 = arith.addf %1182, %644 : vector<4x32xf32>
    %1184 = tpu.concatenate %870, %1134 in 1 : vector<4x16xf32>, vector<4x16xf32> -> vector<4x32xf32>
    %1185 = arith.addf %1184, %644 : vector<4x32xf32>
    %1186 = tpu.concatenate %913, %1177 in 1 : vector<4x16xf32>, vector<4x16xf32> -> vector<4x32xf32>
    %1187 = arith.addf %1186, %644 : vector<4x32xf32>
    %1188 = tpu.concatenate %1179, %1181, %1183, %1185, %1187 in 1 : vector<4x32xf32>, vector<4x32xf32>, vector<4x32xf32>, vector<4x32xf32>, vector<4x32xf32> -> vector<4x160xf32>
    %c0_381 = arith.constant 0 : index
    %c0_382 = arith.constant 0 : index
    %1189 = vector.load %arg33[%c0_381, %c0_382] : memref<4x160xf32, #tpu.memory_space<vmem>>, vector<4x160xf32>
    tpu.vector_store %arg33[%c0_381, %c0_382], %1188 {strides = array<i32>} : memref<4x160xf32, #tpu.memory_space<vmem>>, vector<4x160xf32>,
    %1190 = tpu.concatenate %633, %1179 in 1 : vector<4x48xf32>, vector<4x32xf32> -> vector<4x80xf32>
    %c0_383 = arith.constant 0 : index
    %c0_384 = arith.constant 0 : index
    %c0_385 = arith.constant 0 : index
    %1191 = vector.load %arg31[%c0_383, %c0_384, %c0_385] : memref<5x80x8xf32, #tpu.memory_space<vmem>>, vector<1x80x8xf32>
    %1192 = vector.shape_cast %1191 : vector<1x80x8xf32> to vector<80x8xf32>
    %cst_386 = arith.constant dense<0.000000e+00> : vector<4x8xf32>
    %1193 = tpu.matmul %1190, %1192, %cst_386 {dimension_numbers = #tpu.dot_dimension_numbers<[1], [0], [0], [1], [0, 0, 1, 1], [], []>} : vector<4x80xf32>, vector<80x8xf32>, vector<4x8xf32> -> vector<4x8xf32>
    %c0_387 = arith.constant 0 : index
    %c0_388 = arith.constant 0 : index
    %c0_389 = arith.constant 0 : index
    %1194 = vector.load %arg32[%c0_387, %c0_388, %c0_389] : memref<5x1x8xf32, #tpu.memory_space<vmem>>, vector<1x1x8xf32>
    %1195 = vector.shape_cast %1194 : vector<1x1x8xf32> to vector<1x8xf32>
    %1196 = vector.broadcast %1195 : vector<1x8xf32> to vector<4x8xf32>
    %1197 = arith.addf %1193, %1196 : vector<4x8xf32>
    %1198 = tpu.concatenate %634, %1181 in 1 : vector<4x48xf32>, vector<4x32xf32> -> vector<4x80xf32>
    %c1_390 = arith.constant 1 : index
    %c0_391 = arith.constant 0 : index
    %c0_392 = arith.constant 0 : index
    %1199 = vector.load %arg31[%c1_390, %c0_391, %c0_392] : memref<5x80x8xf32, #tpu.memory_space<vmem>>, vector<1x80x8xf32>
    %1200 = vector.shape_cast %1199 : vector<1x80x8xf32> to vector<80x8xf32>
    %cst_393 = arith.constant dense<0.000000e+00> : vector<4x8xf32>
    %1201 = tpu.matmul %1198, %1200, %cst_393 {dimension_numbers = #tpu.dot_dimension_numbers<[1], [0], [0], [1], [0, 0, 1, 1], [], []>} : vector<4x80xf32>, vector<80x8xf32>, vector<4x8xf32> -> vector<4x8xf32>
    %c1_394 = arith.constant 1 : index
    %c0_395 = arith.constant 0 : index
    %c0_396 = arith.constant 0 : index
    %1202 = vector.load %arg32[%c1_394, %c0_395, %c0_396] : memref<5x1x8xf32, #tpu.memory_space<vmem>>, vector<1x1x8xf32>
    %1203 = vector.shape_cast %1202 : vector<1x1x8xf32> to vector<1x8xf32>
    %1204 = vector.broadcast %1203 : vector<1x8xf32> to vector<4x8xf32>
    %1205 = arith.addf %1201, %1204 : vector<4x8xf32>
    %1206 = tpu.concatenate %635, %1183 in 1 : vector<4x48xf32>, vector<4x32xf32> -> vector<4x80xf32>
    %c2_397 = arith.constant 2 : index
    %c0_398 = arith.constant 0 : index
    %c0_399 = arith.constant 0 : index
    %1207 = vector.load %arg31[%c2_397, %c0_398, %c0_399] : memref<5x80x8xf32, #tpu.memory_space<vmem>>, vector<1x80x8xf32>
    %1208 = vector.shape_cast %1207 : vector<1x80x8xf32> to vector<80x8xf32>
    %cst_400 = arith.constant dense<0.000000e+00> : vector<4x8xf32>
    %1209 = tpu.matmul %1206, %1208, %cst_400 {dimension_numbers = #tpu.dot_dimension_numbers<[1], [0], [0], [1], [0, 0, 1, 1], [], []>} : vector<4x80xf32>, vector<80x8xf32>, vector<4x8xf32> -> vector<4x8xf32>
    %c2_401 = arith.constant 2 : index
    %c0_402 = arith.constant 0 : index
    %c0_403 = arith.constant 0 : index
    %1210 = vector.load %arg32[%c2_401, %c0_402, %c0_403] : memref<5x1x8xf32, #tpu.memory_space<vmem>>, vector<1x1x8xf32>
    %1211 = vector.shape_cast %1210 : vector<1x1x8xf32> to vector<1x8xf32>
    %1212 = vector.broadcast %1211 : vector<1x8xf32> to vector<4x8xf32>
    %1213 = arith.addf %1209, %1212 : vector<4x8xf32>
    %1214 = tpu.concatenate %636, %1185 in 1 : vector<4x48xf32>, vector<4x32xf32> -> vector<4x80xf32>
    %c3_404 = arith.constant 3 : index
    %c0_405 = arith.constant 0 : index
    %c0_406 = arith.constant 0 : index
    %1215 = vector.load %arg31[%c3_404, %c0_405, %c0_406] : memref<5x80x8xf32, #tpu.memory_space<vmem>>, vector<1x80x8xf32>
    %1216 = vector.shape_cast %1215 : vector<1x80x8xf32> to vector<80x8xf32>
    %cst_407 = arith.constant dense<0.000000e+00> : vector<4x8xf32>
    %1217 = tpu.matmul %1214, %1216, %cst_407 {dimension_numbers = #tpu.dot_dimension_numbers<[1], [0], [0], [1], [0, 0, 1, 1], [], []>} : vector<4x80xf32>, vector<80x8xf32>, vector<4x8xf32> -> vector<4x8xf32>
    %c3_408 = arith.constant 3 : index
    %c0_409 = arith.constant 0 : index
    %c0_410 = arith.constant 0 : index
    %1218 = vector.load %arg32[%c3_408, %c0_409, %c0_410] : memref<5x1x8xf32, #tpu.memory_space<vmem>>, vector<1x1x8xf32>
    %1219 = vector.shape_cast %1218 : vector<1x1x8xf32> to vector<1x8xf32>
    %1220 = vector.broadcast %1219 : vector<1x8xf32> to vector<4x8xf32>
    %1221 = arith.addf %1217, %1220 : vector<4x8xf32>
    %1222 = tpu.concatenate %637, %1187 in 1 : vector<4x48xf32>, vector<4x32xf32> -> vector<4x80xf32>
    %c4_411 = arith.constant 4 : index
    %c0_412 = arith.constant 0 : index
    %c0_413 = arith.constant 0 : index
    %1223 = vector.load %arg31[%c4_411, %c0_412, %c0_413] : memref<5x80x8xf32, #tpu.memory_space<vmem>>, vector<1x80x8xf32>
    %1224 = vector.shape_cast %1223 : vector<1x80x8xf32> to vector<80x8xf32>
    %cst_414 = arith.constant dense<0.000000e+00> : vector<4x8xf32>
    %1225 = tpu.matmul %1222, %1224, %cst_414 {dimension_numbers = #tpu.dot_dimension_numbers<[1], [0], [0], [1], [0, 0, 1, 1], [], []>} : vector<4x80xf32>, vector<80x8xf32>, vector<4x8xf32> -> vector<4x8xf32>
    %c4_415 = arith.constant 4 : index
    %c0_416 = arith.constant 0 : index
    %c0_417 = arith.constant 0 : index
    %1226 = vector.load %arg32[%c4_415, %c0_416, %c0_417] : memref<5x1x8xf32, #tpu.memory_space<vmem>>, vector<1x1x8xf32>
    %1227 = vector.shape_cast %1226 : vector<1x1x8xf32> to vector<1x8xf32>
    %1228 = vector.broadcast %1227 : vector<1x8xf32> to vector<4x8xf32>
    %1229 = arith.addf %1225, %1228 : vector<4x8xf32>
    %1230 = tpu.concatenate %1197, %1205, %1213, %1221, %1229 in 1 : vector<4x8xf32>, vector<4x8xf32>, vector<4x8xf32>, vector<4x8xf32>, vector<4x8xf32> -> vector<4x40xf32>
    %c0_418 = arith.constant 0 : index
    %c0_419 = arith.constant 0 : index
    %1231 = vector.load %arg34[%c0_418, %c0_419] : memref<4x40xf32, #tpu.memory_space<vmem>>, vector<4x40xf32>
    tpu.vector_store %arg34[%c0_418, %c0_419], %1230 {strides = array<i32>} : memref<4x40xf32, #tpu.memory_space<vmem>>, vector<4x40xf32>,
    return
  }
}

</mosaic_0001>

<bundles_post_ra>
// kernel: forward.1
= control target key start
LH: loop header
LB: loop body
LE: loop exit
PB: predicated region body
PF: predicated region fallthrough
CT: control target
= control target key end

     0   :  { %v7685_v0 = vmov 0.0|0.0   ;;  %s7686_s3 = smov 7   ;;  %vm7687_vm0 = vmmov 0   ;;  %v7688_v1 = vmov 0.0   ;;  %s7689_s10 = smov 9   ;;  %vm151_vm1 = vcmask 130048   ;;  %s9016_s0 = inlined_call_operand.smem [shape: u32[35], index: -1, kind: input, shape index: {}] }
   0x1   :  { %7148 = vmatprep.subr.bf16.mxu0 %v7685_v0  ;;  %s6136_s6 = sld [smem:[%s9016_s0 + %s7686_s3]]   ;;  %6576 = vmatprep.mubr.msk.f32.mxu0 %vm7687_vm0, %v7688_v1  ;;  %s7690_s14 = smov 8   ;;  %vm237_vm2 = vcmask 261120   ;;  %vm378_vm3 = vcmask 64512   ;;  %vm452_vm4 = vcmask 60416   ;;  %vm4369_vm5 = vcmask 392192  }
   0x2   :  { %s1_s9 = sld [smem:[%s9016_s0]]   ;;  %7157 = vmatprep.subr.bf16.mxu1 %v7685_v0  ;;  %6608 = vmatprep.mubr.msk.f32.mxu1 %vm7687_vm0, %v7688_v1  ;;  %s7691_s18 = smov 11   ;;  %vm4446_vm6 = vcmask 1043456   ;;  %vm4454_vm7 = vcmask 912384   ;;  %vm4915_vm8 = vcmask 125952   ;;  %vm4935_vm9 = vcmask 7168  }
   0x3   :  { %s6138_s13 = sld [smem:[%s9016_s0 + %s7689_s10]]   ;;  %s7692_s22 = smov 1   ;;  %vm4937_vm10 = vcmask 15360   ;;  %vm4939_vm11 = vcmask 23552   ;;  %vm4941_vm12 = vcmask 31744  }
   0x4   :  { %s6137_s17 = sld [smem:[%s9016_s0 + %s7690_s14]]   ;;  %s7693_s26 = smov 15  }
   0x5   :  { %s7765_s21 = sld [smem:[%s9016_s0 + %s7691_s18]]   ;;  %s7694_s30 = smov 3  }
   0x6   :  { %s7770_s25 = sld [smem:[%s9016_s0 + %s7692_s22]]   ;;  %s7695_s4 = smov 12  }
   0x7   :  { %v142_v2 = vld [vmem:[%s6136_s6] sm:$0xff]  ;;  %v143_v3 = vld [vmem:[%s6136_s6 + $0x8] sm:$0xff]  ;;  %s7790_s29 = sld [smem:[%s9016_s0 + %s7693_s26]]   ;;  %s7696_s8 = smov 2  }
   0x8   :  { %v7149_v4 = vpack.c.bf16 %v143_v3, %v142_v2  ;;  %v141_v7 = vld [vmem:[%s1_s9] sm:$0xf]  ;;  %s7795_s3 = sld [smem:[%s9016_s0 + %s7694_s30]]   ;;  %s7697_s12 = smov 16  }
   0x9   :  { %v226_v5 = vld [vmem:[%s6138_s13] sm:$0xff]  ;;  %v227_v6 = vld [vmem:[%s6138_s13 + $0x8] sm:$0xff]  ;;  %v228_v9 = vld [vmem:[%s6138_s13 + $0x10] sm:$0xff]  ;;  %s7812_s7 = sld [smem:[%s9016_s0 + %s7695_s4]]   ;;  %s7699_s22 = smov 17  }
   0xa   :  { %7150 = vmatpush3.bf16.msra.mxu0 %v7149_v4  ;;  %v7152_v8 = vpack.c.bf16 %v227_v6, %v226_v5  ;;  %v229_v10 = vld [vmem:[%s6138_s13 + $0x18] sm:$0xff]  ;;  %v6164_v12 = vld [vmem:[%s6137_s17] ss:$0 sm:$0xff]  ;;  %s7824_s11 = sld [smem:[%s9016_s0 + %s7696_s8]]   ;;  %s7698_s17 = smov 18  }
   0xb   :  { %7151 = vmatprep.subr.bf16.mxu0 %v7685_v0  ;;  %v7155_v11 = vpack.c.bf16 %v229_v10, %v228_v9  ;;  %v7773_v17 = vld [vmem:[%s7765_s21] sm:$0xff]  ;;  %s7835_s16 = sld [smem:[%s9016_s0 + %s7697_s12]]   ;;  %s7700_s27 = smov 20  }
   0xc   :  { %v7780_v18 = vld [vmem:[%s7770_s25] sm:$0xf]  ;;  %s6147_s20 = sld [smem:[%s9016_s0 + %s7698_s17]]   ;;  %s7701_s2 = smov 32  }
   0xd   :  { %6577 = vmatmul.mubr.msk.f32.vlgmr.msra.gmra.mrb[0].mxu0 %vm151_vm1, %v141_v7  ;;  %v7798_v19 = vld [vmem:[%s7790_s29] sm:$0xff]  ;;  %s6146_s26 = sld [smem:[%s9016_s0 + %s7699_s22]]   ;;  %s7702_s4 = smov 13  }
   0xe   :  { %7153 = vmatpush3.bf16.msra.mxu0 %v7152_v8  ;;  %6587 = vmatprep.mubr.msk.f32.mxu0 %vm7687_vm0, %v7688_v1  ;;  %v7801_v20 = vld [vmem:[%s7795_s3] sm:$0xf]  ;;  %s6149_s1 = sld [smem:[%s9016_s0 + %s7700_s27]]   ;;  %s7703_s9 = smov 14  }
   0xf   :  { %7154 = vmatprep.subr.bf16.mxu0 %v7685_v0  ;;  %v7817_v23 = vld [vmem:[%s7812_s7] ss:$0 sm:$0xff]  ;;  %s7881_s8 = sld [smem:[%s9016_s0 + %s7702_s4]]   ;;  %s7704_s17 = smov 4  }
  0x10   :  { %v7827_v28 = vld [vmem:[%s7824_s11] sm:$0xf]  ;;  %s7886_s15 = sld [smem:[%s9016_s0 + %s7703_s9]]   ;;  %s7705_s22 = smov 5  }
  0x11   :  { %558 = vrot.lane.b32.xlu1 %v7827_v28, %s7690_s14  ;;  %v7838_v34 = vld [vmem:[%s7835_s16] ss:$0 sm:$0xff]  ;;  %v549_v8 = vsub.f32 1.0, %v7827_v28  ;;  %s7706_s27 = smov 21   ;;  %s7707_s4 = smov 19  }
  0x12   :  { %7156 = vmatpush3.bf16.msra.mxu0 %v7155_v11  ;;  %v350_v41 = vld [vmem:[%s6147_s20] sm:$0xff]  ;;  %v351_v42 = vld [vmem:[%s6147_s20 + $0x8] sm:$0xff]  ;;  %v352_v43 = vld [vmem:[%s6147_s20 + $0x10] sm:$0xff]  ;;  %s7950_s9 = sld [smem:[%s9016_s0 + %s7707_s4]]   ;;  %s7708_s10 = smov 96  }
  0x13   :  { %6590 = vmatprep.subr.mxu0 %v7688_v1  ;;  %v7854_v44 = vpack.c.bf16 %v351_v42, %v350_v41  ;;  %v353_v45 = vld [vmem:[%s6147_s20 + $0x18] sm:$0xff]  ;;  %v348_v46 = vld [vmem:[%s6146_s26] sm:$0xff]  ;;  %v349_v47 = vld [vmem:[%s6146_s26 + $0x8] sm:$0xff]  ;;  %s7900_s20 = sld [smem:[%s9016_s0 + %s7704_s17]]   ;;  %s7709_s13 = smov 22  }
  0x14   :  { %v7856_v48 = vpack.c.bf16 %v349_v47, %v348_v46  ;;  %v7859_v50 = vpack.c.bf16 %v353_v45, %v352_v43  ;;  %v361_v51 = vld [vmem:[%s6149_s1] sm:$0xff]  ;;  %v362_v52 = vld [vmem:[%s6149_s1 + $0x8] sm:$0xff]  ;;  %s7905_s26 = sld [smem:[%s9016_s0 + %s7705_s22]]   ;;  %s7713_s24 = smov 24  }
  0x15   :  { %7159 = vmatpush3.bf16.msra.mxu1 %v7854_v44  ;;  %v7867_v54 = vpack.c.bf16 %v362_v52, %v361_v51  ;;  %v7889_v55 = vld [vmem:[%s7881_s8] ss:$0 sm:$0xff]  ;;  %s6150_s1 = sld [smem:[%s9016_s0 + %s7706_s27]]   ;;  %v6182_v51 = vld [vmem:[%s7824_s11 + $0x4] sm:$0xf]  ;;  %s7714_s30 = smov 25  }
  0x16   :  { %7160 = vmatprep.subr.bf16.mxu1 %v7685_v0  ;;  %v465_v56 = vmul.f32 %v7889_v55, %v7801_v20  ;;  %v7894_v57 = vld [vmem:[%s7886_s15] ss:$0 sm:$0xff]  ;;  %s7994_s19 = sld [smem:[%s9016_s0 + %s7709_s13]]   ;;  %s7715_s6 = smov 26  }
  0x17   :  { %s6153_s28 = sld [smem:[%s9016_s0 + %s7713_s24]]   ;;  %s7716_s18 = smov 80  }
  0x18   :  { %v466_v58 = vadd.f32 %v7894_v57, %v465_v56  ;;  %v6183_v56 = vld [vmem:[%s7795_s3 + $0x4] sm:$0xf]  ;;  %s6154_s5 = sld [smem:[%s9016_s0 + %s7714_s30]]   ;;  %s7727_s27 = smov 31  }
  0x19   :  { %7162 = vmatpush3.bf16.msra.mxu1 %v7859_v50  ;;  %v377_v4 = vld [vmem:[%s7900_s20] sm:$0xf]  ;;  %s6155_s17 = sld [smem:[%s9016_s0 + %s7715_s6]]   ;;  %s7728_s4 = smov 30  }
  0x1a   :  { %7172 = vmatprep.subr.bf16.mxu1 %v7685_v0  ;;  %v467_v59 = vmax.f32 %v466_v58, 0.0  ;;  %v7908_v3 = vld [vmem:[%s7905_s26] ss:$0 sm:$0xff]  ;;  %s7729_s13 = smov 48  }
  0x1c   :  { %v468_v60 = vsub.f32 0.0, %v467_v59 }
  0x1e   :  { %v469_v61 = vmul.f32 1.442695, %v468_v60 }
  0xe0   :  { %v221_v13 = vpop.f32.mrb[0].mxu0 }
  0xe1   :  { %v222_v14 = vadd.f32 %v6164_v12, %v221_v13  ;;  %v6578_v15 = vpop.f32.mrb[1].mxu0 }
  0xe3   :  { %v225_v16 = vmax.f32 %v222_v14, 0.0  ;;  %v559_v14 = vpop.permute.xlu1 %558 }
  0xe5   :  { %6588 = vmatmul.mubr.msk.f32.vlgmr.msra.gmra.mrb[2].mxu0 %vm237_vm2, %v225_v16 }
  0xe6   :  { %6591 = vmatpush3.msra.mxu0 %v7773_v17  ;;  %6592 = vmatprep.mubr.msk.f32.mxu0 %vm7687_vm0, %v7688_v1 }
  0xe7   :  { %6595 = vmatprep.subr.mxu0 %v7688_v1 }
  0xe9   :  { %6593 = vmatmul.mubr.msk.f32.vlgmr.msra.gmra.mrb[4].mxu0 %vm378_vm3, %v7780_v18 }
  0xea   :  { %6597 = vmatprep.mubr.msk.f32.mxu0 %vm7687_vm0, %v7688_v1  ;;  %6596 = vmatpush3.msra.mxu0 %v7798_v19 }
  0xeb   :  { %7163 = vmatprep.subr.bf16.mxu0 %v7685_v0 }
  0xed   :  { %6598 = vmatmul.mubr.msk.f32.vlgmr.msra.gmra.mrb[6].mxu0 %vm378_vm3, %v7801_v20  ;;  %v7923_v20 = vld [vmem:[%s7770_s25 + $0x4] sm:$0xf] }
  0xee   :  { %6615 = vmatprep.mubr.msk.f32.mxu0 %vm7687_vm0, %v7688_v1  ;;  %7165 = vmatpush3.bf16.msra.mxu0 %v7856_v48 }
  0xef   :  { %7166 = vmatprep.subr.bf16.mxu0 %v7685_v0 }
 0x1b8   :  { %v7814_v21 = vpop.f32.mrb[2].mxu0 }
 0x1b9   :  { %v6589_v22 = vpop.f32.mrb[3].mxu0 }
 0x1bc   :  { %v448_v24 = vpop.f32.mrb[4].mxu0 }
 0x1bd   :  { %v449_v25 = vadd.f32 %v7817_v23, %v448_v24  ;;  %v6594_v26 = vpop.f32.mrb[5].mxu0  ;;  %v363_v24 = vld [vmem:[%s6150_s1] sm:$0xff] }
 0x1be   :  { %v365_v26 = vld [vmem:[%s6150_s1 + $0x10] sm:$0xff] }
 0x1bf   :  { %v453_v27 = vsel %vm452_vm4, %v449_v25, -inf }
 0x1c0   :  { %454 = vmax.xlane.f32.xlu0 %v453_v27  ;;  %v540_v29 = vpop.f32.mrb[6].mxu0 }
 0x1c1   :  { %v6599_v30 = vpop.f32.mrb[7].mxu0  ;;  %v541_v35 = vadd.f32 %v7838_v34, %v540_v29 }
 0x1c2   :  { %v7953_v30 = vld [vmem:[%s7950_s9] ss:$0 sm:$0xff] }
 0x1c3   :  { %v544_v38 = vmax.f32 %v541_v35, 0.0 }
 0x1c5   :  { %v545_v39 = vsub.f32 0.0, %v544_v38 }
 0x1c7   :  { %v546_v40 = vmul.f32 1.442695, %v545_v39 }
 0x24d   :  { %v455_v31 = vpop.xlane.xlu0 %454 }
 0x24e   :  { %v456_v32 = vsub.f32 %v449_v25, %v455_v31  ;;  %v364_v25 = vld [vmem:[%s6150_s1 + $0x8] sm:$0xff] }
 0x24f   :  { %v7939_v27 = vpack.c.bf16 %v364_v25, %v363_v24 }
 0x250   :  { %v457_v33 = vmul.f32 1.442695, %v456_v32 }
 0x252   :  { %7536 = vpow2.f32 %v457_v33 }
 0x253   :  { %7538 = vpow2.f32 %v546_v40 }
 0x254   :  { %7540 = vpow2.f32 %v469_v61 }
 0x25c   :  { %v7841_v36 = vpop.eup %7536 }
 0x25d   :  { %v459_v37 = vsel %vm452_vm4, %v7841_v36, 0.0  ;;  %v7539_v49 = vpop.eup %7538 }
 0x25e   :  { %460 = vadd.xlane.f32.xlu0 %v459_v37  ;;  %v7864_v53 = vmul.f32 0.0, %v7539_v49  ;;  %v7541_v62 = vpop.eup %7540 }
 0x25f   :  { %v551_v2 = vsub.f32 1.0, %v7541_v62  ;;  %v550_v5 = vmul.f32 %v7541_v62, %v377_v4 }
 0x260   :  { %6609 = vmatmul.mubr.msk.f32.vlgmr.msra.gmra.mrb[0].mxu1 %vm237_vm2, %v7864_v53  ;;  %713 = vrot.lane.b32.xlu1 %v7864_v53, %s7701_s2 }
 0x261   :  { %7174 = vmatpush3.bf16.msra.mxu1 %v7867_v54  ;;  %6633 = vmatprep.mubr.msk.f32.mxu1 %vm7687_vm0, %v7688_v1  ;;  %v552_v6 = vmul.f32 %v7908_v3, %v551_v2 }
 0x262   :  { %6636 = vmatprep.subr.mxu1 %v7688_v1 }
 0x263   :  { %v553_v7 = vadd.f32 %v552_v6, %v550_v5 }
 0x265   :  { %v554_v11 = vmul.f32 %v553_v7, %v549_v8 }
 0x2d2   :  { %v714_v47 = vpop.permute.xlu1 %713 }
 0x2eb   :  { %v461_v63 = vpop.xlane.xlu0 %460 }
 0x2ec   :  { %7542 = vrcp.f32 %v461_v63  ;;  %v961_v63 = vmul.f32 %v6183_v56, %v7889_v55 }
 0x2ee   :  { %v962_v2 = vadd.f32 %v7894_v57, %v961_v63 }
 0x2f0   :  { %v963_v4 = vmax.f32 %v962_v2, 0.0 }
 0x2f2   :  { %v964_v5 = vsub.f32 0.0, %v963_v4 }
 0x2f4   :  { %v965_v6 = vmul.f32 1.442695, %v964_v5 }
 0x2f6   :  { %v7543_v9 = vpop.eup %7542 }
 0x2f7   :  { %v463_v10 = vmul.f32 %v7543_v9, %v7841_v36 }
 0x2f9   :  { %v464_v12 = vmul.f32 %v463_v10, %v7780_v18  ;;  %v6184_v10 = vld [vmem:[%s7900_s20 + $0x4] sm:$0xf] }
 0x2fb   :  { %v548_v13 = vmul.f32 %v464_v12, %v7827_v28  ;;  %v366_v28 = vld [vmem:[%s6150_s1 + $0x18] sm:$0xff]  ;;  %s8824_s1 = sld [smem:[%s9016_s0 + %s7727_s27]]  }
 0x2fc   :  { %v7942_v29 = vpack.c.bf16 %v366_v28, %v365_v26 }
 0x2fd   :  { %v555_v15 = vadd.f32 %v554_v11, %v548_v13  ;;  %v1045_v13 = vsub.f32 1.0, %v6182_v51 }
 0x2ff   :  { %v561_v16 = vsel %vm378_vm3, %v555_v15, %v559_v14 }
 0x300   :  { %6616 = vmatmul.mubr.msk.f32.vlgmr.msra.gmra.mrb[8].mxu0 %vm151_vm1, %v561_v16  ;;  %6634 = vmatmul.mubr.msk.f32.vlgmr.msra.gmra.mrb[2].mxu1 %vm151_vm1, %v561_v16 }
 0x301   :  { %6637 = vmatpush3.msra.mxu1 %v7773_v17  ;;  %6638 = vmatprep.mubr.msk.f32.mxu1 %vm7687_vm0, %v7688_v1 }
 0x302   :  { %6626 = vmatprep.mubr.msk.f32.mxu0 %vm7687_vm0, %v7688_v1  ;;  %7175 = vmatprep.subr.bf16.mxu1 %v7685_v0 }
 0x303   :  { %7168 = vmatpush3.bf16.msra.mxu0 %v7939_v27 }
 0x304   :  { %6639 = vmatmul.mubr.msk.f32.vlgmr.msra.gmra.mrb[4].mxu1 %vm378_vm3, %v7923_v20  ;;  %7169 = vmatprep.subr.bf16.mxu0 %v7685_v0 }
 0x305   :  { %7177 = vmatpush3.bf16.msra.mxu1 %v7854_v44  ;;  %6654 = vmatprep.mubr.msk.f32.mxu1 %vm7687_vm0, %v7688_v1 }
 0x306   :  { %7178 = vmatprep.subr.bf16.mxu1 %v7685_v0 }
 0x307   :  { %7171 = vmatpush3.bf16.msra.mxu0 %v7942_v29 }
 0x308   :  { %6641 = vmatprep.subr.mxu0 %v7688_v1 }
 0x309   :  { %7180 = vmatpush3.bf16.msra.mxu1 %v7859_v50 }
 0x30a   :  { %7190 = vmatprep.subr.bf16.mxu1 %v7685_v0 }
 0x333   :  { %v631_v18 = vpop.f32.mrb[0].mxu1 }
 0x334   :  { %v6610_v22 = vpop.f32.mrb[1].mxu1 }
 0x3d3   :  { %v704_v31 = vpop.f32.mrb[8].mxu0  ;;  %v7955_v32 = vpop.f32.mrb[2].mxu1 }
 0x3d4   :  { %v705_v33 = vadd.f32 %v704_v31, %v631_v18  ;;  %v6617_v35 = vpop.f32.mrb[9].mxu0  ;;  %v6635_v36 = vpop.f32.mrb[3].mxu1 }
 0x3d6   :  { %v708_v37 = vadd.f32 %v7953_v30, %v705_v33 }
 0x3d7   :  { %v945_v38 = vpop.f32.mrb[4].mxu1 }
 0x3d8   :  { %v709_v39 = vmul.f32 0.5, %v708_v37  ;;  %v946_v40 = vadd.f32 %v7817_v23, %v945_v38  ;;  %v6640_v41 = vpop.f32.mrb[5].mxu1 }
 0x3da   :  { %7544 = vtanh.f32 %v709_v39  ;;  %v949_v42 = vsel %vm452_vm4, %v946_v40, -inf }
 0x3db   :  { %950 = vmax.xlane.f32.xlu1 %v949_v42 }
 0x3e4   :  { %v7545_v43 = vpop.eup %7544 }
 0x3e5   :  { %v711_v45 = vadd.f32 1.0, %v7545_v43 }
 0x3e7   :  { %v7960_v46 = vmul.f32 0.5, %v711_v45 }
 0x3e9   :  { %v716_v49 = vmul.f32 %v714_v47, %v7960_v46  ;;  %v864_v45 = vsub.f32 1.0, %v7960_v46 }
 0x3eb   :  { %718 = vrot.lane.b32.xlu0 %v716_v49, %s7708_s10 }
 0x3ec   :  { %1054 = vrot.lane.b32.xlu1 %v6182_v51, %s7690_s14 }
 0x45d   :  { %v719_v52 = vpop.permute.xlu0 %718 }
 0x45e   :  { %6627 = vmatmul.mubr.msk.f32.vlgmr.msra.gmra.mrb[10].mxu0 %vm237_vm2, %v719_v52 }
 0x45f   :  { %6642 = vmatpush3.msra.mxu0 %v7798_v19  ;;  %6643 = vmatprep.mubr.msk.f32.mxu0 %vm7687_vm0, %v7688_v1 }
 0x460   :  { %7181 = vmatprep.subr.bf16.mxu0 %v7685_v0 }
 0x462   :  { %6644 = vmatmul.mubr.msk.f32.vlgmr.msra.gmra.mrb[12].mxu0 %vm378_vm3, %v6183_v56 }
 0x463   :  { %7183 = vmatpush3.bf16.msra.mxu0 %v7856_v48  ;;  %6661 = vmatprep.mubr.msk.f32.mxu0 %vm7687_vm0, %v7688_v1 }
 0x464   :  { %7184 = vmatprep.subr.bf16.mxu0 %v7685_v0 }
 0x468   :  { %v951_v58 = vpop.xlane.xlu1 %950 }
 0x469   :  { %v952_v59 = vsub.f32 %v946_v40, %v951_v58 }
 0x46b   :  { %v953_v60 = vmul.f32 1.442695, %v952_v59 }
 0x46c   :  { %v1055_v25 = vpop.permute.xlu1 %1054 }
 0x46d   :  { %7546 = vpow2.f32 %v953_v60 }
 0x46e   :  { %7548 = vpow2.f32 %v965_v6 }
 0x477   :  { %v7547_v61 = vpop.eup %7546 }
 0x478   :  { %v955_v62 = vsel %vm452_vm4, %v7547_v61, 0.0  ;;  %v7549_v7 = vpop.eup %7548 }
 0x479   :  { %956 = vadd.xlane.f32.xlu0 %v955_v62  ;;  %v1047_v9 = vsub.f32 1.0, %v7549_v7  ;;  %v1046_v11 = vmul.f32 %v7549_v7, %v6184_v10 }
 0x47b   :  { %v1048_v12 = vmul.f32 %v7908_v3, %v1047_v9 }
 0x47d   :  { %v1049_v14 = vadd.f32 %v1048_v12, %v1046_v11 }
 0x47f   :  { %v1050_v18 = vmul.f32 %v1049_v14, %v1045_v13  ;;  %v6192_v13 = vld [vmem:[%s7824_s11 + $0x8] sm:$0xf] }
 0x506   :  { %v957_v8 = vpop.xlane.xlu0 %956 }
 0x507   :  { %7550 = vrcp.f32 %v957_v8 }
 0x511   :  { %v7551_v15 = vpop.eup %7550 }
 0x512   :  { %v959_v16 = vmul.f32 %v7551_v15, %v7547_v61  ;;  %v6193_v15 = vld [vmem:[%s7795_s3 + $0x8] sm:$0xf] }
 0x514   :  { %v960_v22 = vmul.f32 %v7923_v20, %v959_v16  ;;  %v7997_v20 = vld [vmem:[%s7994_s19] ss:$0 sm:$0xff] }
 0x516   :  { %v1044_v24 = vmul.f32 %v6182_v51, %v960_v22 }
 0x518   :  { %v1051_v26 = vadd.f32 %v1050_v18, %v1044_v24 }
 0x51a   :  { %v1057_v28 = vsel %vm378_vm3, %v1051_v26, %v1055_v25  ;;  %v1457_v26 = vmul.f32 %v6193_v15, %v7889_v55 }
 0x51b   :  { %6662 = vmatmul.mubr.msk.f32.vlgmr.msra.gmra.mrb[14].mxu0 %vm151_vm1, %v1057_v28 }
 0x51c   :  { %7186 = vmatpush3.bf16.msra.mxu0 %v7939_v27  ;;  %6672 = vmatprep.mubr.msk.f32.mxu0 %vm7687_vm0, %v7688_v1 }
 0x51d   :  { %7187 = vmatprep.subr.bf16.mxu0 %v7685_v0 }
 0x520   :  { %7189 = vmatpush3.bf16.msra.mxu0 %v7942_v29 }
 0x521   :  { %6687 = vmatprep.subr.mxu0 %v7688_v1 }
 0x531   :  { %v788_v31 = vpop.f32.mrb[10].mxu0 }
 0x532   :  { %v859_v33 = vadd.f32 %v7955_v32, %v788_v31  ;;  %v6628_v35 = vpop.f32.mrb[11].mxu0  ;;  %v865_v32 = vmul.f32 %v864_v45, %v7864_v53  ;;  %v8020_v53 = vld [vmem:[%s7770_s25 + $0x8] sm:$0xf] }
 0x534   :  { %v862_v36 = vadd.f32 %v7997_v20, %v859_v33 }
 0x535   :  { %v1036_v37 = vpop.f32.mrb[12].mxu0 }
 0x536   :  { %7552 = vtanh.f32 %v862_v36  ;;  %v1037_v38 = vadd.f32 %v7838_v34, %v1036_v37  ;;  %v6645_v39 = vpop.f32.mrb[13].mxu0 }
 0x538   :  { %v1040_v40 = vmax.f32 %v1037_v38, 0.0 }
 0x53a   :  { %v1041_v41 = vsub.f32 0.0, %v1040_v40 }
 0x53c   :  { %v1042_v42 = vmul.f32 1.442695, %v1041_v41 }
 0x53e   :  { %7554 = vpow2.f32 %v1042_v42 }
 0x540   :  { %v7553_v43 = vpop.eup %7552 }
 0x541   :  { %v866_v47 = vmul.f32 %v7553_v43, %v7960_v46 }
 0x543   :  { %v867_v49 = vadd.f32 %v866_v47, %v865_v32 }
 0x548   :  { %v7555_v51 = vpop.eup %7554 }
 0x549   :  { %v8005_v52 = vmul.f32 %v7555_v51, %v867_v49 }
 0x54b   :  { %1209 = vrot.lane.b32.xlu0 %v8005_v52, %s7701_s2  ;;  %6655 = vmatmul.mubr.msk.f32.vlgmr.msra.gmra.mrb[6].mxu1 %vm237_vm2, %v8005_v52 }
 0x54c   :  { %7192 = vmatpush3.bf16.msra.mxu1 %v7867_v54  ;;  %6679 = vmatprep.mubr.msk.f32.mxu1 %vm7687_vm0, %v7688_v1 }
 0x54d   :  { %6682 = vmatprep.subr.mxu1 %v7688_v1 }
 0x54f   :  { %6680 = vmatmul.mubr.msk.f32.vlgmr.msra.gmra.mrb[8].mxu1 %vm151_vm1, %v1057_v28  ;;  %v1458_v28 = vadd.f32 %v7894_v57, %v1457_v26 }
 0x550   :  { %6683 = vmatpush3.msra.mxu1 %v7773_v17  ;;  %6684 = vmatprep.mubr.msk.f32.mxu1 %vm7687_vm0, %v7688_v1 }
 0x551   :  { %7193 = vmatprep.subr.bf16.mxu1 %v7685_v0  ;;  %v1459_v31 = vmax.f32 %v1458_v28, 0.0 }
 0x553   :  { %6685 = vmatmul.mubr.msk.f32.vlgmr.msra.gmra.mrb[10].mxu1 %vm378_vm3, %v8020_v53  ;;  %v1460_v33 = vsub.f32 0.0, %v1459_v31 }
 0x554   :  { %7195 = vmatpush3.bf16.msra.mxu1 %v7854_v44  ;;  %6700 = vmatprep.mubr.msk.f32.mxu1 %vm7687_vm0, %v7688_v1 }
 0x555   :  { %7196 = vmatprep.subr.bf16.mxu1 %v7685_v0  ;;  %v1461_v35 = vmul.f32 1.442695, %v1460_v33 }
 0x558   :  { %7198 = vmatpush3.bf16.msra.mxu1 %v7859_v50 }
 0x559   :  { %7208 = vmatprep.subr.bf16.mxu1 %v7685_v0 }
 0x5bd   :  { %v1210_v9 = vpop.permute.xlu0 %1209 }
 0x5ee   :  { %v1200_v46 = vpop.f32.mrb[14].mxu0 }
 0x5ef   :  { %v6663_v56 = vpop.f32.mrb[15].mxu0 }
 0x61e   :  { %v1127_v58 = vpop.f32.mrb[6].mxu1 }
 0x61f   :  { %v1201_v59 = vadd.f32 %v1200_v46, %v1127_v58  ;;  %v6656_v60 = vpop.f32.mrb[7].mxu1  ;;  %v6194_v46 = vld [vmem:[%s7900_s20 + $0x8] sm:$0xf] }
 0x621   :  { %v1204_v61 = vadd.f32 %v7953_v30, %v1201_v59 }
 0x622   :  { %v1354_v62 = vpop.f32.mrb[8].mxu1 }
 0x623   :  { %v1205_v63 = vmul.f32 0.5, %v1204_v61  ;;  %v6681_v2 = vpop.f32.mrb[9].mxu1 }
 0x625   :  { %7556 = vtanh.f32 %v1205_v63 }
 0x626   :  { %v1441_v4 = vpop.f32.mrb[10].mxu1 }
 0x627   :  { %v6686_v5 = vpop.f32.mrb[11].mxu1  ;;  %v1442_v11 = vadd.f32 %v7817_v23, %v1441_v4 }
 0x629   :  { %v1445_v12 = vsel %vm452_vm4, %v1442_v11, -inf }
 0x62f   :  { %v7557_v6 = vpop.eup %7556 }
 0x630   :  { %v1207_v7 = vadd.f32 1.0, %v7557_v6 }
 0x632   :  { %v1208_v8 = vmul.f32 0.5, %v1207_v7 }
 0x634   :  { %v1212_v10 = vmul.f32 %v1210_v9, %v1208_v8  ;;  %v1360_v60 = vsub.f32 1.0, %v1208_v8 }
 0x636   :  { %1214 = vrot.lane.b32.xlu1 %v1212_v10, %s7708_s10  ;;  %v1361_v4 = vmul.f32 %v1360_v60, %v8005_v52 }
 0x65a   :  { %1446 = vmax.xlane.f32.xlu1 %v1445_v12 }
 0x66b   :  { %1550 = vrot.lane.b32.xlu1 %v6192_v13, %s7690_s14 }
 0x6a8   :  { %v1215_v14 = vpop.permute.xlu1 %1214 }
 0x6a9   :  { %6673 = vmatmul.mubr.msk.f32.vlgmr.msra.gmra.mrb[16].mxu0 %vm237_vm2, %v1215_v14 }
 0x6aa   :  { %6688 = vmatpush3.msra.mxu0 %v7798_v19  ;;  %6689 = vmatprep.mubr.msk.f32.mxu0 %vm7687_vm0, %v7688_v1 }
 0x6ab   :  { %7199 = vmatprep.subr.bf16.mxu0 %v7685_v0 }
 0x6ad   :  { %6690 = vmatmul.mubr.msk.f32.vlgmr.msra.gmra.mrb[18].mxu0 %vm378_vm3, %v6193_v15 }
 0x6ae   :  { %7201 = vmatpush3.bf16.msra.mxu0 %v7856_v48  ;;  %6707 = vmatprep.mubr.msk.f32.mxu0 %vm7687_vm0, %v7688_v1 }
 0x6af   :  { %7202 = vmatprep.subr.bf16.mxu0 %v7685_v0 }
 0x6e7   :  { %v1447_v16 = vpop.xlane.xlu1 %1446 }
 0x6e8   :  { %v1448_v18 = vsub.f32 %v1442_v11, %v1447_v16 }
 0x6ea   :  { %v1449_v22 = vmul.f32 1.442695, %v1448_v18 }
 0x6ec   :  { %7558 = vpow2.f32 %v1449_v22 }
 0x6ed   :  { %7560 = vpow2.f32 %v1461_v35 }
 0x6f6   :  { %v7559_v24 = vpop.eup %7558 }
 0x6f7   :  { %v1451_v25 = vsel %vm452_vm4, %v7559_v24, 0.0  ;;  %v7561_v45 = vpop.eup %7560 }
 0x6f8   :  { %1452 = vadd.xlane.f32.xlu0 %v1451_v25  ;;  %v1543_v49 = vsub.f32 1.0, %v7561_v45  ;;  %v1542_v58 = vmul.f32 %v7561_v45, %v6194_v46  ;;  %v6203_v45 = vld [vmem:[%s7795_s3 + $0xc] sm:$0xf] }
 0x6fa   :  { %v1544_v59 = vmul.f32 %v7908_v3, %v1543_v49 }
 0x6fc   :  { %v1545_v63 = vadd.f32 %v1544_v59, %v1542_v58 }
 0x77c   :  { %v1284_v36 = vpop.f32.mrb[16].mxu0 }
 0x77d   :  { %v1355_v37 = vadd.f32 %v1354_v62, %v1284_v36  ;;  %v6674_v38 = vpop.f32.mrb[17].mxu0  ;;  %v1541_v62 = vsub.f32 1.0, %v6192_v13 }
 0x77f   :  { %v1358_v39 = vadd.f32 %v7997_v20, %v1355_v37  ;;  %v1546_v9 = vmul.f32 %v1545_v63, %v1541_v62 }
 0x780   :  { %v1532_v40 = vpop.f32.mrb[18].mxu0 }
 0x781   :  { %7562 = vtanh.f32 %v1358_v39  ;;  %v1533_v41 = vadd.f32 %v7838_v34, %v1532_v40  ;;  %v6691_v42 = vpop.f32.mrb[19].mxu0 }
 0x782   :  { %v6202_v42 = vld [vmem:[%s7824_s11 + $0xc] sm:$0xf] }
 0x783   :  { %v1536_v43 = vmax.f32 %v1533_v41, 0.0 }
 0x785   :  { %v1537_v47 = vsub.f32 0.0, %v1536_v43  ;;  %v1453_v32 = vpop.xlane.xlu0 %1452 }
 0x786   :  { %7564 = vrcp.f32 %v1453_v32 }
 0x787   :  { %v1538_v51 = vmul.f32 1.442695, %v1537_v47 }
 0x789   :  { %7566 = vpow2.f32 %v1538_v51 }
 0x78b   :  { %v7563_v56 = vpop.eup %7562 }
 0x78c   :  { %v1362_v61 = vmul.f32 %v7563_v56, %v1208_v8  ;;  %v1551_v8 = vpop.permute.xlu1 %1550  ;;  %v1953_v56 = vmul.f32 %v6203_v45, %v7889_v55 }
 0x78e   :  { %v1363_v6 = vadd.f32 %v1362_v61, %v1361_v4  ;;  %v1954_v58 = vadd.f32 %v7894_v57, %v1953_v56 }
 0x790   :  { %v7565_v2 = vpop.eup %7564  ;;  %v1955_v59 = vmax.f32 %v1954_v58, 0.0 }
 0x791   :  { %v1455_v5 = vmul.f32 %v7565_v2, %v7559_v24 }
 0x792   :  { %v1956_v60 = vsub.f32 0.0, %v1955_v59 }
 0x793   :  { %v7567_v7 = vpop.eup %7566  ;;  %v1456_v10 = vmul.f32 %v8020_v53, %v1455_v5 }
 0x794   :  { %v8057_v11 = vmul.f32 %v7567_v7, %v1363_v6  ;;  %v1957_v61 = vmul.f32 1.442695, %v1956_v60 }
 0x795   :  { %v1540_v12 = vmul.f32 %v6192_v13, %v1456_v10  ;;  %v8074_v13 = vld [vmem:[%s7770_s25 + $0xc] sm:$0xf] }
 0x796   :  { %1705 = vrot.lane.b32.xlu0 %v8057_v11, %s7701_s2  ;;  %6701 = vmatmul.mubr.msk.f32.vlgmr.msra.gmra.mrb[12].mxu1 %vm237_vm2, %v8057_v11 }
 0x797   :  { %7210 = vmatpush3.bf16.msra.mxu1 %v7867_v54  ;;  %v1547_v52 = vadd.f32 %v1546_v9, %v1540_v12  ;;  %6725 = vmatprep.mubr.msk.f32.mxu1 %vm7687_vm0, %v7688_v1 }
 0x798   :  { %6728 = vmatprep.subr.mxu1 %v7688_v1 }
 0x799   :  { %v1553_v53 = vsel %vm378_vm3, %v1547_v52, %v1551_v8 }
 0x79a   :  { %6708 = vmatmul.mubr.msk.f32.vlgmr.msra.gmra.mrb[20].mxu0 %vm151_vm1, %v1553_v53  ;;  %6726 = vmatmul.mubr.msk.f32.vlgmr.msra.gmra.mrb[14].mxu1 %vm151_vm1, %v1553_v53 }
 0x79b   :  { %6729 = vmatpush3.msra.mxu1 %v7773_v17  ;;  %6730 = vmatprep.mubr.msk.f32.mxu1 %vm7687_vm0, %v7688_v1 }
 0x79c   :  { %7204 = vmatpush3.bf16.msra.mxu0 %v7939_v27  ;;  %6718 = vmatprep.mubr.msk.f32.mxu0 %vm7687_vm0, %v7688_v1 }
 0x79d   :  { %7205 = vmatprep.subr.bf16.mxu0 %v7685_v0  ;;  %7211 = vmatprep.subr.bf16.mxu1 %v7685_v0 }
 0x79e   :  { %6731 = vmatmul.mubr.msk.f32.vlgmr.msra.gmra.mrb[16].mxu1 %vm378_vm3, %v8074_v13 }
 0x79f   :  { %7213 = vmatpush3.bf16.msra.mxu1 %v7854_v44  ;;  %6746 = vmatprep.mubr.msk.f32.mxu1 %vm7687_vm0, %v7688_v1 }
 0x7a0   :  { %7207 = vmatpush3.bf16.msra.mxu0 %v7942_v29  ;;  %7214 = vmatprep.subr.bf16.mxu1 %v7685_v0 }
 0x7a1   :  { %6733 = vmatprep.subr.mxu0 %v7688_v1 }
 0x7a3   :  { %7216 = vmatpush3.bf16.msra.mxu1 %v7859_v50 }
 0x7a4   :  { %7226 = vmatprep.subr.bf16.mxu1 %v7685_v0 }
 0x808   :  { %v1706_v38 = vpop.permute.xlu0 %1705 }
 0x869   :  { %v1623_v14 = vpop.f32.mrb[12].mxu1 }
 0x86a   :  { %v6702_v15 = vpop.f32.mrb[13].mxu1 }
 0x86d   :  { %v1696_v16 = vpop.f32.mrb[20].mxu0  ;;  %v1850_v18 = vpop.f32.mrb[14].mxu1 }
 0x86e   :  { %v1697_v22 = vadd.f32 %v1696_v16, %v1623_v14  ;;  %v6709_v24 = vpop.f32.mrb[21].mxu0  ;;  %v6727_v25 = vpop.f32.mrb[15].mxu1  ;;  %v6204_v14 = vld [vmem:[%s7900_s20 + $0xc] sm:$0xf] }
 0x86f   :  { %v2037_v25 = vsub.f32 1.0, %v6202_v42 }
 0x870   :  { %v1700_v26 = vadd.f32 %v7953_v30, %v1697_v22 }
 0x871   :  { %v1937_v28 = vpop.f32.mrb[16].mxu1 }
 0x872   :  { %v1701_v31 = vmul.f32 0.5, %v1700_v26  ;;  %v6732_v33 = vpop.f32.mrb[17].mxu1  ;;  %v1938_v40 = vadd.f32 %v7817_v23, %v1937_v28 }
 0x874   :  { %7568 = vtanh.f32 %v1701_v31  ;;  %v1941_v41 = vsel %vm452_vm4, %v1938_v40, -inf }
 0x87e   :  { %v7569_v35 = vpop.eup %7568 }
 0x87f   :  { %v1703_v36 = vadd.f32 1.0, %v7569_v35 }
 0x881   :  { %v1704_v37 = vmul.f32 0.5, %v1703_v36 }
 0x883   :  { %v1708_v39 = vmul.f32 %v1706_v38, %v1704_v37  ;;  %v1856_v22 = vsub.f32 1.0, %v1704_v37 }
 0x885   :  { %1710 = vrot.lane.b32.xlu1 %v1708_v39, %s7708_s10  ;;  %v1857_v31 = vmul.f32 %v1856_v22, %v8057_v11 }
 0x8a9   :  { %1942 = vmax.xlane.f32.xlu1 %v1941_v41 }
 0x8ba   :  { %2046 = vrot.lane.b32.xlu1 %v6202_v42, %s7690_s14 }
 0x8f7   :  { %v1711_v43 = vpop.permute.xlu1 %1710 }
 0x8f8   :  { %6719 = vmatmul.mubr.msk.f32.vlgmr.msra.gmra.mrb[22].mxu0 %vm237_vm2, %v1711_v43 }
 0x8f9   :  { %6734 = vmatpush3.msra.mxu0 %v7798_v19  ;;  %6735 = vmatprep.mubr.msk.f32.mxu0 %vm7687_vm0, %v7688_v1 }
 0x8fa   :  { %7217 = vmatprep.subr.bf16.mxu0 %v7685_v0 }
 0x8fc   :  { %6736 = vmatmul.mubr.msk.f32.vlgmr.msra.gmra.mrb[24].mxu0 %vm378_vm3, %v6203_v45 }
 0x8fd   :  { %7219 = vmatpush3.bf16.msra.mxu0 %v7856_v48  ;;  %6753 = vmatprep.mubr.msk.f32.mxu0 %vm7687_vm0, %v7688_v1 }
 0x8fe   :  { %7220 = vmatprep.subr.bf16.mxu0 %v7685_v0 }
 0x936   :  { %v1943_v47 = vpop.xlane.xlu1 %1942 }
 0x937   :  { %v1944_v32 = vsub.f32 %v1938_v40, %v1943_v47 }
 0x939   :  { %v1945_v49 = vmul.f32 1.442695, %v1944_v32 }
 0x93b   :  { %7570 = vpow2.f32 %v1945_v49 }
 0x93c   :  { %7572 = vpow2.f32 %v1957_v61 }
 0x945   :  { %v7571_v51 = vpop.eup %7570 }
 0x946   :  { %v1947_v46 = vsel %vm452_vm4, %v7571_v51, 0.0  ;;  %v7573_v10 = vpop.eup %7572 }
 0x947   :  { %1948 = vadd.xlane.f32.xlu0 %v1947_v46  ;;  %v2039_v52 = vsub.f32 1.0, %v7573_v10  ;;  %v2038_v16 = vmul.f32 %v7573_v10, %v6204_v14 }
 0x9cb   :  { %v1780_v62 = vpop.f32.mrb[22].mxu0 }
 0x9cc   :  { %v1851_v63 = vadd.f32 %v1850_v18, %v1780_v62  ;;  %v6720_v2 = vpop.f32.mrb[23].mxu0  ;;  %v2040_v18 = vmul.f32 %v7908_v3, %v2039_v52 }
 0x9ce   :  { %v1854_v4 = vadd.f32 %v7997_v20, %v1851_v63  ;;  %v2041_v26 = vadd.f32 %v2040_v18, %v2038_v16 }
 0x9cf   :  { %v2028_v5 = vpop.f32.mrb[24].mxu0 }
 0x9d0   :  { %7574 = vtanh.f32 %v1854_v4  ;;  %v2029_v6 = vadd.f32 %v7838_v34, %v2028_v5  ;;  %v6737_v7 = vpop.f32.mrb[25].mxu0  ;;  %v2042_v38 = vmul.f32 %v2041_v26, %v2037_v25 }
 0x9d2   :  { %v2032_v9 = vmax.f32 %v2029_v6, 0.0  ;;  %v6212_v6 = vld [vmem:[%s7824_s11 + $0x10] sm:$0xf] }
 0x9d4   :  { %v2033_v12 = vsub.f32 0.0, %v2032_v9  ;;  %v1949_v8 = vpop.xlane.xlu0 %1948  ;;  %v6213_v9 = vld [vmem:[%s7795_s3 + $0x10] sm:$0xf] }
 0x9d5   :  { %7576 = vrcp.f32 %v1949_v8  ;;  %v2449_v52 = vmul.f32 %v6213_v9, %v7889_v55 }
 0x9d6   :  { %v2034_v53 = vmul.f32 1.442695, %v2033_v12 }
 0x9d8   :  { %7578 = vpow2.f32 %v2034_v53  ;;  %v2450_v53 = vadd.f32 %v7894_v57, %v2449_v52 }
 0x9da   :  { %v7575_v15 = vpop.eup %7574  ;;  %v2451_v14 = vmax.f32 %v2450_v53, 0.0 }
 0x9db   :  { %v1858_v24 = vmul.f32 %v7575_v15, %v1704_v37  ;;  %v2047_v37 = vpop.permute.xlu1 %2046 }
 0x9dc   :  { %v2452_v15 = vsub.f32 0.0, %v2451_v14 }
 0x9dd   :  { %v1859_v35 = vadd.f32 %v1858_v24, %v1857_v31 }
 0x9de   :  { %v2453_v16 = vmul.f32 1.442695, %v2452_v15  ;;  %v8220_v15 = vld [vmem:[%s7812_s7] ss:$0 sm:$0xff]  ;;  %s7711_s7 = smov 10  }
 0x9df   :  { %v7577_v28 = vpop.eup %7576 }
 0x9e0   :  { %v1951_v33 = vmul.f32 %v7577_v28, %v7571_v51 }
 0x9e2   :  { %v7579_v36 = vpop.eup %7578  ;;  %v1952_v39 = vmul.f32 %v8074_v13, %v1951_v33 }
 0x9e3   :  { %v8117_v40 = vmul.f32 %v7579_v36, %v1859_v35 }
 0x9e4   :  { %v2036_v41 = vmul.f32 %v6202_v42, %v1952_v39  ;;  %v8134_v42 = vld [vmem:[%s7770_s25 + $0x10] sm:$0xf] }
 0x9e5   :  { %2201 = vrot.lane.b32.xlu0 %v8117_v40, %s7701_s2  ;;  %6747 = vmatmul.mubr.msk.f32.vlgmr.msra.gmra.mrb[18].mxu1 %vm237_vm2, %v8117_v40  ;;  %v6214_v39 = vld [vmem:[%s7900_s20 + $0x10] sm:$0xf] }
 0x9e6   :  { %7228 = vmatpush3.bf16.msra.mxu1 %v7867_v54  ;;  %v2043_v11 = vadd.f32 %v2042_v38, %v2036_v41  ;;  %6771 = vmatprep.mubr.msk.f32.mxu1 %vm7687_vm0, %v7688_v1 }
 0x9e7   :  { %6774 = vmatprep.subr.mxu1 %v7688_v1 }
 0x9e8   :  { %v2049_v13 = vsel %vm378_vm3, %v2043_v11, %v2047_v37 }
 0x9e9   :  { %6754 = vmatmul.mubr.msk.f32.vlgmr.msra.gmra.mrb[26].mxu0 %vm151_vm1, %v2049_v13  ;;  %6772 = vmatmul.mubr.msk.f32.vlgmr.msra.gmra.mrb[20].mxu1 %vm151_vm1, %v2049_v13 }
 0x9ea   :  { %6775 = vmatpush3.msra.mxu1 %v7773_v17  ;;  %6776 = vmatprep.mubr.msk.f32.mxu1 %vm7687_vm0, %v7688_v1 }
 0x9eb   :  { %7222 = vmatpush3.bf16.msra.mxu0 %v7939_v27  ;;  %6764 = vmatprep.mubr.msk.f32.mxu0 %vm7687_vm0, %v7688_v1 }
 0x9ec   :  { %7223 = vmatprep.subr.bf16.mxu0 %v7685_v0  ;;  %7229 = vmatprep.subr.bf16.mxu1 %v7685_v0 }
 0x9ed   :  { %6777 = vmatmul.mubr.msk.f32.vlgmr.msra.gmra.mrb[22].mxu1 %vm378_vm3, %v8134_v42 }
 0x9ee   :  { %7231 = vmatpush3.bf16.msra.mxu1 %v7854_v44  ;;  %6792 = vmatprep.mubr.msk.f32.mxu1 %vm7687_vm0, %v7688_v1 }
 0x9ef   :  { %7225 = vmatpush3.bf16.msra.mxu0 %v7942_v29  ;;  %7232 = vmatprep.subr.bf16.mxu1 %v7685_v0 }
 0x9f0   :  { %6779 = vmatprep.subr.mxu0 %v7688_v1 }
 0x9f2   :  { %7234 = vmatpush3.bf16.msra.mxu1 %v7859_v50 }
 0x9f3   :  { %7244 = vmatprep.subr.bf16.mxu1 %v7685_v0 }
 0xa57   :  { %v2202_v63 = vpop.permute.xlu0 %2201 }
 0xab8   :  { %v2119_v17 = vpop.f32.mrb[18].mxu1 }
 0xab9   :  { %v6748_v43 = vpop.f32.mrb[19].mxu1 }
 0xaba   :  { %v2533_v43 = vsub.f32 1.0, %v6212_v6 }
 0xabc   :  { %v2192_v45 = vpop.f32.mrb[26].mxu0  ;;  %v2346_v47 = vpop.f32.mrb[20].mxu1 }
 0xabd   :  { %v2193_v32 = vadd.f32 %v2192_v45, %v2119_v17  ;;  %v6755_v49 = vpop.f32.mrb[27].mxu0  ;;  %v6773_v51 = vpop.f32.mrb[21].mxu1 }
 0xabf   :  { %v2196_v46 = vadd.f32 %v7953_v30, %v2193_v32 }
 0xac0   :  { %v2433_v56 = vpop.f32.mrb[22].mxu1 }
 0xac1   :  { %v2197_v58 = vmul.f32 0.5, %v2196_v46  ;;  %v6778_v59 = vpop.f32.mrb[23].mxu1  ;;  %v2434_v4 = vadd.f32 %v7817_v23, %v2433_v56 }
 0xac3   :  { %7580 = vtanh.f32 %v2197_v58  ;;  %v2437_v5 = vsel %vm452_vm4, %v2434_v4, -inf }
 0xacd   :  { %v7581_v60 = vpop.eup %7580 }
 0xace   :  { %v2199_v61 = vadd.f32 1.0, %v7581_v60  ;;  %v8191_v60 = vld [vmem:[%s7765_s21] sm:$0xff]  ;;  %s7710_s21 = smov 23  }
 0xad0   :  { %v2200_v62 = vmul.f32 0.5, %v2199_v61  ;;  %v8197_v61 = vld [vmem:[%s7770_s25 + $0x14] sm:$0xf] }
 0xad2   :  { %v2204_v2 = vmul.f32 %v2202_v63, %v2200_v62  ;;  %v2352_v13 = vsub.f32 1.0, %v2200_v62 }
 0xad4   :  { %2206 = vrot.lane.b32.xlu1 %v2204_v2, %s7708_s10 }
 0xaf8   :  { %2438 = vmax.xlane.f32.xlu1 %v2437_v5 }
 0xb09   :  { %2542 = vrot.lane.b32.xlu1 %v6212_v6, %s7690_s14 }
 0xb46   :  { %v2207_v7 = vpop.permute.xlu1 %2206 }
 0xb47   :  { %6765 = vmatmul.mubr.msk.f32.vlgmr.msra.gmra.mrb[28].mxu0 %vm237_vm2, %v2207_v7 }
 0xb48   :  { %6780 = vmatpush3.msra.mxu0 %v7798_v19  ;;  %6781 = vmatprep.mubr.msk.f32.mxu0 %vm7687_vm0, %v7688_v1 }
 0xb49   :  { %7235 = vmatprep.subr.bf16.mxu0 %v7685_v0 }
 0xb4b   :  { %6782 = vmatmul.mubr.msk.f32.vlgmr.msra.gmra.mrb[30].mxu0 %vm378_vm3, %v6213_v9 }
 0xb4c   :  { %7237 = vmatpush3.bf16.msra.mxu0 %v7856_v48  ;;  %6799 = vmatprep.mubr.msk.f32.mxu0 %vm7687_vm0, %v7688_v1 }
 0xb4d   :  { %7238 = vmatprep.subr.bf16.mxu0 %v7685_v0 }
 0xb85   :  { %v2439_v23 = vpop.xlane.xlu1 %2438 }
 0xb86   :  { %v2440_v10 = vsub.f32 %v2434_v4, %v2439_v23 }
 0xb88   :  { %v2441_v12 = vmul.f32 1.442695, %v2440_v10 }
 0xb8a   :  { %7582 = vpow2.f32 %v2441_v12 }
 0xb8b   :  { %7584 = vpow2.f32 %v2453_v16 }
 0xb94   :  { %v7583_v19 = vpop.eup %7582 }
 0xb95   :  { %v2443_v8 = vsel %vm452_vm4, %v7583_v19, 0.0  ;;  %v7585_v35 = vpop.eup %7584 }
 0xb96   :  { %2444 = vadd.xlane.f32.xlu0 %v2443_v8  ;;  %v2535_v57 = vsub.f32 1.0, %v7585_v35  ;;  %v2534_v37 = vmul.f32 %v7585_v35, %v6214_v39 }
 0xb98   :  { %v2536_v11 = vmul.f32 %v7908_v3, %v2535_v57  ;;  %v2543_v3 = vpop.permute.xlu1 %2542  ;;  %v8246_v57 = vld [vmem:[%s7886_s15] ss:$0 sm:$0xff]  ;;  %s7712_s15 = smov 27  }
 0xb99   :  { %s6156_s23 = sld [smem:[%s9016_s0 + %s7712_s15]]  }
 0xb9a   :  { %v2537_v45 = vadd.f32 %v2536_v11, %v2534_v37 }
 0xb9c   :  { %v2538_v46 = vmul.f32 %v2537_v45, %v2533_v43 }
 0xc1a   :  { %v2276_v18 = vpop.f32.mrb[28].mxu0 }
 0xc1b   :  { %v2347_v22 = vadd.f32 %v2346_v47, %v2276_v18  ;;  %v6766_v24 = vpop.f32.mrb[29].mxu0  ;;  %v6222_v18 = vld [vmem:[%s7824_s11 + $0x14] sm:$0xf] }
 0xc1c   :  { %v8228_v24 = vld [vmem:[%s7790_s29] sm:$0xff]  ;;  %s6161_s29 = sld [smem:[%s9016_s0 + %s7701_s2]]  }
 0xc1d   :  { %v2350_v25 = vadd.f32 %v7997_v20, %v2347_v22 }
 0xc1e   :  { %v2524_v26 = vpop.f32.mrb[30].mxu0 }
 0xc1f   :  { %7586 = vtanh.f32 %v2350_v25  ;;  %v2525_v28 = vadd.f32 %v7838_v34, %v2524_v26  ;;  %v6783_v31 = vpop.f32.mrb[31].mxu0  ;;  %v2353_v34 = vmul.f32 %v2352_v13, %v8117_v40  ;;  %v6223_v25 = vld [vmem:[%s7795_s3 + $0x14] sm:$0xf] }
 0xc21   :  { %v2528_v33 = vmax.f32 %v2525_v28, 0.0 }
 0xc23   :  { %v2529_v55 = vsub.f32 0.0, %v2528_v33  ;;  %v2445_v36 = vpop.xlane.xlu0 %2444 }
 0xc24   :  { %7588 = vrcp.f32 %v2445_v36 }
 0xc25   :  { %v2530_v38 = vmul.f32 1.442695, %v2529_v55  ;;  %v8242_v55 = vld [vmem:[%s7881_s8] ss:$0 sm:$0xff]  ;;  %s6139_s8 = sld [smem:[%s9016_s0 + %s7711_s7]]  }
 0xc26   :  { %v2945_v36 = vmul.f32 %v8242_v55, %v6223_v25 }
 0xc27   :  { %7590 = vpow2.f32 %v2530_v38 }
 0xc28   :  { %v2946_v38 = vadd.f32 %v8246_v57, %v2945_v36 }
 0xc29   :  { %v7587_v41 = vpop.eup %7586 }
 0xc2a   :  { %v2354_v17 = vmul.f32 %v7587_v41, %v2200_v62  ;;  %v2947_v39 = vmax.f32 %v2946_v38, 0.0 }
 0xc2c   :  { %v2355_v49 = vadd.f32 %v2354_v17, %v2353_v34  ;;  %v2948_v41 = vsub.f32 0.0, %v2947_v39 }
 0xc2e   :  { %v7589_v47 = vpop.eup %7588  ;;  %v2949_v37 = vmul.f32 1.442695, %v2948_v41 }
 0xc2f   :  { %v2447_v32 = vmul.f32 %v7589_v47, %v7583_v19  ;;  %v8251_v47 = vld [vmem:[%s7835_s16] ss:$0 sm:$0xff] }
 0xc31   :  { %v7591_v51 = vpop.eup %7590  ;;  %v2448_v56 = vmul.f32 %v8134_v42, %v2447_v32 }
 0xc32   :  { %v8177_v58 = vmul.f32 %v7591_v51, %v2355_v49 }
 0xc33   :  { %v2532_v59 = vmul.f32 %v6212_v6, %v2448_v56 }
 0xc34   :  { %2697 = vrot.lane.b32.xlu0 %v8177_v58, %s7701_s2  ;;  %6793 = vmatmul.mubr.msk.f32.vlgmr.msra.gmra.mrb[24].mxu1 %vm237_vm2, %v8177_v58 }
 0xc35   :  { %7246 = vmatpush3.bf16.msra.mxu1 %v7867_v54  ;;  %v2539_v40 = vadd.f32 %v2538_v46, %v2532_v59  ;;  %6817 = vmatprep.mubr.msk.f32.mxu1 %vm7687_vm0, %v7688_v1 }
 0xc36   :  { %6820 = vmatprep.subr.mxu1 %v7688_v1 }
 0xc37   :  { %v2545_v42 = vsel %vm378_vm3, %v2539_v40, %v2543_v3  ;;  %v6224_v40 = vld [vmem:[%s7900_s20 + $0x14] sm:$0xf] }
 0xc38   :  { %6800 = vmatmul.mubr.msk.f32.vlgmr.msra.gmra.mrb[32].mxu0 %vm151_vm1, %v2545_v42  ;;  %6818 = vmatmul.mubr.msk.f32.vlgmr.msra.gmra.mrb[26].mxu1 %vm151_vm1, %v2545_v42 }
 0xc39   :  { %6821 = vmatpush3.msra.mxu1 %v8191_v60  ;;  %6822 = vmatprep.mubr.msk.f32.mxu1 %vm7687_vm0, %v7688_v1 }
 0xc3a   :  { %7240 = vmatpush3.bf16.msra.mxu0 %v7939_v27  ;;  %6810 = vmatprep.mubr.msk.f32.mxu0 %vm7687_vm0, %v7688_v1 }
 0xc3b   :  { %7241 = vmatprep.subr.bf16.mxu0 %v7685_v0  ;;  %7247 = vmatprep.subr.bf16.mxu1 %v7685_v0 }
 0xc3c   :  { %6823 = vmatmul.mubr.msk.f32.vlgmr.msra.gmra.mrb[28].mxu1 %vm378_vm3, %v8197_v61 }
 0xc3d   :  { %7249 = vmatpush3.bf16.msra.mxu1 %v7854_v44  ;;  %6838 = vmatprep.mubr.msk.f32.mxu1 %vm7687_vm0, %v7688_v1 }
 0xc3e   :  { %7243 = vmatpush3.bf16.msra.mxu0 %v7942_v29  ;;  %7250 = vmatprep.subr.bf16.mxu1 %v7685_v0 }
 0xc3f   :  { %6825 = vmatprep.subr.mxu0 %v7688_v1 }
 0xc41   :  { %7252 = vmatpush3.bf16.msra.mxu1 %v7859_v50 }
 0xc42   :  { %7262 = vmatprep.subr.bf16.mxu1 %v7685_v0 }
 0xca6   :  { %v2698_v53 = vpop.permute.xlu0 %2697 }
 0xd07   :  { %v2615_v62 = vpop.f32.mrb[24].mxu1 }
 0xd08   :  { %v6794_v63 = vpop.f32.mrb[25].mxu1 }
 0xd09   :  { %v8256_v63 = vld [vmem:[%s7905_s26] ss:$0 sm:$0xff] }
 0xd0b   :  { %v2688_v2 = vpop.f32.mrb[32].mxu0  ;;  %v2842_v4 = vpop.f32.mrb[26].mxu1 }
 0xd0c   :  { %v2689_v5 = vadd.f32 %v2688_v2, %v2615_v62  ;;  %v6801_v6 = vpop.f32.mrb[33].mxu0  ;;  %v6819_v7 = vpop.f32.mrb[27].mxu1 }
 0xd0d   :  { %v3029_v6 = vsub.f32 1.0, %v6222_v18 }
 0xd0e   :  { %v2692_v9 = vadd.f32 %v7953_v30, %v2689_v5 }
 0xd0f   :  { %v2929_v23 = vpop.f32.mrb[28].mxu1 }
 0xd10   :  { %v2693_v10 = vmul.f32 0.5, %v2692_v9  ;;  %v6824_v12 = vpop.f32.mrb[29].mxu1  ;;  %v2930_v16 = vadd.f32 %v8220_v15, %v2929_v23 }
 0xd12   :  { %7592 = vtanh.f32 %v2693_v10  ;;  %v2933_v30 = vsel %vm452_vm4, %v2930_v16, -inf }
 0xd1c   :  { %v7593_v19 = vpop.eup %7592 }
 0xd1d   :  { %v2695_v8 = vadd.f32 1.0, %v7593_v19 }
 0xd1f   :  { %v8215_v52 = vmul.f32 0.5, %v2695_v8 }
 0xd21   :  { %v2700_v14 = vmul.f32 %v2698_v53, %v8215_v52 }
 0xd23   :  { %2702 = vrot.lane.b32.xlu1 %v2700_v14, %s7708_s10 }
 0xd47   :  { %2934 = vmax.xlane.f32.xlu1 %v2933_v30  ;;  %v8280_v30 = vld [vmem:[%s7770_s25 + $0x18] sm:$0xf] }
 0xd58   :  { %3038 = vrot.lane.b32.xlu1 %v6222_v18, %s7690_s14 }
 0xd95   :  { %v2703_v22 = vpop.permute.xlu1 %2702 }
 0xd96   :  { %6811 = vmatmul.mubr.msk.f32.vlgmr.msra.gmra.mrb[34].mxu0 %vm237_vm2, %v2703_v22 }
 0xd97   :  { %6826 = vmatpush3.msra.mxu0 %v8228_v24  ;;  %6827 = vmatprep.mubr.msk.f32.mxu0 %vm7687_vm0, %v7688_v1 }
 0xd98   :  { %7253 = vmatprep.subr.bf16.mxu0 %v7685_v0 }
 0xd9a   :  { %6828 = vmatmul.mubr.msk.f32.vlgmr.msra.gmra.mrb[36].mxu0 %vm378_vm3, %v6223_v25 }
 0xd9b   :  { %7255 = vmatpush3.bf16.msra.mxu0 %v7856_v48  ;;  %6845 = vmatprep.mubr.msk.f32.mxu0 %vm7687_vm0, %v7688_v1 }
 0xd9c   :  { %7256 = vmatprep.subr.bf16.mxu0 %v7685_v0 }
 0xdd4   :  { %v2935_v26 = vpop.xlane.xlu1 %2934 }
 0xdd5   :  { %v2936_v28 = vsub.f32 %v2930_v16, %v2935_v26 }
 0xdd7   :  { %v2937_v31 = vmul.f32 1.442695, %v2936_v28 }
 0xdd9   :  { %7594 = vpow2.f32 %v2937_v31 }
 0xdda   :  { %7596 = vpow2.f32 %v2949_v37 }
 0xde3   :  { %v7595_v33 = vpop.eup %7594 }
 0xde4   :  { %v2939_v35 = vsel %vm452_vm4, %v7595_v33, 0.0  ;;  %v7597_v51 = vpop.eup %7596 }
 0xde5   :  { %2940 = vadd.xlane.f32.xlu0 %v2939_v35  ;;  %v3031_v59 = vsub.f32 1.0, %v7597_v51  ;;  %v3030_v62 = vmul.f32 %v7597_v51, %v6224_v40  ;;  %v8298_v35 = vld [vmem:[%s7950_s9] ss:$0 sm:$0xff]  ;;  %v6232_v40 = vld [vmem:[%s7824_s11 + $0x18] sm:$0xf]  ;;  %s6159_s9 = sld [smem:[%s9016_s0 + %s7728_s4]]  }
 0xde7   :  { %v3032_v2 = vmul.f32 %v8256_v63, %v3031_v59 }
 0xde9   :  { %v3033_v7 = vadd.f32 %v3032_v2, %v3030_v62 }
 0xdeb   :  { %v3034_v8 = vmul.f32 %v3033_v7, %v3029_v6 }
 0xe69   :  { %v2772_v11 = vpop.f32.mrb[34].mxu0 }
 0xe6a   :  { %v2843_v13 = vadd.f32 %v2842_v4, %v2772_v11  ;;  %v6812_v17 = vpop.f32.mrb[35].mxu0  ;;  %v2848_v4 = vsub.f32 1.0, %v8215_v52 }
 0xe6c   :  { %v2846_v43 = vadd.f32 %v7997_v20, %v2843_v13  ;;  %v2849_v23 = vmul.f32 %v2848_v4, %v8177_v58 }
 0xe6d   :  { %v3020_v45 = vpop.f32.mrb[36].mxu0 }
 0xe6e   :  { %7598 = vtanh.f32 %v2846_v43  ;;  %v3021_v34 = vadd.f32 %v8251_v47, %v3020_v45  ;;  %v6829_v32 = vpop.f32.mrb[37].mxu0 }
 0xe70   :  { %v3024_v49 = vmax.f32 %v3021_v34, 0.0 }
 0xe72   :  { %v3025_v46 = vsub.f32 0.0, %v3024_v49  ;;  %v2941_v56 = vpop.xlane.xlu0 %2940  ;;  %v6233_v49 = vld [vmem:[%s7795_s3 + $0x18] sm:$0xf] }
 0xe73   :  { %7600 = vrcp.f32 %v2941_v56 }
 0xe74   :  { %v3026_v3 = vmul.f32 1.442695, %v3025_v46 }
 0xe76   :  { %7602 = vpow2.f32 %v3026_v3 }
 0xe78   :  { %v7599_v42 = vpop.eup %7598 }
 0xe79   :  { %v2850_v5 = vmul.f32 %v7599_v42, %v8215_v52  ;;  %v3039_v52 = vpop.permute.xlu1 %3038  ;;  %v3441_v42 = vmul.f32 %v8242_v55, %v6233_v49 }
 0xe7b   :  { %v2851_v12 = vadd.f32 %v2850_v5, %v2849_v23  ;;  %v3442_v62 = vadd.f32 %v8246_v57, %v3441_v42 }
 0xe7d   :  { %v7601_v9 = vpop.eup %7600  ;;  %v3443_v2 = vmax.f32 %v3442_v62, 0.0 }
 0xe7e   :  { %v2943_v10 = vmul.f32 %v7601_v9, %v7595_v33 }
 0xe7f   :  { %v3444_v4 = vsub.f32 0.0, %v3443_v2 }
 0xe80   :  { %v7603_v19 = vpop.eup %7602  ;;  %v2944_v53 = vmul.f32 %v8197_v61, %v2943_v10 }
 0xe81   :  { %v8263_v14 = vmul.f32 %v7603_v19, %v2851_v12  ;;  %v3445_v5 = vmul.f32 1.442695, %v3444_v4 }
 0xe82   :  { %v3028_v16 = vmul.f32 %v6222_v18, %v2944_v53 }
 0xe83   :  { %3193 = vrot.lane.b32.xlu0 %v8263_v14, %s7701_s2  ;;  %6839 = vmatmul.mubr.msk.f32.vlgmr.msra.gmra.mrb[30].mxu1 %vm237_vm2, %v8263_v14 }
 0xe84   :  { %7264 = vmatpush3.bf16.msra.mxu1 %v7867_v54  ;;  %v3035_v58 = vadd.f32 %v3034_v8, %v3028_v16  ;;  %6863 = vmatprep.mubr.msk.f32.mxu1 %vm7687_vm0, %v7688_v1 }
 0xe85   :  { %6866 = vmatprep.subr.mxu1 %v7688_v1 }
 0xe86   :  { %v3041_v61 = vsel %vm378_vm3, %v3035_v58, %v3039_v52 }
 0xe87   :  { %6846 = vmatmul.mubr.msk.f32.vlgmr.msra.gmra.mrb[38].mxu0 %vm151_vm1, %v3041_v61  ;;  %6864 = vmatmul.mubr.msk.f32.vlgmr.msra.gmra.mrb[32].mxu1 %vm151_vm1, %v3041_v61 }
 0xe88   :  { %6867 = vmatpush3.msra.mxu1 %v8191_v60  ;;  %6868 = vmatprep.mubr.msk.f32.mxu1 %vm7687_vm0, %v7688_v1 }
 0xe89   :  { %7258 = vmatpush3.bf16.msra.mxu0 %v7939_v27  ;;  %6856 = vmatprep.mubr.msk.f32.mxu0 %vm7687_vm0, %v7688_v1 }
 0xe8a   :  { %7259 = vmatprep.subr.bf16.mxu0 %v7685_v0  ;;  %7265 = vmatprep.subr.bf16.mxu1 %v7685_v0 }
 0xe8b   :  { %6869 = vmatmul.mubr.msk.f32.vlgmr.msra.gmra.mrb[34].mxu1 %vm378_vm3, %v8280_v30 }
 0xe8c   :  { %7267 = vmatpush3.bf16.msra.mxu1 %v7854_v44  ;;  %6884 = vmatprep.mubr.msk.f32.mxu1 %vm7687_vm0, %v7688_v1 }
 0xe8d   :  { %7261 = vmatpush3.bf16.msra.mxu0 %v7942_v29  ;;  %7268 = vmatprep.subr.bf16.mxu1 %v7685_v0 }
 0xe8e   :  { %6871 = vmatprep.subr.mxu0 %v7688_v1 }
 0xe90   :  { %7270 = vmatpush3.bf16.msra.mxu1 %v7859_v50 }
 0xe91   :  { %7280 = vmatprep.subr.bf16.mxu1 %v7685_v0 }
 0xef5   :  { %v3194_v17 = vpop.permute.xlu0 %3193 }
 0xf56   :  { %v3111_v18 = vpop.f32.mrb[30].mxu1 }
 0xf57   :  { %v6840_v22 = vpop.f32.mrb[31].mxu1 }
 0xf5a   :  { %v3184_v25 = vpop.f32.mrb[38].mxu0  ;;  %v3338_v26 = vpop.f32.mrb[32].mxu1 }
 0xf5b   :  { %v3185_v28 = vadd.f32 %v3184_v25, %v3111_v18  ;;  %v6847_v31 = vpop.f32.mrb[39].mxu0  ;;  %v6865_v33 = vpop.f32.mrb[33].mxu1  ;;  %v6234_v18 = vld [vmem:[%s7900_s20 + $0x18] sm:$0xf] }
 0xf5c   :  { %v3525_v31 = vsub.f32 1.0, %v6232_v40 }
 0xf5d   :  { %v3188_v36 = vadd.f32 %v8298_v35, %v3185_v28 }
 0xf5e   :  { %v3425_v38 = vpop.f32.mrb[34].mxu1 }
 0xf5f   :  { %v3189_v39 = vmul.f32 0.5, %v3188_v36  ;;  %v6870_v41 = vpop.f32.mrb[35].mxu1  ;;  %v3426_v45 = vadd.f32 %v8220_v15, %v3425_v38 }
 0xf61   :  { %7604 = vtanh.f32 %v3189_v39  ;;  %v3429_v34 = vsel %vm452_vm4, %v3426_v45, -inf }
 0xf6b   :  { %v7605_v37 = vpop.eup %7604 }
 0xf6c   :  { %v3191_v11 = vadd.f32 1.0, %v7605_v37 }
 0xf6e   :  { %v3192_v13 = vmul.f32 0.5, %v3191_v11 }
 0xf70   :  { %v3196_v43 = vmul.f32 %v3194_v17, %v3192_v13  ;;  %v3344_v28 = vsub.f32 1.0, %v3192_v13 }
 0xf72   :  { %3198 = vrot.lane.b32.xlu1 %v3196_v43, %s7708_s10  ;;  %v3345_v38 = vmul.f32 %v3344_v28, %v8263_v14 }
 0xf96   :  { %3430 = vmax.xlane.f32.xlu1 %v3429_v34  ;;  %v8343_v34 = vld [vmem:[%s7770_s25 + $0x1c] sm:$0xf]  ;;  %s7719_s25 = smov 28  }
 0xf97   :  { %s6157_s7 = sld [smem:[%s9016_s0 + %s7719_s25]]  }
 0xfe4   :  { %v3199_v32 = vpop.permute.xlu1 %3198 }
 0xfe5   :  { %6857 = vmatmul.mubr.msk.f32.vlgmr.msra.gmra.mrb[40].mxu0 %vm237_vm2, %v3199_v32 }
 0xfe6   :  { %6872 = vmatpush3.msra.mxu0 %v8228_v24  ;;  %6873 = vmatprep.mubr.msk.f32.mxu0 %vm7687_vm0, %v7688_v1 }
 0xfe7   :  { %7271 = vmatprep.subr.bf16.mxu0 %v7685_v0 }
 0xfe9   :  { %6874 = vmatmul.mubr.msk.f32.vlgmr.msra.gmra.mrb[42].mxu0 %vm378_vm3, %v6233_v49 }
 0xfea   :  { %7273 = vmatpush3.bf16.msra.mxu0 %v7856_v48  ;;  %6891 = vmatprep.mubr.msk.f32.mxu0 %vm7687_vm0, %v7688_v1 }
 0xfeb   :  { %7274 = vmatprep.subr.bf16.mxu0 %v7685_v0 }
0x1023   :  { %v3431_v51 = vpop.xlane.xlu1 %3430 }
0x1024   :  { %v3432_v46 = vsub.f32 %v3426_v45, %v3431_v51 }
0x1026   :  { %v3433_v56 = vmul.f32 1.442695, %v3432_v46 }
0x1028   :  { %7606 = vpow2.f32 %v3433_v56 }
0x1029   :  { %7608 = vpow2.f32 %v3445_v5 }
0x1032   :  { %v7607_v59 = vpop.eup %7606 }
0x1033   :  { %v3435_v3 = vsel %vm452_vm4, %v7607_v59, 0.0  ;;  %v7609_v53 = vpop.eup %7608 }
0x1034   :  { %3436 = vadd.xlane.f32.xlu0 %v3435_v3  ;;  %v3527_v58 = vsub.f32 1.0, %v7609_v53  ;;  %v3526_v25 = vmul.f32 %v7609_v53, %v6234_v18 }
0x104a   :  { %3534 = vrot.lane.b32.xlu0 %v6232_v40, %s7690_s14 }
0x10b8   :  { %v3268_v6 = vpop.f32.mrb[40].mxu0 }
0x10b9   :  { %v3339_v7 = vadd.f32 %v3338_v26, %v3268_v6  ;;  %v6858_v9 = vpop.f32.mrb[41].mxu0  ;;  %v3528_v26 = vmul.f32 %v8256_v63, %v3527_v58 }
0x10ba   :  { %v6242_v9 = vld [vmem:[%s7824_s11 + $0x1c] sm:$0xf]  ;;  %s7720_s11 = smov 29  }
0x10bb   :  { %v3342_v23 = vadd.f32 %v7997_v20, %v3339_v7  ;;  %v3529_v33 = vadd.f32 %v3528_v26, %v3526_v25  ;;  %v6244_v25 = vld [vmem:[%s7900_s20 + $0x1c] sm:$0xf]  ;;  %s6158_s15 = sld [smem:[%s9016_s0 + %s7720_s11]]   ;;  %s7726_s20 = smov 6  }
0x10bc   :  { %v3516_v10 = vpop.f32.mrb[42].mxu0  ;;  %s6135_s26 = sld [smem:[%s9016_s0 + %s7726_s20]]  }
0x10bd   :  { %7610 = vtanh.f32 %v3342_v23  ;;  %v3517_v12 = vadd.f32 %v8251_v47, %v3516_v10  ;;  %v6875_v19 = vpop.f32.mrb[43].mxu0  ;;  %v3530_v11 = vmul.f32 %v3529_v33, %v3525_v31 }
0x10bf   :  { %v3520_v8 = vmax.f32 %v3517_v12, 0.0 }
0x10c1   :  { %v3521_v16 = vsub.f32 0.0, %v3520_v8  ;;  %v3437_v52 = vpop.xlane.xlu0 %3436 }
0x10c2   :  { %7612 = vrcp.f32 %v3437_v52 }
0x10c3   :  { %v3522_v61 = vmul.f32 1.442695, %v3521_v16 }
0x10c5   :  { %7614 = vpow2.f32 %v3522_v61 }
0x10c7   :  { %v7611_v22 = vpop.eup %7610 }
0x10c8   :  { %v3346_v20 = vmul.f32 %v7611_v22, %v3192_v13  ;;  %v3535_v13 = vpop.permute.xlu0 %3534 }
0x10ca   :  { %v3347_v41 = vadd.f32 %v3346_v20, %v3345_v38  ;;  %v4021_v20 = vsub.f32 1.0, %v6242_v9 }
0x10cc   :  { %v7613_v36 = vpop.eup %7612 }
0x10cd   :  { %v3439_v39 = vmul.f32 %v7613_v36, %v7607_v59 }
0x10cf   :  { %v7615_v37 = vpop.eup %7614  ;;  %v3440_v17 = vmul.f32 %v8280_v30, %v3439_v39 }
0x10d0   :  { %v8326_v43 = vmul.f32 %v7615_v37, %v3347_v41 }
0x10d1   :  { %v3524_v45 = vmul.f32 %v6232_v40, %v3440_v17 }
0x10d2   :  { %3689 = vrot.lane.b32.xlu1 %v8326_v43, %s7701_s2  ;;  %6885 = vmatmul.mubr.msk.f32.vlgmr.msra.gmra.mrb[36].mxu1 %vm237_vm2, %v8326_v43 }
0x10d3   :  { %7282 = vmatpush3.bf16.msra.mxu1 %v7867_v54  ;;  %v3531_v14 = vadd.f32 %v3530_v11, %v3524_v45  ;;  %6909 = vmatprep.mubr.msk.f32.mxu1 %vm7687_vm0, %v7688_v1  ;;  %v8398_v45 = vld [vmem:[%s7994_s19] ss:$0 sm:$0xff]  ;;  %s7717_s19 = smov 112  }
0x10d4   :  { %6912 = vmatprep.subr.mxu1 %v7688_v1 }
0x10d5   :  { %v3537_v30 = vsel %vm378_vm3, %v3531_v14, %v3535_v13 }
0x10d6   :  { %6892 = vmatmul.mubr.msk.f32.vlgmr.msra.gmra.mrb[44].mxu0 %vm151_vm1, %v3537_v30  ;;  %6910 = vmatmul.mubr.msk.f32.vlgmr.msra.gmra.mrb[38].mxu1 %vm151_vm1, %v3537_v30 }
0x10d7   :  { %6913 = vmatpush3.msra.mxu1 %v8191_v60  ;;  %6914 = vmatprep.mubr.msk.f32.mxu1 %vm7687_vm0, %v7688_v1 }
0x10d8   :  { %7276 = vmatpush3.bf16.msra.mxu0 %v7939_v27  ;;  %6902 = vmatprep.mubr.msk.f32.mxu0 %vm7687_vm0, %v7688_v1 }
0x10d9   :  { %7277 = vmatprep.subr.bf16.mxu0 %v7685_v0  ;;  %7283 = vmatprep.subr.bf16.mxu1 %v7685_v0 }
0x10da   :  { %6915 = vmatmul.mubr.msk.f32.vlgmr.msra.gmra.mrb[40].mxu1 %vm378_vm3, %v8343_v34 }
0x10db   :  { %7285 = vmatpush3.bf16.msra.mxu1 %v7854_v44  ;;  %6930 = vmatprep.mubr.msk.f32.mxu1 %vm7687_vm0, %v7688_v1 }
0x10dc   :  { %7279 = vmatpush3.bf16.msra.mxu0 %v7942_v29  ;;  %7286 = vmatprep.subr.bf16.mxu1 %v7685_v0 }
0x10dd   :  { %6917 = vmatprep.subr.mxu0 %v7688_v1 }
0x10df   :  { %7288 = vmatpush3.bf16.msra.mxu1 %v7859_v50 }
0x10e0   :  { %7298 = vmatprep.subr.bf16.mxu1 %v7685_v0 }
0x1144   :  { %v3690_v6 = vpop.permute.xlu1 %3689 }
0x11a5   :  { %v3607_v60 = vpop.f32.mrb[36].mxu1 }
0x11a6   :  { %v6886_v32 = vpop.f32.mrb[37].mxu1 }
0x11a9   :  { %v3680_v49 = vpop.f32.mrb[44].mxu0  ;;  %v8360_v51 = vpop.f32.mrb[38].mxu1 }
0x11aa   :  { %v3681_v46 = vadd.f32 %v3680_v49, %v3607_v60  ;;  %v6893_v44 = vpop.f32.mrb[45].mxu0  ;;  %v6911_v56 = vpop.f32.mrb[39].mxu1 }
0x11ac   :  { %v3684_v59 = vadd.f32 %v8298_v35, %v3681_v46 }
0x11ad   :  { %v3921_v3 = vpop.f32.mrb[40].mxu1 }
0x11ae   :  { %v3685_v40 = vmul.f32 0.5, %v3684_v59  ;;  %v3922_v42 = vadd.f32 %v8220_v15, %v3921_v3  ;;  %v6916_v62 = vpop.f32.mrb[41].mxu1  ;;  %v6243_v15 = vld [vmem:[%s7795_s3 + $0x1c] sm:$0xf]  ;;  %s6152_s3 = sld [smem:[%s9016_s0 + %s7710_s21]]   ;;  %s7718_s21 = smov 64  }
0x11af   :  { %v3937_v53 = vmul.f32 %v8242_v55, %v6243_v15 }
0x11b0   :  { %7616 = vtanh.f32 %v3685_v40  ;;  %v3925_v50 = vsel %vm452_vm4, %v3922_v42, -inf }
0x11b1   :  { %3926 = vmax.xlane.f32.xlu0 %v3925_v50  ;;  %v3938_v16 = vadd.f32 %v8246_v57, %v3937_v53 }
0x11b3   :  { %v3939_v52 = vmax.f32 %v3938_v16, 0.0 }
0x11ba   :  { %v7617_v2 = vpop.eup %7616 }
0x11bb   :  { %v3687_v4 = vadd.f32 1.0, %v7617_v2 }
0x11bd   :  { %v8365_v5 = vmul.f32 0.5, %v3687_v4 }
0x11bf   :  { %v3692_v7 = vmul.f32 %v3690_v6, %v8365_v5  ;;  %v3840_v49 = vsub.f32 1.0, %v8365_v5 }
0x11c1   :  { %3694 = vrot.lane.b32.xlu1 %v3692_v7, %s7708_s10 }
0x11c7   :  { %4030 = vrot.lane.b32.xlu0 %v6242_v9, %s7690_s14 }
0x1233   :  { %v3695_v23 = vpop.permute.xlu1 %3694 }
0x1234   :  { %6903 = vmatmul.mubr.msk.f32.vlgmr.msra.gmra.mrb[46].mxu0 %vm237_vm2, %v3695_v23 }
0x1235   :  { %6918 = vmatpush3.msra.mxu0 %v8228_v24  ;;  %6919 = vmatprep.mubr.msk.f32.mxu0 %vm7687_vm0, %v7688_v1 }
0x1236   :  { %7289 = vmatprep.subr.bf16.mxu0 %v7685_v0 }
0x1238   :  { %6920 = vmatmul.mubr.msk.f32.vlgmr.msra.gmra.mrb[48].mxu0 %vm378_vm3, %v6243_v15  ;;  %v4348_v15 = vld [vmem:[%s6152_s3 + $0x18] sm:$0xff] }
0x1239   :  { %7291 = vmatpush3.bf16.msra.mxu0 %v7856_v48  ;;  %6937 = vmatprep.mubr.msk.f32.mxu0 %vm7687_vm0, %v7688_v1  ;;  %v3940_v48 = vsub.f32 0.0, %v3939_v52  ;;  %v4349_v52 = vld [vmem:[%s6152_s3 + $0x20] sm:$0xff] }
0x123a   :  { %7292 = vmatprep.subr.bf16.mxu0 %v7685_v0 }
0x123b   :  { %v3941_v58 = vmul.f32 1.442695, %v3940_v48  ;;  %v4351_v48 = vld [vmem:[%s6152_s3 + $0x30] sm:$0xff] }
0x123e   :  { %v3927_v10 = vpop.xlane.xlu0 %3926 }
0x123f   :  { %v3928_v12 = vsub.f32 %v3922_v42, %v3927_v10  ;;  %v4345_v10 = vld [vmem:[%s6152_s3] sm:$0xff] }
0x1241   :  { %v3929_v19 = vmul.f32 1.442695, %v3928_v12 }
0x1242   :  { %v4031_v39 = vpop.permute.xlu0 %4030 }
0x1243   :  { %7618 = vpow2.f32 %v3929_v19  ;;  %v4347_v19 = vld [vmem:[%s6152_s3 + $0x10] sm:$0xff] }
0x1244   :  { %7620 = vpow2.f32 %v3941_v58  ;;  %v7303_v53 = vpack.c.bf16 %v4347_v19, %v4345_v10  ;;  %v4354_v58 = vld [vmem:[%s6152_s3 + $0x48] sm:$0xff] }
0x124d   :  { %v7619_v24 = vpop.eup %7618 }
0x124e   :  { %v3931_v8 = vsel %vm452_vm4, %v7619_v24, 0.0  ;;  %v7621_v61 = vpop.eup %7620  ;;  %vm4990_vm4 = vcmask 35840  }
0x124f   :  { %3932 = vadd.xlane.f32.xlu1 %v3931_v8  ;;  %v4023_v22 = vsub.f32 1.0, %v7621_v61  ;;  %v4022_v26 = vmul.f32 %v7621_v61, %v6244_v25  ;;  %v4352_v8 = vld [vmem:[%s6152_s3 + $0x38] sm:$0xff]  ;;  %v4353_v25 = vld [vmem:[%s6152_s3 + $0x40] sm:$0xff] }
0x1250   :  { %v4356_v61 = vld [vmem:[%s6152_s3 + $0x58] sm:$0xff] }
0x1251   :  { %v4024_v28 = vmul.f32 %v8256_v63, %v4023_v22  ;;  %v7309_v22 = vpack.c.bf16 %v4356_v61, %v4354_v58 }
0x1253   :  { %v4025_v31 = vadd.f32 %v4024_v28, %v4022_v26  ;;  %v4355_v26 = vld [vmem:[%s6152_s3 + $0x50] sm:$0xff] }
0x1254   :  { %v7311_v28 = vpack.c.bf16 %v4355_v26, %v4353_v25 }
0x1255   :  { %v4026_v55 = vmul.f32 %v4025_v31, %v4021_v20 }
0x12dc   :  { %v3933_v18 = vpop.xlane.xlu1 %3932 }
0x12dd   :  { %7622 = vrcp.f32 %v3933_v18  ;;  %v7307_v18 = vpack.c.bf16 %v4351_v48, %v4349_v52 }
0x12e7   :  { %v7623_v33 = vpop.eup %7622 }
0x12e8   :  { %v3935_v36 = vmul.f32 %v7623_v33, %v7619_v24  ;;  %v4350_v24 = vld [vmem:[%s6152_s3 + $0x28] sm:$0xff] }
0x12e9   :  { %v7305_v16 = vpack.c.bf16 %v4352_v8, %v4350_v24 }
0x12ea   :  { %v3936_v57 = vmul.f32 %v8343_v34, %v3935_v36 }
0x12ec   :  { %v4020_v38 = vmul.f32 %v6242_v9, %v3936_v57 }
0x12ee   :  { %v4027_v41 = vadd.f32 %v4026_v55, %v4020_v38 }
0x12f0   :  { %v4033_v37 = vsel %vm378_vm3, %v4027_v41, %v4031_v39 }
0x12f1   :  { %6938 = vmatmul.mubr.msk.f32.vlgmr.msra.gmra.mrb[50].mxu0 %vm151_vm1, %v4033_v37 }
0x12f2   :  { %7294 = vmatpush3.bf16.msra.mxu0 %v7939_v27  ;;  %6948 = vmatprep.mubr.msk.f32.mxu0 %vm7687_vm0, %v7688_v1 }
0x12f3   :  { %7295 = vmatprep.subr.bf16.mxu0 %v7685_v0 }
0x12f6   :  { %7297 = vmatpush3.bf16.msra.mxu0 %v7942_v29 }
0x12f7   :  { %7313 = vmatprep.subr.bf16.mxu0 %v7685_v0 }
0x1307   :  { %v3764_v63 = vpop.f32.mrb[46].mxu0 }
0x1308   :  { %v3835_v11 = vadd.f32 %v8360_v51, %v3764_v63  ;;  %v6904_v17 = vpop.f32.mrb[47].mxu0  ;;  %v3841_v51 = vmul.f32 %v3840_v49, %v8326_v43 }
0x130a   :  { %v3838_v13 = vadd.f32 %v8398_v45, %v3835_v11 }
0x130b   :  { %v4012_v14 = vpop.f32.mrb[48].mxu0 }
0x130c   :  { %7624 = vtanh.f32 %v3838_v13  ;;  %v4013_v27 = vadd.f32 %v8251_v47, %v4012_v14  ;;  %v6921_v30 = vpop.f32.mrb[49].mxu0  ;;  %v4521_v13 = vld [vmem:[%s6156_s23 + $0x8] sm:$0xff] }
0x130e   :  { %v4016_v34 = vmax.f32 %v4013_v27, 0.0  ;;  %v4523_v27 = vld [vmem:[%s6156_s23 + $0x18] sm:$0xff] }
0x1310   :  { %v4017_v60 = vsub.f32 0.0, %v4016_v34  ;;  %v4524_v34 = vld [vmem:[%s6156_s23 + $0x20] sm:$0xff] }
0x1312   :  { %v4018_v32 = vmul.f32 1.442695, %v4017_v60  ;;  %v4525_v60 = vld [vmem:[%s6156_s23 + $0x28] sm:$0xff] }
0x1314   :  { %7626 = vpow2.f32 %v4018_v32  ;;  %v8446_v32 = vpack.c.bf16 %v4525_v60, %v4524_v34 }
0x1316   :  { %v7625_v29 = vpop.eup %7624 }
0x1317   :  { %v3842_v46 = vmul.f32 %v7625_v29, %v8365_v5  ;;  %v4359_v29 = vlaneseq }
0x1319   :  { %v3843_v44 = vadd.f32 %v3842_v46, %v3841_v51  ;;  %v8456_v49 = vshrl.u32 %v4359_v29, 7  ;;  %v4357_v51 = vld [vmem:[%s6153_s28] sm:$0x3] }
0x131b   :  { %v8459_v46 = vsub.s32 0, %v8456_v49 }
0x131e   :  { %v7627_v56 = vpop.eup %7626 }
0x131f   :  { %v4028_v59 = vmul.f32 %v7627_v56, %v3843_v44  ;;  %v8462_v44 = vsub.s32 1, %v8456_v49  ;;  %v4362_v56 = vrot.slane %v4357_v51, %v8459_v46 }
0x1321   :  { %4185 = vrot.lane.b32.xlu1 %v4028_v59, %s7701_s2  ;;  %6931 = vmatmul.mubr.msk.f32.vlgmr.msra.gmra.mrb[42].mxu1 %vm237_vm2, %v4028_v59 }
0x1322   :  { %7300 = vmatpush3.bf16.msra.mxu1 %v7867_v54  ;;  %6955 = vmatprep.mubr.msk.f32.mxu1 %vm7687_vm0, %v7688_v1 }
0x1325   :  { %6956 = vmatmul.mubr.msk.f32.vlgmr.msra.gmra.mrb[44].mxu1 %vm151_vm1, %v4033_v37  ;;  %v6166_v37 = vld [vmem:[%s6139_s8] ss:$0 sm:$0xff] }
0x1326   :  { %4437 = vmatprep.mubr.f32.mxu1 %v7688_v1  ;;  %v308_v63 = vadd.f32 %v6166_v37, %v7814_v21  ;;  %v4522_v21 = vld [vmem:[%s6156_s23 + $0x10] sm:$0xff] }
0x1327   :  { %v8440_v30 = vpack.c.bf16 %v4523_v27, %v4522_v21 }
0x1393   :  { %v4186_v7 = vpop.permute.xlu1 %4185 }
0x13c4   :  { %v4176_v47 = vpop.f32.mrb[50].mxu0 }
0x13c5   :  { %v6939_v3 = vpop.f32.mrb[51].mxu0 }
0x13f4   :  { %v4103_v40 = vpop.f32.mrb[42].mxu1 }
0x13f5   :  { %v4177_v43 = vadd.f32 %v4176_v47, %v4103_v40  ;;  %v6932_v42 = vpop.f32.mrb[43].mxu1 }
0x13f7   :  { %v4180_v62 = vadd.f32 %v8298_v35, %v4177_v43  ;;  %v4346_v35 = vld [vmem:[%s6152_s3 + $0x8] sm:$0xff] }
0x13f8   :  { %v4330_v50 = vpop.f32.mrb[44].mxu1  ;;  %v7301_v12 = vpack.c.bf16 %v4348_v15, %v4346_v35 }
0x13f9   :  { %v4181_v2 = vmul.f32 0.5, %v4180_v62  ;;  %v6957_v4 = vpop.f32.mrb[45].mxu1 }
0x13fa   :  { %7302 = vmatprep.subr.bf16.mxu1 %v7301_v12 }
0x13fb   :  { %7628 = vtanh.f32 %v4181_v2  ;;  %7304 = vmatpush1.bf16.msra.mxu1 %v7303_v53 }
0x13fc   :  { %7306 = vmatprep.subr.bf16.mxu1 %v7305_v16 }
0x13ff   :  { %7308 = vmatpush1.bf16.msra.mxu1 %v7307_v18 }
0x1400   :  { %7310 = vmatprep.subr.bf16.mxu1 %v7309_v22 }
0x1403   :  { %7312 = vmatpush1.bf16.msra.mxu1 %v7311_v28 }
0x1404   :  { %7322 = vmatprep.subr.bf16.mxu1 %v7685_v0 }
0x1405   :  { %v7629_v5 = vpop.eup %7628 }
0x1406   :  { %v4183_v54 = vadd.f32 1.0, %v7629_v5 }
0x1408   :  { %v4184_v6 = vmul.f32 0.5, %v4183_v54 }
0x140a   :  { %v4188_v9 = vmul.f32 %v4186_v7, %v4184_v6  ;;  %v4336_v55 = vsub.f32 1.0, %v4184_v6 }
0x140c   :  { %4190 = vrot.lane.b32.xlu0 %v4188_v9, %s7708_s10  ;;  %v4337_v38 = vmul.f32 %v4336_v55, %v4028_v59  ;;  %v4366_v59 = vrot.slane %v4357_v51, %v8462_v44 }
0x147e   :  { %v4191_v23 = vpop.permute.xlu0 %4190 }
0x147f   :  { %6949 = vmatmul.mubr.msk.f32.vlgmr.msra.gmra.mrb[52].mxu0 %vm237_vm2, %v4191_v23 }
0x1480   :  { %6970 = vmatprep.mubr.msk.f32.mxu0 %vm7687_vm0, %v7688_v1 }
0x1552   :  { %v4260_v20 = vpop.f32.mrb[52].mxu0 }
0x1553   :  { %v4331_v31 = vadd.f32 %v4330_v50, %v4260_v20  ;;  %v6950_v33 = vpop.f32.mrb[53].mxu0 }
0x1555   :  { %v4334_v36 = vadd.f32 %v8398_v45, %v4331_v31  ;;  %v4520_v45 = vld [vmem:[%s6156_s23] sm:$0xff] }
0x1556   :  { %v8434_v14 = vpack.c.bf16 %v4521_v13, %v4520_v45 }
0x1557   :  { %7630 = vtanh.f32 %v4334_v36 }
0x1558   :  { %7315 = vmatpush3.bf16.msra.mxu0 %v8434_v14 }
0x1559   :  { %7316 = vmatprep.subr.bf16.mxu0 %v7685_v0 }
0x155c   :  { %7318 = vmatpush3.bf16.msra.mxu0 %v8440_v30 }
0x155d   :  { %7319 = vmatprep.subr.bf16.mxu0 %v7685_v0 }
0x1560   :  { %7321 = vmatpush3.bf16.msra.mxu0 %v8446_v32 }
0x1561   :  { %v7631_v57 = vpop.eup %7630  ;;  %7331 = vmatprep.subr.bf16.mxu0 %v7685_v0 }
0x1562   :  { %v4338_v39 = vmul.f32 %v7631_v57, %v4184_v6 }
0x1564   :  { %v4339_v41 = vadd.f32 %v4338_v39, %v4337_v38 }
0x1566   :  { %4341 = vrot.lane.b32.xlu1 %v4339_v41, %s7697_s12 }
0x15d8   :  { %v4342_v11 = vpop.permute.xlu1 %4341 }
0x15d9   :  { %v4344_v17 = vsel %vm151_vm1, %v308_v63, %v4342_v11  ;;  %v4491_v11 = vld [vmem:[%s6154_s5] sm:$0x3] }
0x15da   :  { %6251 = vmatmul.mubr.msk.f32.vlgmr.msra.gmra.mrb[46].mxu1 %vm4369_vm5, %v4344_v17  ;;  %v4505_v17 = vld [vmem:[%s6155_s17] sm:$0x3]  ;;  %v4496_v45 = vrot.slane %v4491_v11, %v8459_v46  ;;  %v4500_v60 = vrot.slane %v4491_v11, %v8462_v44 }
0x15db   :  { %6985 = vmatprep.mubr.msk.f32.mxu1 %vm7687_vm0, %v7688_v1  ;;  %7324 = vmatpush3.bf16.msra.mxu1 %v8434_v14  ;;  %v4510_v34 = vrot.slane %v4505_v17, %v8459_v46 }
0x15dc   :  { %7325 = vmatprep.subr.bf16.mxu1 %v7685_v0 }
0x15df   :  { %7327 = vmatpush3.bf16.msra.mxu1 %v8440_v30 }
0x15e0   :  { %7328 = vmatprep.subr.bf16.mxu1 %v7685_v0 }
0x15e3   :  { %7330 = vmatpush3.bf16.msra.mxu1 %v8446_v32 }
0x15e4   :  { %7340 = vmatprep.subr.bf16.mxu1 %v7685_v0 }
0x16ad   :  { %v4439_v47 = vpop.f32.mrb[46].mxu1 }
0x16ae   :  { %v4440_v3 = vadd.f32 %v4439_v47, %v4362_v56  ;;  %v4441_v40 = vpop.f32.mrb[47].mxu1  ;;  %v4514_v47 = vrot.slane %v4505_v17, %v8462_v44 }
0x16af   :  { %v4442_v43 = vadd.f32 %v4441_v40, %v4366_v59 }
0x16b0   :  { %v4444_v42 = vmax.f32 %v4440_v3, 0.0 }
0x16b1   :  { %v4445_v62 = vmax.f32 %v4442_v43, 0.0 }
0x16b2   :  { %v4447_v50 = vsel %vm4446_vm6, %v4444_v42, 0.0 }
0x16b3   :  { %v4448_v2 = vrot.slane %v4447_v50, 4  ;;  %v4455_v4 = vsel %vm4454_vm7, %v4445_v62, 0.0 }
0x16b4   :  { %v4456_v5 = vrot.slane %v4455_v4, 4 }
0x16b5   :  { %v4449_v54 = vadd.f32 %v4448_v2, %v4447_v50  ;;  %v6259_v2 = vld [vmem:[%s6158_s15] ss:$0 sm:$0xff] }
0x16b6   :  { %v4457_v6 = vadd.f32 %v4456_v5, %v4455_v4 }
0x16b7   :  { %v4450_v7 = vrot.slane %v4449_v54, 2 }
0x16b8   :  { %v4458_v9 = vrot.slane %v4457_v6, 2 }
0x16b9   :  { %v4451_v23 = vadd.f32 %v4450_v7, %v4449_v54 }
0x16ba   :  { %v4459_v35 = vadd.f32 %v4458_v9, %v4457_v6 }
0x16bb   :  { %v4452_v15 = vrot.slane %v4451_v23, 1 }
0x16bc   :  { %v4460_v10 = vrot.slane %v4459_v35, 1 }
0x16bd   :  { %v4453_v12 = vadd.f32 %v4452_v15, %v4451_v23 }
0x16be   :  { %v4461_v19 = vadd.f32 %v4460_v10, %v4459_v35 }
0x16bf   :  { %v4463_v24 = vmul.f32 0.25, %v4453_v12 }
0x16c0   :  { %v4464_v8 = vmul.f32 0.25, %v4461_v19 }
0x16c1   :  { %v4465_v53 = vsub.f32 %v4444_v42, %v4463_v24 }
0x16c2   :  { %v4466_v16 = vsub.f32 %v4445_v62, %v4464_v8 }
0x16c3   :  { %v4467_v52 = vmul.f32 %v4465_v53, %v4465_v53 }
0x16c4   :  { %v4468_v48 = vmul.f32 %v4466_v16, %v4466_v16 }
0x16c5   :  { %v4469_v58 = vsel %vm4446_vm6, %v4467_v52, 0.0 }
0x16c6   :  { %v4470_v61 = vrot.slane %v4469_v58, 4  ;;  %v4476_v18 = vsel %vm4454_vm7, %v4468_v48, 0.0 }
0x16c7   :  { %v4477_v22 = vrot.slane %v4476_v18, 4 }
0x16c8   :  { %v4471_v25 = vadd.f32 %v4470_v61, %v4469_v58 }
0x16c9   :  { %v4478_v26 = vadd.f32 %v4477_v22, %v4476_v18 }
0x16ca   :  { %v4472_v28 = vrot.slane %v4471_v25, 2 }
0x16cb   :  { %v4479_v20 = vrot.slane %v4478_v26, 2 }
0x16cc   :  { %v4473_v31 = vadd.f32 %v4472_v28, %v4471_v25 }
0x16cd   :  { %v4480_v33 = vadd.f32 %v4479_v20, %v4478_v26 }
0x16ce   :  { %v4474_v36 = vrot.slane %v4473_v31, 1 }
0x16cf   :  { %v4481_v55 = vrot.slane %v4480_v33, 1 }
0x16d0   :  { %v4475_v57 = vadd.f32 %v4474_v36, %v4473_v31 }
0x16d1   :  { %v4482_v38 = vadd.f32 %v4481_v55, %v4480_v33 }
0x16d2   :  { %v4483_v39 = vmul.f32 0.25, %v4475_v57 }
0x16d3   :  { %v4484_v41 = vmul.f32 0.25, %v4482_v38 }
0x16d4   :  { %v4485_v37 = vadd.f32 1e-05, %v4483_v39 }
0x16d5   :  { %v4486_v63 = vadd.f32 1e-05, %v4484_v41 }
0x16d6   :  { %7632 = vrsqrt.f32 %v4485_v37 }
0x16d7   :  { %7634 = vrsqrt.f32 %v4486_v63 }
0x16e0   :  { %v7633_v13 = vpop.eup %7632 }
0x16e1   :  { %v7635_v21 = vpop.eup %7634  ;;  %v4489_v27 = vmul.f32 %v7633_v13, %v4465_v53 }
0x16e2   :  { %v4490_v29 = vmul.f32 %v7635_v21, %v4466_v16 }
0x16e3   :  { %v4503_v51 = vmul.f32 %v4496_v45, %v4489_v27 }
0x16e4   :  { %v4504_v59 = vmul.f32 %v4500_v60, %v4490_v29 }
0x16e5   :  { %v8479_v56 = vadd.f32 %v4510_v34, %v4503_v51 }
0x16e6   :  { %v4518_v3 = vadd.f32 %v4514_v47, %v4504_v59 }
0x16e7   :  { %4683 = vrot.lane.b32.xlu1 %v8479_v56, %s7701_s2  ;;  %4608 = vrot.lane.b32.xlu0 %v8479_v56, %s7716_s18 }
0x16e8   :  { %6971 = vmatmul.mubr.msk.f32.vlgmr.msra.gmra.mrb[54].mxu0 %vm4369_vm5, %v8479_v56 }
0x16e9   :  { %7333 = vmatpush3.bf16.msra.mxu0 %v8434_v14  ;;  %7000 = vmatprep.mubr.msk.f32.mxu0 %vm7687_vm0, %v7688_v1 }
0x16ea   :  { %7334 = vmatprep.subr.bf16.mxu0 %v7685_v0 }
0x16eb   :  { %4760 = vrot.lane.b32.xlu1 %v4518_v3, %s7717_s19  ;;  %4685 = vrot.lane.b32.xlu0 %v4518_v3, %s7701_s2 }
0x16ed   :  { %7336 = vmatpush3.bf16.msra.mxu0 %v8440_v30 }
0x16ee   :  { %7337 = vmatprep.subr.bf16.mxu0 %v7685_v0 }
0x16ef   :  { %4834 = vrot.lane.b32.xlu0 %v4518_v3, %s7718_s21 }
0x16f1   :  { %7339 = vmatpush3.bf16.msra.mxu0 %v8446_v32 }
0x16f2   :  { %7349 = vmatprep.subr.bf16.mxu0 %v7685_v0 }
0x1759   :  { %v8498_v40 = vpop.permute.xlu0 %4608  ;;  %v4684_v43 = vpop.permute.xlu1 %4683 }
0x175a   :  { %6986 = vmatmul.mubr.msk.f32.vlgmr.msra.gmra.mrb[48].mxu1 %vm4369_vm5, %v8498_v40 }
0x175b   :  { %7342 = vmatpush3.bf16.msra.mxu1 %v8434_v14  ;;  %7015 = vmatprep.mubr.msk.f32.mxu1 %vm7687_vm0, %v7688_v1 }
0x175c   :  { %7343 = vmatprep.subr.bf16.mxu1 %v7685_v0 }
0x175d   :  { %v4686_v42 = vpop.permute.xlu0 %4685  ;;  %v8520_v50 = vpop.permute.xlu1 %4760 }
0x175e   :  { %v8507_v62 = vsel %vm237_vm2, %v4684_v43, %v4686_v42 }
0x175f   :  { %7345 = vmatpush3.bf16.msra.mxu1 %v8440_v30  ;;  %7001 = vmatmul.mubr.msk.f32.vlgmr.msra.gmra.mrb[56].mxu0 %vm4369_vm5, %v8507_v62 }
0x1760   :  { %7351 = vmatpush3.bf16.msra.mxu0 %v8434_v14  ;;  %7346 = vmatprep.subr.bf16.mxu1 %v7685_v0 }
0x1761   :  { %7352 = vmatprep.subr.bf16.mxu0 %v7685_v0  ;;  %7030 = vmatprep.mubr.msk.f32.mxu0 %vm7687_vm0, %v7688_v1  ;;  %v8529_v14 = vpop.permute.xlu0 %4834 }
0x1763   :  { %7348 = vmatpush3.bf16.msra.mxu1 %v8446_v32 }
0x1764   :  { %7354 = vmatpush3.bf16.msra.mxu0 %v8440_v30  ;;  %7358 = vmatprep.subr.bf16.mxu1 %v7685_v0  ;;  %v6258_v30 = vld [vmem:[%s6157_s7] ss:$0 sm:$0xff] }
0x1765   :  { %7355 = vmatprep.subr.bf16.mxu0 %v7685_v0 }
0x1766   :  { %7016 = vmatmul.mubr.msk.f32.vlgmr.msra.gmra.mrb[50].mxu1 %vm4369_vm5, %v8520_v50 }
0x1767   :  { %7053 = vmatprep.mubr.msk.f32.mxu1 %vm7687_vm0, %v7688_v1 }
0x1768   :  { %7357 = vmatpush3.bf16.msra.mxu0 %v8446_v32 }
0x1769   :  { %7373 = vmatprep.subr.bf16.mxu0 %v7685_v0 }
0x176b   :  { %7031 = vmatmul.mubr.msk.f32.vlgmr.msra.gmra.mrb[58].mxu0 %vm4369_vm5, %v8529_v14 }
0x176c   :  { %7076 = vmatprep.mubr.msk.f32.mxu0 %vm7687_vm0, %v7688_v1 }
0x17bb   :  { %v8541_v32 = vpop.f32.mrb[54].mxu0 }
0x17bc   :  { %v6972_v4 = vpop.f32.mrb[55].mxu0  ;;  %v4914_v5 = vmul.f32 %v6258_v30, %v8541_v32  ;;  %v4949_v6 = vmul.f32 %v6259_v2, %v8541_v32 }
0x17be   :  { %5253 = vrot.lane.b32.xlu0 %v4914_v5, %s7717_s19  ;;  %v4916_v54 = vsel %vm4915_vm8, %v4914_v5, 0.0  ;;  %v4950_v7 = vsel %vm4915_vm8, %v4949_v6, 0.0 }
0x17bf   :  { %4917 = vadd.xlane.f32.xlu1 %v4916_v54 }
0x17c2   :  { %5292 = vrot.lane.b32.xlu0 %v4949_v6, %s7717_s19 }
0x17c3   :  { %4951 = vadd.xlane.f32.xlu1 %v4950_v7  ;;  %v7721_v7 = vmov 0  }
0x17c4   :  { %7483 = vset.pattern.permute.xlu1 %v7721_v7  ;;  %7480 = vset.pattern.permute.xlu0 %v7721_v7 }
0x182d   :  { %v8549_v9 = vpop.f32.mrb[48].mxu1 }
0x182e   :  { %v6987_v23 = vpop.f32.mrb[49].mxu1  ;;  %v4919_v35 = vmul.f32 %v6258_v30, %v8549_v9  ;;  %v4953_v18 = vmul.f32 %v6259_v2, %v8549_v9 }
0x1830   :  { %v5254_v15 = vpop.permute.xlu0 %5253  ;;  %5260 = vrot.lane.b32.xlu0 %v4919_v35, %s7717_s19  ;;  %v4920_v22 = vsel %vm4915_vm8, %v4919_v35, 0.0  ;;  %v4954_v25 = vsel %vm4915_vm8, %v4953_v18, 0.0 }
0x1831   :  { %v5256_v10 = vsel %vm4915_vm8, %v5254_v15, 0.0 }
0x1832   :  { %5257 = vadd.xlane.f32.xlu1 %v5256_v10  ;;  %v8554_v12 = vpop.f32.mrb[56].mxu0 }
0x1833   :  { %v7002_v19 = vpop.f32.mrb[57].mxu0  ;;  %v4957_v24 = vmul.f32 %v6259_v2, %v8554_v12  ;;  %v4923_v26 = vmul.f32 %v6258_v30, %v8554_v12 }
0x1834   :  { %v5293_v31 = vpop.permute.xlu0 %5292 }
0x1835   :  { %v4958_v8 = vsel %vm4915_vm8, %v4957_v24, 0.0  ;;  %v5295_v33 = vsel %vm4915_vm8, %v5293_v31, 0.0  ;;  %v4924_v36 = vsel %vm4915_vm8, %v4923_v26, 0.0 }
0x1836   :  { %4959 = vadd.xlane.f32.xlu1 %v4958_v8 }
0x1839   :  { %v8558_v53 = vpop.f32.mrb[50].mxu1 }
0x183a   :  { %v7017_v16 = vpop.f32.mrb[51].mxu1  ;;  %v4927_v52 = vmul.f32 %v6258_v30, %v8558_v53  ;;  %v4961_v55 = vmul.f32 %v6259_v2, %v8558_v53 }
0x183c   :  { %v4928_v48 = vsel %vm4915_vm8, %v4927_v52, 0.0  ;;  %v4962_v57 = vsel %vm4915_vm8, %v4961_v55, 0.0 }
0x183d   :  { %4929 = vadd.xlane.f32.xlu1 %v4928_v48 }
0x183e   :  { %v8562_v58 = vpop.f32.mrb[58].mxu0 }
0x183f   :  { %v7032_v61 = vpop.f32.mrb[59].mxu0  ;;  %v4965_v28 = vmul.f32 %v6259_v2, %v8562_v58  ;;  %v4931_v38 = vmul.f32 %v6258_v30, %v8562_v58 }
0x1841   :  { %v4966_v20 = vsel %vm4915_vm8, %v4965_v28, 0.0  ;;  %v4932_v63 = vsel %vm4915_vm8, %v4931_v38, 0.0 }
0x184c   :  { %v4918_v13 = vpop.xlane.xlu1 %4917 }
0x184e   :  { %5299 = vrot.lane.b32.xlu1 %v4953_v18, %s7717_s19 }
0x184f   :  { %4921 = vadd.xlane.f32.xlu0 %v4920_v22 }
0x1850   :  { %v4952_v3 = vpop.xlane.xlu1 %4951 }
0x1853   :  { %4955 = vadd.xlane.f32.xlu0 %v4954_v25 }
0x1869   :  { %5267 = vrot.lane.b32.xlu0 %v4923_v26, %s7717_s19 }
0x1872   :  { %4967 = vadd.xlane.f32.xlu1 %v4966_v20 }
0x1876   :  { %5296 = vadd.xlane.f32.xlu1 %v5295_v33  ;;  %v7723_v33 = vmov 3  }
0x1888   :  { %4925 = vadd.xlane.f32.xlu0 %v4924_v36  ;;  %v7724_v36 = vmov 4  }
0x189e   :  { %5274 = vrot.lane.b32.xlu0 %v4927_v52, %s7717_s19 }
0x18a2   :  { %5306 = vrot.lane.b32.xlu0 %v4957_v24, %s7717_s19  ;;  %v5261_v39 = vpop.permute.xlu0 %5260 }
0x18a3   :  { %v5263_v11 = vsel %vm4915_vm8, %v5261_v39, 0.0 }
0x18a6   :  { %5313 = vrot.lane.b32.xlu0 %v4961_v55, %s7717_s19  ;;  %v7725_v55 = vmov 1  }
0x18bf   :  { %v5258_v43 = vpop.xlane.xlu1 %5257 }
0x18c3   :  { %v4960_v30 = vpop.xlane.xlu1 %4959 }
0x18c5   :  { %4963 = vadd.xlane.f32.xlu0 %v4962_v57 }
0x18ca   :  { %v4930_v23 = vpop.xlane.xlu1 %4929 }
0x18ce   :  { %v5300_v35 = vpop.permute.xlu1 %5299 }
0x18cf   :  { %v5302_v15 = vsel %vm4915_vm8, %v5300_v35, 0.0 }
0x18db   :  { %5281 = vrot.lane.b32.xlu0 %v4931_v38, %s7717_s19 }
0x18dc   :  { %v4922_v41 = vpop.xlane.xlu0 %4921 }
0x18dd   :  { %v4936_v21 = vsel %vm4935_vm9, %v4918_v13, %v4922_v41  ;;  %v4519_v41 = vld [vmem:[%s6135_s26] sm:$0x1f] }
0x18de   :  { %vm4982_vm13 = vcmp.gt.f32.partialorder %v4519_v41, 0.0 }
0x18df   :  { %v4983_v13 = vsel %vm4982_vm13, 1, %v7721_v7 }
0x18e0   :  { %v4956_v37 = vpop.xlane.xlu0 %4955 }
0x18e1   :  { %v4969_v42 = vsel %vm4935_vm9, %v4952_v3, %v4956_v37 }
0x18e2   :  { %v4970_v2 = vsel %vm4937_vm10, %v4969_v42, %v4960_v30 }
0x18e4   :  { %v5268_v17 = vpop.permute.xlu0 %5267 }
0x18e5   :  { %v5270_v45 = vsel %vm4915_vm8, %v5268_v17, 0.0 }
0x18fa   :  { %4933 = vadd.xlane.f32.xlu0 %v4932_v63 }
0x18fe   :  { %5264 = vadd.xlane.f32.xlu0 %v5263_v11 }
0x18ff   :  { %v4968_v57 = vpop.xlane.xlu1 %4967 }
0x1902   :  { %5271 = vadd.xlane.f32.xlu0 %v5270_v45 }
0x1903   :  { %v5297_v39 = vpop.xlane.xlu1 %5296 }
0x1915   :  { %v4926_v27 = vpop.xlane.xlu0 %4925 }
0x1916   :  { %v4938_v34 = vsel %vm4937_vm10, %v4936_v21, %v4926_v27 }
0x1917   :  { %v4940_v20 = vsel %vm4939_vm11, %v4938_v34, %v4930_v23  ;;  %v4987_v34 = vrot.slane %v4983_v13, %v8459_v46 }
0x1919   :  { %v5275_v60 = vpop.permute.xlu0 %5274  ;;  %vm8628_vm14 = vcmp.eq.s32.totalorder %v4987_v34, 1 }
0x191a   :  { %v5277_v29 = vsel %vm4915_vm8, %v5275_v60, 0.0 }
0x191b   :  { %5278 = vadd.xlane.f32.xlu0 %v5277_v29 }
0x191d   :  { %v5307_v51 = vpop.permute.xlu0 %5306 }
0x191e   :  { %v5309_v10 = vsel %vm4915_vm8, %v5307_v51, 0.0 }
0x1921   :  { %v5314_v59 = vpop.permute.xlu0 %5313 }
0x1922   :  { %v5316_v47 = vsel %vm4915_vm8, %v5314_v59, 0.0 }
0x1923   :  { %5317 = vadd.xlane.f32.xlu1 %v5316_v47 }
0x1952   :  { %v4964_v4 = vpop.xlane.xlu0 %4963 }
0x1953   :  { %v8591_v5 = vsel %vm4939_vm11, %v4970_v2, %v4964_v4 }
0x1954   :  { %v4972_v46 = vsel %vm4941_vm12, %v8591_v5, %v4968_v57  ;;  %v5097_v5 = vsub.s32 2, %v8456_v49 }
0x1956   :  { %v5282_v54 = vpop.permute.xlu0 %5281 }
0x1957   :  { %v5284_v6 = vsel %vm4915_vm8, %v5282_v54, 0.0 }
0x1958   :  { %5285 = vadd.xlane.f32.xlu0 %v5284_v6  ;;  %v5043_v6 = vrot.slane %v4983_v13, %v8462_v44 }
0x196e   :  { %5320 = vrot.lane.b32.xlu0 %v4965_v28, %s7717_s19  ;;  %v7722_v28 = vmov 2  }
0x1987   :  { %v4934_v19 = vpop.xlane.xlu0 %4933 }
0x1988   :  { %v4942_v31 = vsel %vm4941_vm12, %v4940_v20, %v4934_v19  ;;  %v5152_v19 = vsub.s32 3, %v8456_v49 }
0x198b   :  { %v5265_v24 = vpop.xlane.xlu0 %5264 }
0x198c   :  { %v5287_v52 = vsel %vm4935_vm9, %v5258_v43, %v5265_v24 }
0x198d   :  { %5303 = vadd.xlane.f32.xlu0 %v5302_v15 }
0x198f   :  { %v5272_v8 = vpop.xlane.xlu0 %5271 }
0x1990   :  { %v5288_v48 = vsel %vm4937_vm10, %v5287_v52, %v5272_v8 }
0x1991   :  { %5310 = vadd.xlane.f32.xlu0 %v5309_v10 }
0x19a8   :  { %v5279_v16 = vpop.xlane.xlu0 %5278 }
0x19a9   :  { %v5289_v61 = vsel %vm4939_vm11, %v5288_v48, %v5279_v16 }
0x19b0   :  { %v5318_v37 = vpop.xlane.xlu1 %5317 }
0x19e5   :  { %v5286_v18 = vpop.xlane.xlu0 %5285 }
0x19e6   :  { %v5290_v22 = vsel %vm4941_vm12, %v5289_v61, %v5286_v18  ;;  %v5098_v18 = vrot.slane %v4983_v13, %v5097_v5 }
0x19e7   :  { %5332 = vperm.xlu1 %7483, %v5290_v22  }
0x19e8   :  { %vm5099_vm13 = vcmp.eq.s32.totalorder %v5098_v18, 1 }
0x19e9   :  { %v5321_v25 = vpop.permute.xlu0 %5320 }
0x19ea   :  { %v5323_v26 = vsel %vm4915_vm8, %v5321_v25, 0.0  ;;  %v5207_v25 = vsub.s32 4, %v8456_v49 }
0x19eb   :  { %7485 = vset.pattern.permute.xlu1 %v7722_v28  ;;  %5324 = vadd.xlane.f32.xlu0 %v5323_v26 }
0x19ec   :  { %5432 = vperm.xlu1 %7485, %v5290_v22   ;;  %v5208_v41 = vrot.slane %v4983_v13, %v5207_v25 }
0x19f0   :  { %7486 = vset.pattern.permute.xlu1 %v7723_v33 }
0x19f1   :  { %5143 = vperm.xlu1 %7486, %v4942_v31  }
0x19f5   :  { %7487 = vset.pattern.permute.xlu1 %v7724_v36 }
0x19f6   :  { %5198 = vperm.xlu1 %7487, %v4942_v31  }
0x19fa   :  { %7488 = vset.pattern.permute.xlu1 %v7723_v33 }
0x19fb   :  { %5482 = vperm.xlu1 %7488, %v5290_v22  }
0x19ff   :  { %7489 = vset.pattern.permute.xlu1 %v7724_v36 }
0x1a00   :  { %5532 = vperm.xlu1 %7489, %v5290_v22  }
0x1a01   :  { %4975 = vperm.xlu0 %7480, %v4942_v31  }
0x1a04   :  { %7490 = vset.pattern.permute.xlu1 %v7721_v7 }
0x1a05   :  { %7481 = vset.pattern.permute.xlu0 %v7725_v55 }
0x1a06   :  { %5033 = vperm.xlu0 %7481, %v4942_v31  }
0x1a0a   :  { %7482 = vset.pattern.permute.xlu0 %v7722_v28 }
0x1a0b   :  { %5088 = vperm.xlu0 %7482, %v4942_v31  }
0x1a0f   :  { %7484 = vset.pattern.permute.xlu0 %v7725_v55 }
0x1a10   :  { %5382 = vperm.xlu0 %7484, %v5290_v22   ;;  %v5153_v22 = vrot.slane %v4983_v13, %v5152_v19 }
0x1a14   :  { %7497 = vset.pattern.permute.xlu0 %v7722_v28 }
0x1a1a   :  { %v5304_v38 = vpop.xlane.xlu0 %5303 }
0x1a1b   :  { %v5326_v11 = vsel %vm4935_vm9, %v5297_v39, %v5304_v38  ;;  %vm8649_vm9 = vcmp.eq.s32.totalorder %v5043_v6, 1 }
0x1a1e   :  { %v5311_v63 = vpop.xlane.xlu0 %5310 }
0x1a1f   :  { %v5327_v17 = vsel %vm4937_vm10, %v5326_v11, %v5311_v63 }
0x1a20   :  { %v5328_v21 = vsel %vm4939_vm11, %v5327_v17, %v5318_v37 }
0x1a66   :  { %v5333_v45 = vpop.permute.xlu1 %5332 }
0x1a6b   :  { %v5433_v51 = vpop.permute.xlu1 %5432 }
0x1a70   :  { %v5144_v4 = vpop.permute.xlu1 %5143 }
0x1a71   :  { %v5146_v24 = vadd.f32 %v5144_v4, %v4972_v46 }
0x1a73   :  { %v5148_v26 = vmul.f32 0.2, %v5146_v24  ;;  %vm5147_vm10 = vcmp.gt.f32.partialorder %v5146_v24, 0.0 }
0x1a75   :  { %v5199_v16 = vpop.permute.xlu1 %5198  ;;  %v5149_v17 = vsel %vm5147_vm10, %v5146_v24, %v5148_v26 }
0x1a76   :  { %v5201_v20 = vadd.f32 %v5199_v16, %v4972_v46 }
0x1a78   :  { %v5325_v27 = vpop.xlane.xlu0 %5324  ;;  %v5203_v37 = vmul.f32 0.2, %v5201_v20 }
0x1a79   :  { %v8625_v60 = vsel %vm4941_vm12, %v5328_v21, %v5325_v27  ;;  %vm5154_vm12 = vcmp.eq.s32.totalorder %v5153_v22, 1 }
0x1a7a   :  { %v5335_v29 = vadd.f32 %v5333_v45, %v8625_v60  ;;  %v5483_v27 = vpop.permute.xlu1 %5482  ;;  %v5155_v34 = vsel %vm5154_vm12, %v5149_v17, -1e+09  ;;  %v5435_v13 = vadd.f32 %v5433_v51, %v8625_v60 }
0x1a7c   :  { %vm5336_vm15 = vcmp.gt.f32.partialorder %v5335_v29, 0.0  ;;  %v5337_v47 = vmul.f32 0.2, %v5335_v29 }
0x1a7e   :  { %v5338_v3 = vsel %vm5336_vm15, %v5335_v29, %v5337_v47  ;;  %vm5209_vm15 = vcmp.eq.s32.totalorder %v5208_v41, 1  ;;  %v5156_v47 = vsel %vm4990_vm4, %v5155_v34, -inf }
0x1a7f   :  { %v8634_v43 = vsel %vm8628_vm14, %v5338_v3, -1e+09 }
0x1a80   :  { %v4976_v42 = vpop.permute.xlu0 %4975  ;;  %v5340_v30 = vsel %vm4990_vm4, %v8634_v43, -inf }
0x1a81   :  { %v4978_v2 = vadd.f32 %v4976_v42, %v4972_v46  ;;  %5341 = vmax.xlane.f32.xlu0 %v5340_v30  ;;  %v5437_v30 = vmul.f32 0.2, %v5435_v13 }
0x1a83   :  { %v4980_v54 = vmul.f32 0.2, %v4978_v2  ;;  %vm4979_vm7 = vcmp.gt.f32.partialorder %v4978_v2, 0.0 }
0x1a85   :  { %v5034_v23 = vpop.permute.xlu0 %5033  ;;  %v4981_v35 = vsel %vm4979_vm7, %v4978_v2, %v4980_v54  ;;  %v5533_v2 = vpop.permute.xlu1 %5532 }
0x1a86   :  { %v5036_v15 = vadd.f32 %v5034_v23, %v4972_v46  ;;  %v8643_v10 = vsel %vm8628_vm14, %v4981_v35, -1e+09  ;;  %vm5202_vm14 = vcmp.gt.f32.partialorder %v5201_v20, 0.0  ;;  %v5535_v51 = vadd.f32 %v5533_v2, %v8625_v60 }
0x1a87   :  { %v4991_v8 = vsel %vm4990_vm4, %v8643_v10, -inf  ;;  %v5204_v59 = vsel %vm5202_vm14, %v5201_v20, %v5203_v37 }
0x1a88   :  { %v5038_v52 = vmul.f32 0.2, %v5036_v15  ;;  %4992 = vmax.xlane.f32.xlu1 %v4991_v8  ;;  %vm5037_vm8 = vcmp.gt.f32.partialorder %v5036_v15, 0.0  ;;  %v5210_v3 = vsel %vm5209_vm15, %v5204_v59, -1e+09 }
0x1a89   :  { %v5211_v4 = vsel %vm4990_vm4, %v5210_v3, -inf  ;;  %v5537_v5 = vmul.f32 0.2, %v5535_v51 }
0x1a8a   :  { %v5089_v48 = vpop.permute.xlu0 %5088  ;;  %v5039_v61 = vsel %vm5037_vm8, %v5036_v15, %v5038_v52  ;;  %vm5436_vm8 = vcmp.gt.f32.partialorder %v5435_v13, 0.0 }
0x1a8b   :  { %v5091_v31 = vadd.f32 %v5089_v48, %v4972_v46  ;;  %v5045_v57 = vsel %vm8649_vm9, %v5039_v61, -1e+09  ;;  %v5485_v46 = vadd.f32 %v5483_v27, %v8625_v60  ;;  %v5438_v23 = vsel %vm5436_vm8, %v5435_v13, %v5437_v30 }
0x1a8c   :  { %v5046_v38 = vsel %vm4990_vm4, %v5045_v57, -inf  ;;  %v5439_v15 = vsel %vm5099_vm13, %v5438_v23, -1e+09 }
0x1a8d   :  { %v5093_v39 = vmul.f32 0.2, %v5091_v31  ;;  %5047 = vmax.xlane.f32.xlu1 %v5046_v38  ;;  %vm5092_vm11 = vcmp.gt.f32.partialorder %v5091_v31, 0.0  ;;  %v5487_v6 = vmul.f32 0.2, %v5485_v46  ;;  %vm5486_vm10 = vcmp.gt.f32.partialorder %v5485_v46, 0.0 }
0x1a8e   :  { %v5440_v24 = vsel %vm4990_vm4, %v5439_v15, -inf }
0x1a8f   :  { %v5383_v63 = vpop.permute.xlu0 %5382  ;;  %v5094_v11 = vsel %vm5092_vm11, %v5091_v31, %v5093_v39  ;;  %v5488_v19 = vsel %vm5486_vm10, %v5485_v46, %v5487_v6  ;;  %vm5536_vm11 = vcmp.gt.f32.partialorder %v5535_v51, 0.0 }
0x1a90   :  { %v5385_v49 = vadd.f32 %v5383_v63, %v8625_v60  ;;  %v5100_v45 = vsel %vm5099_vm13, %v5094_v11, -1e+09  ;;  %v5489_v8 = vsel %vm5154_vm12, %v5488_v19, -1e+09  ;;  %v5538_v16 = vsel %vm5536_vm11, %v5535_v51, %v5537_v5 }
0x1a91   :  { %v5101_v21 = vsel %vm4990_vm4, %v5100_v45, -inf  ;;  %v5490_v52 = vsel %vm4990_vm4, %v5489_v8, -inf  ;;  %v5539_v60 = vsel %vm5209_vm15, %v5538_v16, -1e+09  ;;  %vm5606_vm12 = vcmask 785408  }
0x1a92   :  { %5102 = vmax.xlane.f32.xlu1 %v5101_v21  ;;  %v5387_v29 = vmul.f32 0.2, %v5385_v49  ;;  %vm5386_vm7 = vcmp.gt.f32.partialorder %v5385_v49, 0.0  ;;  %v5540_v44 = vsel %vm4990_vm4, %v5539_v60, -inf }
0x1a94   :  { %v5388_v42 = vsel %vm5386_vm7, %v5385_v49, %v5387_v29 }
0x1a95   :  { %v5389_v54 = vsel %vm8649_vm9, %v5388_v42, -1e+09  ;;  %vm5612_vm9 = vcmask 261124  }
0x1a96   :  { %5157 = vmax.xlane.f32.xlu1 %v5156_v47  ;;  %v5390_v35 = vsel %vm4990_vm4, %v5389_v54, -inf  ;;  %vm5613_vm13 = vmor %vm5612_vm9, %vm4446_vm6  ;;  %vm6120_vm6 = vcmask 322560  }
0x1a9a   :  { %5212 = vmax.xlane.f32.xlu1 %v5211_v4 }
0x1a9e   :  { %5391 = vmax.xlane.f32.xlu1 %v5390_v35 }
0x1aa2   :  { %5441 = vmax.xlane.f32.xlu1 %v5440_v24 }
0x1aa6   :  { %5491 = vmax.xlane.f32.xlu1 %v5490_v52 }
0x1aaa   :  { %5541 = vmax.xlane.f32.xlu1 %v5540_v44 }
0x1b0e   :  { %v5342_v39 = vpop.xlane.xlu0 %5341 }
0x1b15   :  { %v4993_v48 = vpop.xlane.xlu1 %4992 }
0x1b16   :  { %v4994_v61 = vsub.f32 %v8643_v10, %v4993_v48  ;;  %v5343_v10 = vsub.f32 %v8634_v43, %v5342_v39 }
0x1b18   :  { %v4995_v18 = vmul.f32 1.442695, %v4994_v61  ;;  %v5344_v27 = vmul.f32 1.442695, %v5343_v10 }
0x1b1a   :  { %7636 = vpow2.f32 %v4995_v18  ;;  %v5048_v25 = vpop.xlane.xlu1 %5047 }
0x1b1b   :  { %v5049_v26 = vsub.f32 %v5045_v57, %v5048_v25 }
0x1b1d   :  { %v5050_v20 = vmul.f32 1.442695, %v5049_v26 }
0x1b1f   :  { %7638 = vpow2.f32 %v5050_v20  ;;  %v5103_v22 = vpop.xlane.xlu1 %5102 }
0x1b20   :  { %v5104_v31 = vsub.f32 %v5100_v45, %v5103_v22 }
0x1b22   :  { %v5105_v38 = vmul.f32 1.442695, %v5104_v31 }
0x1b23   :  { %v5158_v37 = vpop.xlane.xlu1 %5157 }
0x1b24   :  { %v8677_v63 = vpop.eup %7636  ;;  %7640 = vpow2.f32 %v5105_v38  ;;  %v5159_v41 = vsub.f32 %v5155_v34, %v5158_v37 }
0x1b25   :  { %v4997_v11 = vsel %vm4990_vm4, %v8677_v63, 0.0 }
0x1b26   :  { %v5160_v17 = vmul.f32 1.442695, %v5159_v41  ;;  %4998 = vadd.xlane.f32.xlu1 %v4997_v11 }
0x1b27   :  { %v5213_v49 = vpop.xlane.xlu1 %5212 }
0x1b28   :  { %7642 = vpow2.f32 %v5160_v17  ;;  %v5214_v57 = vsub.f32 %v5210_v3, %v5213_v49 }
0x1b29   :  { %v7639_v21 = vpop.eup %7638 }
0x1b2a   :  { %v5215_v45 = vmul.f32 1.442695, %v5214_v57  ;;  %v5052_v29 = vsel %vm4990_vm4, %v7639_v21, 0.0 }
0x1b2b   :  { %5053 = vadd.xlane.f32.xlu0 %v5052_v29  ;;  %v5392_v59 = vpop.xlane.xlu1 %5391 }
0x1b2c   :  { %7644 = vpow2.f32 %v5215_v45  ;;  %v5393_v13 = vsub.f32 %v5389_v54, %v5392_v59 }
0x1b2d   :  { %7646 = vpow2.f32 %v5344_v27 }
0x1b2e   :  { %v7641_v34 = vpop.eup %7640  ;;  %v5394_v47 = vmul.f32 1.442695, %v5393_v13 }
0x1b2f   :  { %v5442_v46 = vpop.xlane.xlu1 %5441  ;;  %v5107_v43 = vsel %vm4990_vm4, %v7641_v34, 0.0 }
0x1b30   :  { %7648 = vpow2.f32 %v5394_v47  ;;  %v5443_v42 = vsub.f32 %v5439_v15, %v5442_v46  ;;  %5108 = vadd.xlane.f32.xlu1 %v5107_v43 }
0x1b32   :  { %v8684_v30 = vpop.eup %7642  ;;  %v5444_v3 = vmul.f32 1.442695, %v5443_v42 }
0x1b33   :  { %v5492_v2 = vpop.xlane.xlu1 %5491  ;;  %v5162_v4 = vsel %vm4990_vm4, %v8684_v30, 0.0 }
0x1b34   :  { %7650 = vpow2.f32 %v5444_v3  ;;  %v5493_v6 = vsub.f32 %v5489_v8, %v5492_v2  ;;  %5163 = vadd.xlane.f32.xlu1 %v5162_v4 }
0x1b36   :  { %v8688_v54 = vpop.eup %7644  ;;  %v5494_v51 = vmul.f32 1.442695, %v5493_v6 }
0x1b37   :  { %v5542_v23 = vpop.xlane.xlu1 %5541  ;;  %v5217_v35 = vsel %vm4990_vm4, %v8688_v54, 0.0  ;;  %v8692_v5 = vpop.eup %7646 }
0x1b38   :  { %7652 = vpow2.f32 %v5494_v51  ;;  %v5543_v15 = vsub.f32 %v5539_v60, %v5542_v23  ;;  %5218 = vadd.xlane.f32.xlu1 %v5217_v35  ;;  %v5346_v8 = vsel %vm4990_vm4, %v8692_v5, 0.0 }
0x1b3a   :  { %v8694_v19 = vpop.eup %7648  ;;  %v5544_v24 = vmul.f32 1.442695, %v5543_v15 }
0x1b3b   :  { %v5396_v16 = vsel %vm4990_vm4, %v8694_v19, 0.0 }
0x1b3c   :  { %7654 = vpow2.f32 %v5544_v24  ;;  %5397 = vadd.xlane.f32.xlu0 %v5396_v16  ;;  %5347 = vadd.xlane.f32.xlu1 %v5346_v8 }
0x1b3e   :  { %v7651_v52 = vpop.eup %7650 }
0x1b3f   :  { %v5446_v44 = vsel %vm4990_vm4, %v7651_v52, 0.0 }
0x1b40   :  { %5447 = vadd.xlane.f32.xlu0 %v5446_v44 }
0x1b42   :  { %v8701_v48 = vpop.eup %7652 }
0x1b43   :  { %v5496_v60 = vsel %vm4990_vm4, %v8701_v48, 0.0 }
0x1b44   :  { %5497 = vadd.xlane.f32.xlu1 %v5496_v60 }
0x1b46   :  { %v8705_v61 = vpop.eup %7654 }
0x1b47   :  { %v5546_v18 = vsel %vm4990_vm4, %v8705_v61, 0.0  ;;  %vm5637_vm4 = vcmask 654336  }
0x1b48   :  { %5547 = vadd.xlane.f32.xlu1 %v5546_v18 }
0x1bb3   :  { %v4999_v25 = vpop.xlane.xlu1 %4998 }
0x1bb4   :  { %7656 = vrcp.f32 %v4999_v25 }
0x1bb8   :  { %v5054_v26 = vpop.xlane.xlu0 %5053 }
0x1bb9   :  { %7658 = vrcp.f32 %v5054_v26 }
0x1bbd   :  { %v5109_v20 = vpop.xlane.xlu1 %5108 }
0x1bbe   :  { %v7657_v22 = vpop.eup %7656  ;;  %7660 = vrcp.f32 %v5109_v20 }
0x1bbf   :  { %v5001_v31 = vmul.f32 %v7657_v22, %v8677_v63 }
0x1bc1   :  { %v5164_v38 = vpop.xlane.xlu1 %5163  ;;  %5004 = vperm.xlu1 %7490, %v5001_v31  }
0x1bc2   :  { %7662 = vrcp.f32 %v5164_v38 }
0x1bc3   :  { %v7659_v39 = vpop.eup %7658 }
0x1bc4   :  { %v5056_v37 = vmul.f32 %v7659_v39, %v7639_v21 }
0x1bc5   :  { %7491 = vset.pattern.permute.xlu1 %v7725_v55  ;;  %v5219_v41 = vpop.xlane.xlu1 %5218 }
0x1bc6   :  { %5009 = vperm.xlu1 %7491, %v5001_v31   ;;  %5070 = vperm.xlu0 %7497, %v5056_v37  }
0x1bc8   :  { %v7661_v11 = vpop.eup %7660 }
0x1bc9   :  { %v5111_v10 = vmul.f32 %v7661_v11, %v7641_v34  ;;  %v5398_v17 = vpop.xlane.xlu0 %5397  ;;  %v5348_v63 = vpop.xlane.xlu1 %5347 }
0x1bca   :  { %7492 = vset.pattern.permute.xlu1 %v7722_v28  ;;  %7500 = vset.pattern.permute.xlu0 %v7721_v7  ;;  %7664 = vrcp.f32 %v5348_v63 }
0x1bcb   :  { %5015 = vperm.xlu1 %7492, %v5001_v31   ;;  %5114 = vperm.xlu0 %7500, %v5111_v10  }
0x1bcc   :  { %v7663_v49 = vpop.eup %7662 }
0x1bcd   :  { %v5448_v57 = vpop.xlane.xlu0 %5447  ;;  %v8716_v21 = vmul.f32 %v7663_v49, %v8684_v30 }
0x1bce   :  { %7666 = vrcp.f32 %v5448_v57 }
0x1bcf   :  { %7493 = vset.pattern.permute.xlu1 %v7723_v33  ;;  %7503 = vset.pattern.permute.xlu0 %v7723_v33  ;;  %7668 = vrcp.f32 %v5398_v17 }
0x1bd0   :  { %5021 = vperm.xlu1 %7493, %v5001_v31   ;;  %5131 = vperm.xlu0 %7503, %v5111_v10  }
0x1bd1   :  { %v5498_v59 = vpop.xlane.xlu1 %5497 }
0x1bd2   :  { %7670 = vrcp.f32 %v5498_v59 }
0x1bd4   :  { %7494 = vset.pattern.permute.xlu1 %v7724_v36  ;;  %7505 = vset.pattern.permute.xlu0 %v7721_v7  ;;  %v7665_v27 = vpop.eup %7664 }
0x1bd5   :  { %5027 = vperm.xlu1 %7494, %v5001_v31   ;;  %5169 = vperm.xlu0 %7505, %v8716_v21   ;;  %v8725_v45 = vmul.f32 %v7665_v27, %v8692_v5  ;;  %v5548_v34 = vpop.xlane.xlu1 %5547 }
0x1bd6   :  { %7672 = vrcp.f32 %v5548_v34 }
0x1bd7   :  { %7674 = vrcp.f32 %v5219_v41 }
0x1bd8   :  { %v7667_v29 = vpop.eup %7666 }
0x1bd9   :  { %7495 = vset.pattern.permute.xlu1 %v7721_v7  ;;  %7510 = vset.pattern.permute.xlu0 %v7723_v33  ;;  %v8730_v13 = vmul.f32 %v7667_v29, %v7651_v52  ;;  %v7669_v47 = vpop.eup %7668 }
0x1bda   :  { %5186 = vperm.xlu0 %7510, %v8716_v21   ;;  %5059 = vperm.xlu1 %7495, %v5056_v37   ;;  %v5400_v46 = vmul.f32 %v7669_v47, %v8694_v19 }
0x1bdc   :  { %v7671_v43 = vpop.eup %7670 }
0x1bdd   :  { %v8742_v42 = vmul.f32 %v7671_v43, %v8701_v48  ;;  %v5620_v43 = vld [vmem:[%s8824_s1] sm:$0xff] }
0x1bde   :  { %7517 = vset.pattern.permute.xlu0 %v7724_v36  ;;  %7496 = vset.pattern.permute.xlu1 %v7725_v55 }
0x1bdf   :  { %5376 = vperm.xlu0 %7517, %v8725_v45   ;;  %5064 = vperm.xlu1 %7496, %v5056_v37  }
0x1be0   :  { %v7673_v30 = vpop.eup %7672 }
0x1be1   :  { %v8748_v3 = vmul.f32 %v7673_v30, %v8705_v61  ;;  %v7675_v2 = vpop.eup %7674  ;;  %v5622_v30 = vld [vmem:[%s8824_s1 + $0x10] sm:$0xff] }
0x1be2   :  { %v8758_v4 = vmul.f32 %v7675_v2, %v8688_v54 }
0x1be3   :  { %7520 = vset.pattern.permute.xlu0 %v7721_v7  ;;  %7498 = vset.pattern.permute.xlu1 %v7723_v33 }
0x1be4   :  { %5076 = vperm.xlu1 %7498, %v5056_v37   ;;  %5453 = vperm.xlu0 %7520, %v8730_v13  }
0x1be8   :  { %7499 = vset.pattern.permute.xlu1 %v7724_v36  ;;  %7522 = vset.pattern.permute.xlu0 %v7722_v28 }
0x1be9   :  { %5082 = vperm.xlu1 %7499, %v5056_v37   ;;  %5464 = vperm.xlu0 %7522, %v8730_v13  }
0x1bed   :  { %7501 = vset.pattern.permute.xlu1 %v7725_v55  ;;  %7524 = vset.pattern.permute.xlu0 %v7724_v36 }
0x1bee   :  { %5119 = vperm.xlu1 %7501, %v5111_v10   ;;  %5426 = vperm.xlu0 %7524, %v5400_v46  }
0x1bf2   :  { %7502 = vset.pattern.permute.xlu1 %v7722_v28  ;;  %7527 = vset.pattern.permute.xlu0 %v7725_v55 }
0x1bf3   :  { %5125 = vperm.xlu1 %7502, %v5111_v10   ;;  %5508 = vperm.xlu0 %7527, %v8742_v42  }
0x1bf7   :  { %7504 = vset.pattern.permute.xlu1 %v7724_v36  ;;  %7528 = vset.pattern.permute.xlu0 %v7721_v7 }
0x1bf8   :  { %5137 = vperm.xlu1 %7504, %v5111_v10   ;;  %5553 = vperm.xlu0 %7528, %v8748_v3  }
0x1bfc   :  { %7506 = vset.pattern.permute.xlu1 %v7725_v55  ;;  %7530 = vset.pattern.permute.xlu0 %v7722_v28 }
0x1bfd   :  { %5174 = vperm.xlu1 %7506, %v8716_v21   ;;  %5514 = vperm.xlu0 %7530, %v8742_v42  }
0x1c01   :  { %7507 = vset.pattern.permute.xlu1 %v7721_v7  ;;  %7533 = vset.pattern.permute.xlu0 %v7723_v33 }
0x1c02   :  { %5224 = vperm.xlu1 %7507, %v8758_v4   ;;  %5570 = vperm.xlu0 %7533, %v8748_v3  }
0x1c06   :  { %7508 = vset.pattern.permute.xlu1 %v7725_v55  ;;  %7534 = vset.pattern.permute.xlu0 %v7724_v36 }
0x1c07   :  { %5229 = vperm.xlu1 %7508, %v8758_v4   ;;  %5526 = vperm.xlu0 %7534, %v8742_v42  }
0x1c0b   :  { %7509 = vset.pattern.permute.xlu1 %v7722_v28 }
0x1c0c   :  { %5180 = vperm.xlu1 %7509, %v8716_v21  }
0x1c10   :  { %5235 = vperm.xlu1 %7509, %v8758_v4  }
0x1c14   :  { %7511 = vset.pattern.permute.xlu1 %v7723_v33 }
0x1c15   :  { %5241 = vperm.xlu1 %7511, %v8758_v4  }
0x1c19   :  { %7512 = vset.pattern.permute.xlu1 %v7724_v36 }
0x1c1a   :  { %5192 = vperm.xlu1 %7512, %v8716_v21  }
0x1c1e   :  { %7513 = vset.pattern.permute.xlu1 %v7721_v7 }
0x1c1f   :  { %5353 = vperm.xlu1 %7513, %v8725_v45  }
0x1c23   :  { %7514 = vset.pattern.permute.xlu1 %v7725_v55 }
0x1c24   :  { %5358 = vperm.xlu1 %7514, %v8725_v45  }
0x1c28   :  { %7515 = vset.pattern.permute.xlu1 %v7722_v28 }
0x1c29   :  { %5364 = vperm.xlu1 %7515, %v8725_v45  }
0x1c2d   :  { %7516 = vset.pattern.permute.xlu1 %v7723_v33 }
0x1c2e   :  { %5370 = vperm.xlu1 %7516, %v8725_v45  }
0x1c32   :  { %7518 = vset.pattern.permute.xlu1 %v7721_v7 }
0x1c33   :  { %5403 = vperm.xlu1 %7518, %v5400_v46  }
0x1c37   :  { %7519 = vset.pattern.permute.xlu1 %v7725_v55 }
0x1c38   :  { %5408 = vperm.xlu1 %7519, %v5400_v46  }
0x1c3c   :  { %5458 = vperm.xlu1 %7519, %v8730_v13  }
0x1c40   :  { %v5005_v6 = vpop.permute.xlu1 %5004  ;;  %7521 = vset.pattern.permute.xlu1 %v7722_v28 }
0x1c41   :  { %v5007_v54 = vmul.f32 %v5005_v6, %v8541_v32  ;;  %5414 = vperm.xlu1 %7521, %v5400_v46  }
0x1c45   :  { %v5010_v51 = vpop.permute.xlu1 %5009  ;;  %7523 = vset.pattern.permute.xlu1 %v7723_v33  ;;  %v5071_v18 = vpop.permute.xlu0 %5070 }
0x1c46   :  { %v5012_v23 = vmul.f32 %v5010_v51, %v8549_v9  ;;  %5420 = vperm.xlu1 %7523, %v5400_v46   ;;  %v5073_v26 = vmul.f32 %v5071_v18, %v8554_v12 }
0x1c48   :  { %v5013_v35 = vadd.f32 %v5012_v23, %v5007_v54  ;;  %v5624_v23 = vld [vmem:[%s8824_s1 + $0x20] sm:$0xff] }
0x1c4a   :  { %v5016_v5 = vpop.permute.xlu1 %5015  ;;  %5470 = vperm.xlu1 %7523, %v8730_v13   ;;  %v5115_v37 = vpop.permute.xlu0 %5114 }
0x1c4b   :  { %v5018_v15 = vmul.f32 %v5016_v5, %v8554_v12  ;;  %v5117_v11 = vmul.f32 %v5115_v37, %v8541_v32 }
0x1c4d   :  { %v5019_v19 = vadd.f32 %v5018_v15, %v5013_v35  ;;  %v5625_v35 = vld [vmem:[%s8824_s1 + $0x28] sm:$0xff] }
0x1c4e   :  { %7525 = vset.pattern.permute.xlu1 %v7724_v36  ;;  %v7365_v5 = vpack.c.bf16 %v5625_v35, %v5624_v23  ;;  %v8871_v35 = vld [vmem:[%s6159_s9] ss:$0 sm:$0xff] }
0x1c4f   :  { %v5022_v24 = vpop.permute.xlu1 %5021  ;;  %5476 = vperm.xlu1 %7525, %v8730_v13   ;;  %v5132_v63 = vpop.permute.xlu0 %5131 }
0x1c50   :  { %v5024_v16 = vmul.f32 %v5022_v24, %v8558_v53  ;;  %v5134_v57 = vmul.f32 %v5132_v63, %v8558_v53  ;;  %v5627_v24 = vld [vmem:[%s8824_s1 + $0x38] sm:$0xff] }
0x1c52   :  { %v5025_v8 = vadd.f32 %v5024_v16, %v5019_v19  ;;  %v5626_v19 = vld [vmem:[%s8824_s1 + $0x30] sm:$0xff] }
0x1c53   :  { %7526 = vset.pattern.permute.xlu1 %v7721_v7 }
0x1c54   :  { %v5028_v52 = vpop.permute.xlu1 %5027  ;;  %5503 = vperm.xlu1 %7526, %v8742_v42   ;;  %v5170_v59 = vpop.permute.xlu0 %5169 }
0x1c55   :  { %v5030_v44 = vmul.f32 %v5028_v52, %v8562_v58  ;;  %v5172_v47 = vmul.f32 %v5170_v59, %v8541_v32  ;;  %v7368_v52 = vpack.c.bf16 %v5627_v24, %v5626_v19  ;;  %v6263_v59 = vld [vmem:[%s8824_s1 + $0x58] sm:$0xff]  ;;  %v6269_v19 = vld [vmem:[%s8824_s1 + $0x88] sm:$0xff] }
0x1c57   :  { %v8798_v48 = vadd.f32 %v5030_v44, %v5025_v8  ;;  %v5628_v44 = vld [vmem:[%s8824_s1 + $0x40] sm:$0xff] }
0x1c58   :  { %7529 = vset.pattern.permute.xlu1 %v7725_v55 }
0x1c59   :  { %v5060_v60 = vpop.permute.xlu1 %5059  ;;  %5558 = vperm.xlu1 %7529, %v8748_v3  }
0x1c5a   :  { %v5062_v61 = vmul.f32 %v5060_v60, %v8541_v32  ;;  %v5629_v60 = vld [vmem:[%s8824_s1 + $0x48] sm:$0xff] }
0x1c5d   :  { %7531 = vset.pattern.permute.xlu1 %v7722_v28 }
0x1c5e   :  { %v5065_v25 = vpop.permute.xlu1 %5064  ;;  %5564 = vperm.xlu1 %7531, %v8748_v3  }
0x1c5f   :  { %v5067_v7 = vmul.f32 %v5065_v25, %v8549_v9 }
0x1c61   :  { %v5068_v20 = vadd.f32 %v5067_v7, %v5062_v61  ;;  %v5187_v61 = vpop.permute.xlu0 %5186  ;;  %v7371_v7 = vpack.c.bf16 %v5629_v60, %v5628_v44  ;;  %v6270_v60 = vld [vmem:[%s8824_s1 + $0x90] sm:$0xff] }
0x1c62   :  { %7532 = vset.pattern.permute.xlu1 %v7723_v33 }
0x1c63   :  { %v5077_v22 = vpop.permute.xlu1 %5076  ;;  %v5074_v55 = vadd.f32 %v5073_v26, %v5068_v20  ;;  %5520 = vperm.xlu1 %7532, %v8742_v42   ;;  %v5621_v42 = vld [vmem:[%s8824_s1 + $0x8] sm:$0xff]  ;;  %v5189_v26 = vmul.f32 %v5187_v61, %v8558_v53  ;;  %v6271_v61 = vld [vmem:[%s8824_s1 + $0x98] sm:$0xff] }
0x1c64   :  { %v5079_v31 = vmul.f32 %v5077_v22, %v8558_v53  ;;  %v7359_v2 = vpack.c.bf16 %v5621_v42, %v5620_v43 }
0x1c65   :  { %v5377_v43 = vpop.permute.xlu0 %5376 }
0x1c66   :  { %v5080_v38 = vadd.f32 %v5079_v31, %v5074_v55  ;;  %7360 = vmatpush3.bf16.msra.mxu1 %v7359_v2  ;;  %v6266_v2 = vld [vmem:[%s8824_s1 + $0x70] sm:$0xff] }
0x1c67   :  { %7535 = vset.pattern.permute.xlu1 %v7724_v36  ;;  %7361 = vmatprep.subr.bf16.mxu1 %v7685_v0 }
0x1c68   :  { %v5083_v28 = vpop.permute.xlu1 %5082  ;;  %5247 = vperm.xlu1 %7535, %v8758_v4   ;;  %v5623_v4 = vld [vmem:[%s8824_s1 + $0x18] sm:$0xff] }
0x1c69   :  { %v5085_v39 = vmul.f32 %v5083_v28, %v8562_v58  ;;  %v7362_v54 = vpack.c.bf16 %v5623_v4, %v5622_v30  ;;  %v6267_v4 = vld [vmem:[%s8824_s1 + $0x78] sm:$0xff] }
0x1c6b   :  { %v8813_v41 = vadd.f32 %v5085_v39, %v5080_v38  ;;  %7363 = vmatpush3.bf16.msra.mxu1 %v7362_v54 }
0x1c6c   :  { %5576 = vperm.xlu1 %7535, %v8748_v3   ;;  %7364 = vmatprep.subr.bf16.mxu1 %v7685_v0 }
0x1c6d   :  { %v5120_v33 = vpop.permute.xlu1 %5119 }
0x1c6e   :  { %v5122_v10 = vmul.f32 %v5120_v33, %v8549_v9 }
0x1c6f   :  { %7366 = vmatpush3.bf16.msra.mxu1 %v7365_v5  ;;  %v7380_v5 = vpack.c.bf16 %v6267_v4, %v6266_v2 }
0x1c70   :  { %v5123_v17 = vadd.f32 %v5122_v10, %v5117_v11  ;;  %7367 = vmatprep.subr.bf16.mxu1 %v7685_v0 }
0x1c72   :  { %v5126_v49 = vpop.permute.xlu1 %5125 }
0x1c73   :  { %v5128_v36 = vmul.f32 %v5126_v49, %v8554_v12  ;;  %7369 = vmatpush3.bf16.msra.mxu1 %v7368_v52 }
0x1c74   :  { %7370 = vmatprep.subr.bf16.mxu1 %v7685_v0 }
0x1c75   :  { %v5129_v21 = vadd.f32 %v5128_v36, %v5123_v17 }
0x1c77   :  { %v5138_v27 = vpop.permute.xlu1 %5137  ;;  %v5135_v45 = vadd.f32 %v5134_v57, %v5129_v21  ;;  %7372 = vmatpush3.bf16.msra.mxu1 %v7371_v7  ;;  %v7386_v7 = vpack.c.bf16 %v6271_v61, %v6270_v60 }
0x1c78   :  { %v5140_v29 = vmul.f32 %v5138_v27, %v8562_v58  ;;  %7388 = vmatprep.subr.bf16.mxu1 %v7685_v0 }
0x1c7a   :  { %v8826_v13 = vadd.f32 %v5140_v29, %v5135_v45  ;;  %v6262_v29 = vld [vmem:[%s8824_s1 + $0x50] sm:$0xff] }
0x1c7c   :  { %v5175_v34 = vpop.permute.xlu1 %5174 }
0x1c7d   :  { %v5177_v46 = vmul.f32 %v5175_v34, %v8549_v9  ;;  %v6264_v34 = vld [vmem:[%s8824_s1 + $0x60] sm:$0xff] }
0x1c7f   :  { %v5178_v3 = vadd.f32 %v5177_v46, %v5172_v47  ;;  %v7374_v47 = vpack.c.bf16 %v6263_v59, %v6262_v29  ;;  %v6265_v46 = vld [vmem:[%s8824_s1 + $0x68] sm:$0xff] }
0x1c81   :  { %v5225_v6 = vpop.permute.xlu1 %5224  ;;  %7375 = vmatpush3.bf16.msra.mxu0 %v7374_v47 }
0x1c82   :  { %v5227_v51 = vmul.f32 %v5225_v6, %v8541_v32  ;;  %7376 = vmatprep.subr.bf16.mxu0 %v7685_v0  ;;  %v5379_v6 = vmul.f32 %v5377_v43, %v8562_v58 }
0x1c86   :  { %v5230_v15 = vpop.permute.xlu1 %5229 }
0x1c87   :  { %v5232_v16 = vmul.f32 %v5230_v15, %v8549_v9  ;;  %v6268_v15 = vld [vmem:[%s8824_s1 + $0x80] sm:$0xff] }
0x1c88   :  { %v7383_v52 = vpack.c.bf16 %v6269_v19, %v6268_v15 }
0x1c89   :  { %v5233_v8 = vadd.f32 %v5232_v16, %v5227_v51  ;;  %v5454_v16 = vpop.permute.xlu0 %5453 }
0x1c8b   :  { %v5181_v18 = vpop.permute.xlu1 %5180 }
0x1c8c   :  { %v5183_v25 = vmul.f32 %v5181_v18, %v8554_v12 }
0x1c8e   :  { %v5184_v20 = vadd.f32 %v5183_v25, %v5178_v3  ;;  %v7377_v3 = vpack.c.bf16 %v6265_v46, %v6264_v34 }
0x1c8f   :  { %v5236_v22 = vpop.permute.xlu1 %5235 }
0x1c90   :  { %v5238_v55 = vmul.f32 %v5236_v22, %v8554_v12  ;;  %v5190_v31 = vadd.f32 %v5189_v26, %v5184_v20  ;;  %7378 = vmatpush3.bf16.msra.mxu0 %v7377_v3  ;;  %v5465_v26 = vpop.permute.xlu0 %5464  ;;  %v5456_v22 = vmul.f32 %v5454_v16, %v8541_v32 }
0x1c91   :  { %7379 = vmatprep.subr.bf16.mxu0 %v7685_v0 }
0x1c92   :  { %v5239_v38 = vadd.f32 %v5238_v55, %v5233_v8 }
0x1c94   :  { %v5242_v28 = vpop.permute.xlu1 %5241  ;;  %7381 = vmatpush3.bf16.msra.mxu0 %v7380_v5 }
0x1c95   :  { %v5244_v39 = vmul.f32 %v5242_v28, %v8558_v53  ;;  %7382 = vmatprep.subr.bf16.mxu0 %v7685_v0 }
0x1c97   :  { %v8851_v37 = vadd.f32 %v5244_v39, %v5239_v38 }
0x1c98   :  { %7384 = vmatpush3.bf16.msra.mxu0 %v7383_v52 }
0x1c99   :  { %v5193_v33 = vpop.permute.xlu1 %5192  ;;  %7385 = vmatprep.subr.bf16.mxu0 %v7685_v0 }
0x1c9a   :  { %v5195_v11 = vmul.f32 %v5193_v33, %v8562_v58  ;;  %v5427_v33 = vpop.permute.xlu0 %5426 }
0x1c9c   :  { %v8854_v10 = vadd.f32 %v5195_v11, %v5190_v31  ;;  %v5467_v31 = vmul.f32 %v5465_v26, %v8554_v12  ;;  %7387 = vmatpush3.bf16.msra.mxu0 %v7386_v7 }
0x1c9d   :  { %7403 = vmatprep.subr.bf16.mxu0 %v7685_v0 }
0x1c9e   :  { %v5354_v17 = vpop.permute.xlu1 %5353 }
0x1c9f   :  { %v5356_v49 = vmul.f32 %v5354_v17, %v8541_v32 }
0x1ca3   :  { %v5359_v63 = vpop.permute.xlu1 %5358 }
0x1ca4   :  { %v5361_v36 = vmul.f32 %v5359_v63, %v8549_v9 }
0x1ca6   :  { %v5362_v57 = vadd.f32 %v5361_v36, %v5356_v49  ;;  %v5509_v36 = vpop.permute.xlu0 %5508 }
0x1ca8   :  { %v5365_v21 = vpop.permute.xlu1 %5364 }
0x1ca9   :  { %v5367_v27 = vmul.f32 %v5365_v21, %v8554_v12 }
0x1caa   :  { %v5554_v47 = vpop.permute.xlu0 %5553 }
0x1cab   :  { %v5368_v45 = vadd.f32 %v5367_v27, %v5362_v57  ;;  %v5429_v57 = vmul.f32 %v5427_v33, %v8562_v58  ;;  %v5556_v19 = vmul.f32 %v5554_v47, %v8541_v32  ;;  %v6288_v47 = vld [vmem:[%s8824_s1 + $0xf0] sm:$0xff] }
0x1cad   :  { %v5371_v42 = vpop.permute.xlu1 %5370 }
0x1cae   :  { %v5373_v30 = vmul.f32 %v5371_v42, %v8558_v53  ;;  %v5515_v3 = vpop.permute.xlu0 %5514 }
0x1cb0   :  { %v5374_v54 = vadd.f32 %v5373_v30, %v5368_v45 }
0x1cb2   :  { %v5380_v51 = vadd.f32 %v5379_v6, %v5374_v54  ;;  %v5404_v23 = vpop.permute.xlu1 %5403  ;;  %v5511_v6 = vmul.f32 %v5509_v36, %v8549_v9  ;;  %v6279_v36 = vld [vmem:[%s8824_s1 + $0xc0] sm:$0xff] }
0x1cb3   :  { %v5406_v18 = vmul.f32 %v5404_v23, %v8541_v32 }
0x1cb4   :  { %v5581_v24 = vsel %vm151_vm1, %v8798_v48, %v5380_v51  ;;  %v5517_v51 = vmul.f32 %v5515_v3, %v8554_v12  ;;  %v6291_v3 = vld [vmem:[%s8824_s1 + $0x108] sm:$0xff] }
0x1cb5   :  { %v8879_v8 = vadd.f32 %v8871_v35, %v5581_v24 }
0x1cb7   :  { %v5409_v44 = vpop.permute.xlu1 %5408  ;;  %5616 = vrot.lane.b32.xlu0 %v8879_v8, %s7729_s13 }
0x1cb8   :  { %v5411_v25 = vmul.f32 %v5409_v44, %v8549_v9 }
0x1cba   :  { %v5412_v48 = vadd.f32 %v5411_v25, %v5406_v18 }
0x1cbb   :  { %v5459_v20 = vpop.permute.xlu1 %5458 }
0x1cbc   :  { %v5461_v55 = vmul.f32 %v5459_v20, %v8549_v9 }
0x1cbe   :  { %v5462_v38 = vadd.f32 %v5461_v55, %v5456_v22 }
0x1cc0   :  { %v5415_v28 = vpop.permute.xlu1 %5414  ;;  %v5468_v39 = vadd.f32 %v5467_v31, %v5462_v38 }
0x1cc1   :  { %v5417_v11 = vmul.f32 %v5415_v28, %v8554_v12 }
0x1cc3   :  { %v5418_v17 = vadd.f32 %v5417_v11, %v5412_v48 }
0x1cc5   :  { %v5421_v63 = vpop.permute.xlu1 %5420 }
0x1cc6   :  { %v5423_v49 = vmul.f32 %v5421_v63, %v8558_v53  ;;  %v6278_v63 = vld [vmem:[%s8824_s1 + $0xb8] sm:$0xff] }
0x1cc8   :  { %v5424_v21 = vadd.f32 %v5423_v49, %v5418_v17  ;;  %v6277_v17 = vld [vmem:[%s8824_s1 + $0xb0] sm:$0xff] }
0x1cc9   :  { %v5471_v27 = vpop.permute.xlu1 %5470  ;;  %v7392_v49 = vpack.c.bf16 %v6278_v63, %v6277_v17  ;;  %v6286_v63 = vld [vmem:[%s6161_s29 + $0x2] ss:$0 sm:$0xff] }
0x1cca   :  { %v5430_v45 = vadd.f32 %v5429_v57, %v5424_v21  ;;  %v5473_v29 = vmul.f32 %v5471_v27, %v8558_v53  ;;  %v6280_v57 = vld [vmem:[%s8824_s1 + $0xc8] sm:$0xff]  ;;  %v6282_v27 = vld [vmem:[%s8824_s1 + $0xd8] sm:$0xff] }
0x1ccb   :  { %v7395_v21 = vpack.c.bf16 %v6280_v57, %v6279_v36 }
0x1ccc   :  { %v5474_v59 = vadd.f32 %v5473_v29, %v5468_v39  ;;  %v5583_v34 = vsel %vm151_vm1, %v8813_v41, %v5430_v45  ;;  %v6283_v29 = vld [vmem:[%s8824_s1 + $0xe0] sm:$0xff] }
0x1ccd   :  { %v5584_v46 = vadd.f32 %v8871_v35, %v5583_v34 }
0x1cce   :  { %v5477_v43 = vpop.permute.xlu1 %5476 }
0x1ccf   :  { %v5479_v42 = vmul.f32 %v5477_v43, %v8562_v58  ;;  %5712 = vrot.lane.b32.xlu1 %v5584_v46, %s7729_s13 }
0x1cd1   :  { %v5480_v30 = vadd.f32 %v5479_v42, %v5474_v59  ;;  %v6284_v59 = vld [vmem:[%s8824_s1 + $0xe8] sm:$0xff] }
0x1cd2   :  { %v7401_v34 = vpack.c.bf16 %v6284_v59, %v6283_v29 }
0x1cd3   :  { %v5585_v2 = vsel %vm151_vm1, %v8826_v13, %v5480_v30  ;;  %v5504_v4 = vpop.permute.xlu1 %5503  ;;  %v5571_v13 = vpop.permute.xlu0 %5570  ;;  %v6290_v30 = vld [vmem:[%s8824_s1 + $0x100] sm:$0xff] }
0x1cd4   :  { %v5506_v54 = vmul.f32 %v5504_v4, %v8541_v32  ;;  %v5586_v41 = vadd.f32 %v8871_v35, %v5585_v2  ;;  %v5573_v60 = vmul.f32 %v5571_v13, %v8558_v53  ;;  %v7407_v4 = vpack.c.bf16 %v6291_v3, %v6290_v30  ;;  %v6295_v13 = vld [vmem:[%s8824_s1 + $0x128] sm:$0xff] }
0x1cd6   :  { %v5512_v23 = vadd.f32 %v5511_v6, %v5506_v54  ;;  %5809 = vrot.lane.b32.xlu0 %v5586_v41, %s7729_s13  ;;  %v6301_v6 = vld [vmem:[%s8824_s1 + $0x140] sm:$0xff]  ;;  %v6302_v54 = vld [vmem:[%s8824_s1 + $0x148] sm:$0xff] }
0x1cd7   :  { %v5527_v18 = vpop.permute.xlu0 %5526 }
0x1cd8   :  { %v5559_v5 = vpop.permute.xlu1 %5558  ;;  %v5518_v15 = vadd.f32 %v5517_v51, %v5512_v23  ;;  %v5529_v26 = vmul.f32 %v5527_v18, %v8562_v58  ;;  %v6293_v51 = vld [vmem:[%s8824_s1 + $0x118] sm:$0xff]  ;;  %v7419_v23 = vpack.c.bf16 %v6302_v54, %v6301_v6 }
0x1cd9   :  { %v5561_v24 = vmul.f32 %v5559_v5, %v8549_v9  ;;  %v6297_v18 = vld [vmem:[%s8824_s1 + $0x138] sm:$0xff] }
0x1cdb   :  { %v5562_v16 = vadd.f32 %v5561_v24, %v5556_v19  ;;  %v6304_v19 = vld [vmem:[%s8824_s1 + $0x158] sm:$0xff] }
0x1cdd   :  { %v5565_v52 = vpop.permute.xlu1 %5564 }
0x1cde   :  { %v5567_v44 = vmul.f32 %v5565_v52, %v8554_v12 }
0x1ce0   :  { %v5568_v61 = vadd.f32 %v5567_v44, %v5562_v16  ;;  %v6294_v16 = vld [vmem:[%s8824_s1 + $0x120] sm:$0xff] }
0x1ce1   :  { %v7413_v44 = vpack.c.bf16 %v6295_v13, %v6294_v16 }
0x1ce2   :  { %v5521_v25 = vpop.permute.xlu1 %5520  ;;  %v5574_v48 = vadd.f32 %v5573_v60, %v5568_v61  ;;  %v6305_v60 = vld [vmem:[%s8824_s1 + $0x160] sm:$0xff]  ;;  %v6306_v61 = vld [vmem:[%s8824_s1 + $0x168] sm:$0xff] }
0x1ce3   :  { %v5523_v7 = vmul.f32 %v5521_v25, %v8558_v53  ;;  %v7425_v25 = vpack.c.bf16 %v6306_v61, %v6305_v60 }
0x1ce5   :  { %v5524_v20 = vadd.f32 %v5523_v7, %v5518_v15  ;;  %v6303_v15 = vld [vmem:[%s8824_s1 + $0x150] sm:$0xff] }
0x1ce6   :  { %v7422_v52 = vpack.c.bf16 %v6304_v19, %v6303_v15  ;;  %v6307_v7 = vld [vmem:[%s8824_s1 + $0x170] sm:$0xff] }
0x1ce7   :  { %v5530_v22 = vadd.f32 %v5529_v26, %v5524_v20  ;;  %v5248_v32 = vpop.permute.xlu1 %5247  ;;  %v6309_v20 = vld [vmem:[%s8824_s1 + $0x180] sm:$0xff] }
0x1ce8   :  { %v5250_v9 = vmul.f32 %v5248_v32, %v8562_v58 }
0x1ce9   :  { %v5587_v12 = vsel %vm151_vm1, %v8854_v10, %v5530_v22  ;;  %v6310_v22 = vld [vmem:[%s8824_s1 + $0x188] sm:$0xff] }
0x1cea   :  { %v5251_v55 = vadd.f32 %v5250_v9, %v8851_v37  ;;  %v5588_v31 = vadd.f32 %v8871_v35, %v5587_v12  ;;  %v6276_v37 = vld [vmem:[%s8824_s1 + $0xa8] sm:$0xff]  ;;  %v7431_v32 = vpack.c.bf16 %v6310_v22, %v6309_v20 }
0x1ceb   :  { %v5577_v38 = vpop.permute.xlu1 %5576 }
0x1cec   :  { %v5579_v53 = vmul.f32 %v5577_v38, %v8562_v58  ;;  %5906 = vrot.lane.b32.xlu1 %v5588_v31, %s7729_s13  ;;  %v6275_v58 = vld [vmem:[%s8824_s1 + $0xa0] sm:$0xff] }
0x1ced   :  { %v7389_v10 = vpack.c.bf16 %v6276_v37, %v6275_v58 }
0x1cee   :  { %v5580_v28 = vadd.f32 %v5579_v53, %v5574_v48 }
0x1cf0   :  { %v5589_v39 = vsel %vm151_vm1, %v5251_v55, %v5580_v28  ;;  %5592 = vrot.lane.b32.xlu1 %v5584_v46, %s7701_s2  ;;  %v6289_v46 = vld [vmem:[%s8824_s1 + $0xf8] sm:$0xff] }
0x1cf1   :  { %v8925_v33 = vadd.f32 %v8871_v35, %v5589_v39  ;;  %v7404_v43 = vpack.c.bf16 %v6289_v46, %v6288_v47 }
0x1cf3   :  { %6003 = vrot.lane.b32.xlu0 %v8925_v33, %s7729_s13 }
0x1cf4   :  { %5600 = vrot.lane.b32.xlu1 %v5588_v31, %s7708_s10  ;;  %s7730_s10 = smov 33  }
0x1cf5   :  { %s6162_s19 = sld [smem:[%s9016_s0 + %s7730_s10]]  }
0x1cf7   :  { %5596 = vrot.lane.b32.xlu0 %v5586_v41, %s7718_s21  ;;  %v6292_v41 = vld [vmem:[%s8824_s1 + $0x110] sm:$0xff] }
0x1d29   :  { %v5617_v11 = vpop.permute.xlu0 %5616 }
0x1d2a   :  { %v5619_v35 = vsel %vm4369_vm5, %v8479_v56, %v5617_v11  ;;  %v6281_v56 = vld [vmem:[%s8824_s1 + $0xd0] sm:$0xff] }
0x1d2b   :  { %7054 = vmatmul.mubr.msk.f32.vlgmr.msra.gmra.mrb[52].mxu1 %vm5637_vm4, %v5619_v35  ;;  %v7398_v45 = vpack.c.bf16 %v6282_v27, %v6281_v56  ;;  %v6312_v27 = vld [vmem:[%s6161_s29 + $0x4] ss:$0 sm:$0xff] }
0x1d2c   :  { %7390 = vmatpush3.bf16.msra.mxu1 %v7389_v10  ;;  %7099 = vmatprep.mubr.msk.f32.mxu1 %vm7687_vm0, %v7688_v1  ;;  %v6273_v10 = vld [vmem:[%s6161_s29 + $0x1] ss:$0 sm:$0xff] }
0x1d2d   :  { %7391 = vmatprep.subr.bf16.mxu1 %v7685_v0 }
0x1d30   :  { %7393 = vmatpush3.bf16.msra.mxu1 %v7392_v49 }
0x1d31   :  { %7394 = vmatprep.subr.bf16.mxu1 %v7685_v0 }
0x1d34   :  { %7396 = vmatpush3.bf16.msra.mxu1 %v7395_v21 }
0x1d35   :  { %7397 = vmatprep.subr.bf16.mxu1 %v7685_v0 }
0x1d38   :  { %7399 = vmatpush3.bf16.msra.mxu1 %v7398_v45 }
0x1d39   :  { %7400 = vmatprep.subr.bf16.mxu1 %v7685_v0 }
0x1d3c   :  { %7402 = vmatpush3.bf16.msra.mxu1 %v7401_v34  ;;  %v6260_v34 = vld [vmem:[%s6161_s29] ss:$0 sm:$0xff] }
0x1d3d   :  { %7418 = vmatprep.subr.bf16.mxu1 %v7685_v0 }
0x1d41   :  { %v5713_v42 = vpop.permute.xlu1 %5712 }
0x1d42   :  { %v5715_v2 = vsel %vm4369_vm5, %v8498_v40, %v5713_v42  ;;  %v7410_v40 = vpack.c.bf16 %v6293_v51, %v6292_v41 }
0x1d43   :  { %7077 = vmatmul.mubr.msk.f32.vlgmr.msra.gmra.mrb[60].mxu0 %vm5637_vm4, %v5715_v2 }
0x1d44   :  { %7405 = vmatpush3.bf16.msra.mxu0 %v7404_v43  ;;  %7122 = vmatprep.mubr.msk.f32.mxu0 %vm7687_vm0, %v7688_v1 }
0x1d45   :  { %7406 = vmatprep.subr.bf16.mxu0 %v7685_v0 }
0x1d48   :  { %v5810_v5 = vpop.permute.xlu0 %5809  ;;  %7408 = vmatpush3.bf16.msra.mxu0 %v7407_v4 }
0x1d49   :  { %v5812_v24 = vsel %vm4369_vm5, %v8507_v62, %v5810_v5  ;;  %7409 = vmatprep.subr.bf16.mxu0 %v7685_v0  ;;  %v6296_v62 = vld [vmem:[%s8824_s1 + $0x130] sm:$0xff] }
0x1d4a   :  { %7100 = vmatmul.mubr.msk.f32.vlgmr.msra.gmra.mrb[54].mxu1 %vm5637_vm4, %v5812_v24  ;;  %v7416_v48 = vpack.c.bf16 %v6297_v18, %v6296_v62 }
0x1d4b   :  { %7420 = vmatpush3.bf16.msra.mxu1 %v7419_v23  ;;  %7145 = vmatprep.mubr.msk.f32.mxu1 %vm7687_vm0, %v7688_v1  ;;  %v6308_v1 = vld [vmem:[%s8824_s1 + $0x178] sm:$0xff]  ;;  %vm5604_vm0 = vcmask 523264  }
0x1d4c   :  { %7411 = vmatpush3.bf16.msra.mxu0 %v7410_v40  ;;  %7421 = vmatprep.subr.bf16.mxu1 %v7685_v0  ;;  %v7428_v26 = vpack.c.bf16 %v6308_v1, %v6307_v7 }
0x1d4d   :  { %7412 = vmatprep.subr.bf16.mxu0 %v7685_v0 }
0x1d4f   :  { %7423 = vmatpush3.bf16.msra.mxu1 %v7422_v52 }
0x1d50   :  { %7414 = vmatpush3.bf16.msra.mxu0 %v7413_v44  ;;  %7424 = vmatprep.subr.bf16.mxu1 %v7685_v0 }
0x1d51   :  { %7415 = vmatprep.subr.bf16.mxu0 %v7685_v0 }
0x1d53   :  { %7426 = vmatpush3.bf16.msra.mxu1 %v7425_v25 }
0x1d54   :  { %7417 = vmatpush3.bf16.msra.mxu0 %v7416_v48  ;;  %7427 = vmatprep.subr.bf16.mxu1 %v7685_v0 }
0x1d57   :  { %7429 = vmatpush3.bf16.msra.mxu1 %v7428_v26 }
0x1d58   :  { %7430 = vmatprep.subr.bf16.mxu1 %v7685_v0 }
0x1d5b   :  { %7432 = vmatpush3.bf16.msra.mxu1 %v7431_v32 }
0x1d5e   :  { %v5907_v9 = vpop.permute.xlu1 %5906 }
0x1d5f   :  { %v5909_v12 = vsel %vm4369_vm5, %v8520_v50, %v5907_v9 }
0x1d60   :  { %7123 = vmatmul.mubr.msk.f32.vlgmr.msra.gmra.mrb[62].mxu0 %vm5637_vm4, %v5909_v12 }
0x1d62   :  { %v5593_v55 = vpop.permute.xlu1 %5592 }
0x1d63   :  { %v5603_v0 = vsel %vm237_vm2, %v8879_v8, %v5593_v55 }
0x1d65   :  { %v6004_v31 = vpop.permute.xlu0 %6003 }
0x1d66   :  { %v6006_v38 = vsel %vm4369_vm5, %v8529_v14, %v6004_v31  ;;  %v5601_v53 = vpop.permute.xlu1 %5600  ;;  %vm6117_vm5 = vcmask 195584  }
0x1d67   :  { %7146 = vmatmul.mubr.msk.f32.vlgmr.msra.gmra.mrb[56].mxu1 %vm5637_vm4, %v6006_v38 }
0x1d69   :  { %v5597_v50 = vpop.permute.xlu0 %5596 }
0x1d6a   :  { %v5605_v28 = vsel %vm5604_vm0, %v5603_v0, %v5597_v50 }
0x1d6b   :  { %v5607_v39 = vsel %vm5606_vm12, %v5605_v28, %v5601_v53 }
0x1d6c   :  { %v5610_v14 = vcombine.low %v5607_v39, %v8925_v33  ;;  %v6299_v33 = vld [vmem:[%s6161_s29 + $0x3] ss:$0 sm:$0xff] }
0x1d6e   :  { %5614 = vst.msk [vmem:[%s6162_s19] sm:$0xff] %vm5613_vm13, %v5610_v14 }
0x1dfe   :  { %v5707_v58 = vpop.f32.mrb[52].mxu1 }
0x1dff   :  { %v7055_v37 = vpop.f32.mrb[53].mxu1  ;;  %v5708_v46 = vadd.f32 %v6260_v34, %v5707_v58 }
0x1e16   :  { %v5804_v11 = vpop.f32.mrb[60].mxu0 }
0x1e17   :  { %v5805_v17 = vadd.f32 %v6273_v10, %v5804_v11  ;;  %v7078_v8 = vpop.f32.mrb[61].mxu0 }
0x1e19   :  { %6100 = vrot.lane.b32.xlu0 %v5805_v17, %s7690_s14  ;;  %s7731_s14 = smov 34  }
0x1e1a   :  { %s6163_s11 = sld [smem:[%s9016_s0 + %s7731_s14]]  }
0x1e1d   :  { %v5901_v35 = vpop.f32.mrb[54].mxu1 }
0x1e1e   :  { %v5902_v49 = vadd.f32 %v6286_v63, %v5901_v35  ;;  %v7101_v36 = vpop.f32.mrb[55].mxu1 }
0x1e20   :  { %6104 = vrot.lane.b32.xlu1 %v5902_v49, %s7697_s12 }
0x1e33   :  { %v5998_v57 = vpop.f32.mrb[62].mxu0 }
0x1e34   :  { %v5999_v21 = vadd.f32 %v6299_v33, %v5998_v57  ;;  %v7124_v56 = vpop.f32.mrb[63].mxu0 }
0x1e36   :  { %6108 = vrot.lane.b32.xlu0 %v5999_v21, %s7713_s24 }
0x1e3a   :  { %v6095_v45 = vpop.f32.mrb[56].mxu1 }
0x1e3b   :  { %v6096_v29 = vadd.f32 %v6312_v27, %v6095_v45  ;;  %v7147_v59 = vpop.f32.mrb[57].mxu1 }
0x1e3d   :  { %6112 = vrot.lane.b32.xlu1 %v6096_v29, %s7701_s2 }
0x1e8b   :  { %v6101_v47 = vpop.permute.xlu0 %6100 }
0x1e8c   :  { %v6115_v30 = vsel %vm378_vm3, %v5708_v46, %v6101_v47 }
0x1e92   :  { %v6105_v43 = vpop.permute.xlu1 %6104 }
0x1e93   :  { %v6116_v3 = vsel %vm151_vm1, %v6115_v30, %v6105_v43 }
0x1ea8   :  { %v6109_v42 = vpop.permute.xlu0 %6108 }
0x1ea9   :  { %v6118_v2 = vsel %vm6117_vm5, %v6116_v3, %v6109_v42 }
0x1eaf   :  { %v6113_v4 = vpop.permute.xlu1 %6112 }
0x1eb0   :  { %v6119_v6 = vsel %vm237_vm2, %v6118_v2, %v6113_v4 }
0x1eb1   :  { %6121 = vst.msk [vmem:[%s6163_s11] sm:$0xf] %vm6120_vm6, %v6119_v6 }

</bundles_post_ra>
